<compile_context>
chip_gen: v7x
topology: tpu7x:2x2x1
jax: 0.10.0
libtpu: 0.0.40
codegen_flags: <defaults>
</compile_context>

<pallas_src>
import functools

import jax
import jax.numpy as jnp
from jax.experimental import pallas as pl
from jax.experimental.pallas import tpu as pltpu

# ---- model hyper-parameters (small, consistent with the module) ------------
D_MODEL = 32     # d_model
N_HEAD = 4       # nhead
DIM_FF = 64      # dim_feedforward
NUM_LAYERS = 2   # num_layers
T_LEN = 8        # target (object-query) sequence length
S_LEN = 16       # memory sequence length (H*W of encoder features)
BATCH = 2
EPS = 1e-5

# rows of the packed per-layer bias / LayerNorm slab (each row has width D)
_B_ROWS = ("sa_bq", "sa_bk", "sa_bv", "sa_bo",
           "ca_bq", "ca_bk", "ca_bv", "ca_bo",
           "l2_b", "n1_g", "n1_b", "n2_g", "n2_b", "n3_g", "n3_b")
# column-block order of the packed per-layer (D, 8*D) projection-weight slab
_W_SLOTS = ("sa_wq", "sa_wk", "sa_wv", "sa_wo",
            "ca_wq", "ca_wk", "ca_wv", "ca_wo")


# ---- in-kernel helpers ------------------------------------------------------
def _layer_norm(x, g, b):
    mu = jnp.mean(x, axis=-1, keepdims=True)
    var = jnp.mean((x - mu) ** 2, axis=-1, keepdims=True)
    return (x - mu) * jax.lax.rsqrt(var + EPS) * g + b


def _attend(q, k, v, batch, t_len, s_len):
    """Multi-head attention on folded rows, split per batch element.

    q: (B*T, D), k/v: (B*S, D)  ->  (B*T, D) (heads re-packed, pre-out-proj).
    Heads are batched in one einsum; the tiny batch loop is static (B=2).
    """
    d = q.shape[-1]
    dh = d // N_HEAD
    scale = 1.0 / (dh ** 0.5)
    outs = []
    for b in range(batch):
        qb = (q[b * t_len:(b + 1) * t_len] * scale).reshape(t_len, N_HEAD, dh)
        kb = k[b * s_len:(b + 1) * s_len].reshape(s_len, N_HEAD, dh)
        vb = v[b * s_len:(b + 1) * s_len].reshape(s_len, N_HEAD, dh)
        # contraction on the last dim of both operands (no user-level k.T)
        s = jnp.einsum("thd,shd->hts", qb, kb, preferred_element_type=jnp.float32)
        s = s - jnp.max(s, axis=-1, keepdims=True)
        p = jnp.exp(s)
        p = p / jnp.sum(p, axis=-1, keepdims=True)   # exact divide (torch parity)
        ctx = jnp.einsum("hts,shd->thd", p, vb, preferred_element_type=jnp.float32)
        outs.append(ctx.reshape(t_len, d))
    return jnp.concatenate(outs, axis=0)


# ---- fused decoder kernel: all layers, all batch elements, one grid step ----
def decoder_kernel(tq_ref, mem_ref, w_attn_ref, w_ff1_ref, w_ff2_ref,
                   b_d_ref, b_ff1_ref, out_ref, *,
                   batch, t_len, s_len, num_layers, return_intermediate):
    # TODO(synk): target_mask / memory_mask / key_padding masks are None in the
    # DETR eval path we reproduce; masked attention (and dropout) not implemented.
    d = D_MODEL
    bf16 = jnp.bfloat16

    x = tq_ref[0].astype(jnp.float32)        # (B*T, D) activation
    qpos = tq_ref[1].astype(jnp.float32)     # (B*T, D) query positional embedding
    mem = mem_ref[0].astype(jnp.float32)     # (B*S, D) memory (cross-attn value input)
    # cross-attn key input (memory + pos), precomputed in the wrapper
    mem_b = mem.astype(bf16)                 # layer-invariant bf16 LHS, hoisted
    memk_b = mem_ref[1].astype(bf16)

    for l in range(num_layers):              # static, fully fused layer loop
        w = w_attn_ref[l]                    # (D, 8D) bf16, lane-dense weight slab
        bd = b_d_ref[l]                      # (16, D) f32: biases + LN params

        # --- self attention: q = k = x + query_pos, value = x ---------------
        # fused Q|K projection: one (B*T,D)@(D,2D) matmul, split statically
        qk_in = (x + qpos).astype(bf16)
        qk = jnp.dot(qk_in, w[:, 0:2 * d], preferred_element_type=jnp.float32)
        q = qk[:, 0:d] + bd[0:1]
        k = qk[:, d:2 * d] + bd[1:2]
        v = jnp.dot(x.astype(bf16), w[:, 2 * d:3 * d],
                    preferred_element_type=jnp.float32) + bd[2:3]
        ctx = _attend(q, k, v, batch, t_len, t_len)
        sa = jnp.dot(ctx.astype(bf16), w[:, 3 * d:4 * d],
                     preferred_element_type=jnp.float32) + bd[3:4]
        x = _layer_norm(x + sa, bd[9:10], bd[10:11])

        # --- cross attention: q = x + query_pos, k = mem + pos, v = mem -----
        q = jnp.dot((x + qpos).astype(bf16), w[:, 4 * d:5 * d],
                    preferred_element_type=jnp.float32) + bd[4:5]
        k = jnp.dot(memk_b, w[:, 5 * d:6 * d],
                    preferred_element_type=jnp.float32) + bd[5:6]
        v = jnp.dot(mem_b, w[:, 6 * d:7 * d],
                    preferred_element_type=jnp.float32) + bd[6:7]
        ctx = _attend(q, k, v, batch, t_len, s_len)
        ca = jnp.dot(ctx.astype(bf16), w[:, 7 * d:8 * d],
                     preferred_element_type=jnp.float32) + bd[7:8]
        x = _layer_norm(x + ca, bd[11:12], bd[12:13])

        # --- feed-forward (ReLU, dropout = identity at eval) -----------------
        h = jnp.maximum(
            jnp.dot(x.astype(bf16), w_ff1_ref[l],
                    preferred_element_type=jnp.float32) + b_ff1_ref[l], 0.0)
        ff = jnp.dot(h.astype(bf16), w_ff2_ref[l],
                     preferred_element_type=jnp.float32) + bd[8:9]
        x = _layer_norm(x + ff, bd[13:14], bd[14:15])

        if return_intermediate:
            out_ref[l] = x.astype(out_ref.dtype)

    if not return_intermediate:
        out_ref[...] = x.astype(out_ref.dtype)   # final layer only


# ---- parameter packing ------------------------------------------------------
def pack_layer_params(layer_params):
    """Pack per-layer dicts into 5 stacked slabs with a leading layer axis."""
    d, f = D_MODEL, DIM_FF
    # lane-dense (L, D, 8D): [sa_wq | sa_wk | sa_wv | sa_wo | ca_wq | ca_wk | ca_wv | ca_wo]
    w_attn = jnp.stack(
        [jnp.concatenate([p[n] for n in _W_SLOTS], axis=1) for p in layer_params]
    ).astype(jnp.bfloat16)                                                        # (L, D, 8D)
    w_ff1 = jnp.stack([p["l1_w"] for p in layer_params]).astype(jnp.bfloat16)     # (L, D, F)
    w_ff2 = jnp.stack([p["l2_w"] for p in layer_params]).astype(jnp.bfloat16)     # (L, F, D)
    b_d = jnp.stack([
        jnp.stack([p[n].reshape(d) for n in _B_ROWS] + [jnp.zeros((d,), jnp.float32)])
        for p in layer_params])                                                   # (L, 16, D)
    b_ff1 = jnp.stack([p["l1_b"].reshape(1, f) for p in layer_params])            # (L, 1, F)
    return w_attn, w_ff1, w_ff2, b_d, b_ff1


# ---- wrapper ----------------------------------------------------------------
def transformer_decoder_forward(target, memory, query_pos, pos, layer_params,
                                return_intermediate=False):
    B, T, D = target.shape
    S = memory.shape[1]
    L = len(layer_params)

    # fold batch into rows; pack pairs sharing a shape into single slabs
    tq = jnp.stack([target.reshape(B * T, D), query_pos.reshape(B * T, D)])      # (2, B*T, D)
    mem_pack = jnp.stack([memory.reshape(B * S, D),
                          (memory + pos).reshape(B * S, D)])                     # (2, B*S, D)

    w_attn, w_ff1, w_ff2, b_d, b_ff1 = pack_layer_params(layer_params)

    def full_spec(a):
        return pl.BlockSpec(a.shape, lambda i, nd=a.ndim: (0,) * nd)

    kernel = functools.partial(
        decoder_kernel, batch=B, t_len=T, s_len=S, num_layers=L,
        return_intermediate=return_intermediate)

    if return_intermediate:
        out_shape = jax.ShapeDtypeStruct((L, B * T, D), target.dtype)
        out_spec = pl.BlockSpec((L, B * T, D), lambda i: (0, 0, 0))
    else:
        out_shape = jax.ShapeDtypeStruct((B * T, D), target.dtype)
        out_spec = pl.BlockSpec((B * T, D), lambda i: (0, 0))

    inputs = (tq, mem_pack, w_attn, w_ff1, w_ff2, b_d, b_ff1)
    out = pl.pallas_call(
        kernel,
        out_shape=out_shape,
        grid=(1,),                                   # single step: overhead-bound regime
        in_specs=[full_spec(a) for a in inputs],
        out_specs=out_spec,
        compiler_params=pltpu.CompilerParams(dimension_semantics=("arbitrary",)),
    )(*inputs)

    if return_intermediate:
        return out.reshape(L, B, T, D)               # torch.stack(intermediate)
    return out.reshape(B, T, D)[None]                # output.unsqueeze(0) -> (1, B, T, D)


# ---- deterministic parameter init ------------------------------------------
def init_layer_params(key):
    d, f = D_MODEL, DIM_FF
    w_shapes = {"sa_wq": (d, d), "sa_wk": (d, d), "sa_wv": (d, d), "sa_wo": (d, d),
                "ca_wq": (d, d), "ca_wk": (d, d), "ca_wv": (d, d), "ca_wo": (d, d),
                "l1_w": (d, f), "l2_w": (f, d)}
    params = {}
    names = sorted(w_shapes)
    keys = jax.random.split(key, len(names))
    for k, name in zip(keys, names):
        params[name] = 0.05 * jax.random.normal(k, w_shapes[name], jnp.float32)
    for name in ("sa_bq", "sa_bk", "sa_bv", "sa_bo",
                 "ca_bq", "ca_bk", "ca_bv", "ca_bo",
                 "l2_b", "n1_b", "n2_b", "n3_b"):
        params[name] = jnp.zeros((d,), jnp.float32)
    params["l1_b"] = jnp.zeros((f,), jnp.float32)
    for name in ("n1_g", "n2_g", "n3_g"):
        params[name] = jnp.ones((d,), jnp.float32)
    return params


# ---- main -------------------------------------------------------------------
if __name__ == "__main__":
    root = jax.random.PRNGKey(0)
    k_tgt, k_mem, k_qp, k_pos, k_par = jax.random.split(root, 5)

    target = jax.random.normal(k_tgt, (BATCH, T_LEN, D_MODEL), jnp.float32)
    memory = jax.random.normal(k_mem, (BATCH, S_LEN, D_MODEL), jnp.float32)
    query_pos = jax.random.normal(k_qp, (BATCH, T_LEN, D_MODEL), jnp.float32)
    pos = jax.random.normal(k_pos, (BATCH, S_LEN, D_MODEL), jnp.float32)

    layer_keys = jax.random.split(k_par, NUM_LAYERS)
    layer_params = [init_layer_params(k) for k in layer_keys]

    out = transformer_decoder_forward(target, memory, query_pos, pos,
                                      layer_params, return_intermediate=False)
    out = jax.block_until_ready(out)
    assert out.shape == (1, BATCH, T_LEN, D_MODEL)
    assert bool(jnp.all(jnp.isfinite(out)))
    print("KERNEL_OK")
</pallas_src>

<mosaic_0001>
module attributes {stable_mosaic.version = 11 : i64} {
  func.func @decoder_kernel(%arg0: i32, %arg1: memref<2x16x32xf32, #tpu.memory_space<vmem>>, %arg2: memref<2x32x32xf32, #tpu.memory_space<vmem>>, %arg3: memref<2x32x256xbf16, #tpu.memory_space<vmem>>, %arg4: memref<2x32x64xbf16, #tpu.memory_space<vmem>>, %arg5: memref<2x64x32xbf16, #tpu.memory_space<vmem>>, %arg6: memref<2x16x32xf32, #tpu.memory_space<vmem>>, %arg7: memref<2x1x64xf32, #tpu.memory_space<vmem>>, %arg8: memref<16x32xf32, #tpu.memory_space<vmem>>) attributes {dimension_semantics = [#tpu.dimension_semantics<arbitrary>], iteration_bounds = array<i64: 1>, scalar_prefetch = 0 : i64, scratch_operands = 0 : i64, tpu.core_type = #tpu.core_type<tc>, window_params = [{pipeline_mode = #tpu.pipeline_mode<synchronous>, transform_indices = @transform_0, window_bounds = array<i64: 2, 16, 32>}, {pipeline_mode = #tpu.pipeline_mode<synchronous>, transform_indices = @transform_1, window_bounds = array<i64: 2, 32, 32>}, {pipeline_mode = #tpu.pipeline_mode<synchronous>, transform_indices = @transform_2, window_bounds = array<i64: 2, 32, 256>}, {pipeline_mode = #tpu.pipeline_mode<synchronous>, transform_indices = @transform_3, window_bounds = array<i64: 2, 32, 64>}, {pipeline_mode = #tpu.pipeline_mode<synchronous>, transform_indices = @transform_4, window_bounds = array<i64: 2, 64, 32>}, {pipeline_mode = #tpu.pipeline_mode<synchronous>, transform_indices = @transform_5, window_bounds = array<i64: 2, 16, 32>}, {pipeline_mode = #tpu.pipeline_mode<synchronous>, transform_indices = @transform_6, window_bounds = array<i64: 2, 1, 64>}, {pipeline_mode = #tpu.pipeline_mode<synchronous>, transform_indices = @transform_7, window_bounds = array<i64: 16, 32>}]} {
    %c0 = arith.constant 0 : index
    %c0_0 = arith.constant 0 : index
    %c0_1 = arith.constant 0 : index
    %0 = vector.load %arg1[%c0, %c0_0, %c0_1] : memref<2x16x32xf32, #tpu.memory_space<vmem>>, vector<1x16x32xf32>
    %1 = vector.shape_cast %0 : vector<1x16x32xf32> to vector<16x32xf32>
    %c1 = arith.constant 1 : index
    %c0_2 = arith.constant 0 : index
    %c0_3 = arith.constant 0 : index
    %2 = vector.load %arg1[%c1, %c0_2, %c0_3] : memref<2x16x32xf32, #tpu.memory_space<vmem>>, vector<1x16x32xf32>
    %3 = vector.shape_cast %2 : vector<1x16x32xf32> to vector<16x32xf32>
    %c0_4 = arith.constant 0 : index
    %c0_5 = arith.constant 0 : index
    %c0_6 = arith.constant 0 : index
    %4 = vector.load %arg2[%c0_4, %c0_5, %c0_6] : memref<2x32x32xf32, #tpu.memory_space<vmem>>, vector<1x32x32xf32>
    %5 = vector.shape_cast %4 : vector<1x32x32xf32> to vector<32x32xf32>
    %6 = arith.truncf %5 : vector<32x32xf32> to vector<32x32xbf16>
    %c1_7 = arith.constant 1 : index
    %c0_8 = arith.constant 0 : index
    %c0_9 = arith.constant 0 : index
    %7 = vector.load %arg2[%c1_7, %c0_8, %c0_9] : memref<2x32x32xf32, #tpu.memory_space<vmem>>, vector<1x32x32xf32>
    %8 = vector.shape_cast %7 : vector<1x32x32xf32> to vector<32x32xf32>
    %9 = arith.truncf %8 : vector<32x32xf32> to vector<32x32xbf16>
    %c0_10 = arith.constant 0 : index
    %c0_11 = arith.constant 0 : index
    %c0_12 = arith.constant 0 : index
    %10 = vector.load %arg3[%c0_10, %c0_11, %c0_12] : memref<2x32x256xbf16, #tpu.memory_space<vmem>>, vector<1x32x256xbf16>
    %11 = vector.shape_cast %10 : vector<1x32x256xbf16> to vector<32x256xbf16>
    %c0_13 = arith.constant 0 : index
    %c0_14 = arith.constant 0 : index
    %c0_15 = arith.constant 0 : index
    %12 = vector.load %arg6[%c0_13, %c0_14, %c0_15] : memref<2x16x32xf32, #tpu.memory_space<vmem>>, vector<1x16x32xf32>
    %13 = vector.shape_cast %12 : vector<1x16x32xf32> to vector<16x32xf32>
    %14 = arith.addf %1, %3 : vector<16x32xf32>
    %15 = arith.truncf %14 : vector<16x32xf32> to vector<16x32xbf16>
    %16 = vector.extract_strided_slice %11 {offsets = [0, 0], sizes = [32, 64], strides = [1, 1]} : vector<32x256xbf16> to vector<32x64xbf16>
    %cst = arith.constant dense<0.000000e+00> : vector<16x64xf32>
    %17 = tpu.matmul %15, %16, %cst {dimension_numbers = #tpu.dot_dimension_numbers<[1], [0], [0], [1], [0, 0, 1, 1], [], []>} : vector<16x32xbf16>, vector<32x64xbf16>, vector<16x64xf32> -> vector<16x64xf32>
    %18 = vector.extract_strided_slice %17 {offsets = [0, 0], sizes = [16, 32], strides = [1, 1]} : vector<16x64xf32> to vector<16x32xf32>
    %19 = vector.extract_strided_slice %13 {offsets = [0, 0], sizes = [1, 32], strides = [1, 1]} : vector<16x32xf32> to vector<1x32xf32>
    %20 = vector.broadcast %19 : vector<1x32xf32> to vector<16x32xf32>
    %21 = arith.addf %18, %20 : vector<16x32xf32>
    %22 = vector.extract_strided_slice %17 {offsets = [0, 32], sizes = [16, 32], strides = [1, 1]} : vector<16x64xf32> to vector<16x32xf32>
    %23 = vector.extract_strided_slice %13 {offsets = [1, 0], sizes = [1, 32], strides = [1, 1]} : vector<16x32xf32> to vector<1x32xf32>
    %24 = vector.broadcast %23 : vector<1x32xf32> to vector<16x32xf32>
    %25 = arith.addf %22, %24 : vector<16x32xf32>
    %26 = arith.truncf %1 : vector<16x32xf32> to vector<16x32xbf16>
    %27 = vector.extract_strided_slice %11 {offsets = [0, 64], sizes = [32, 32], strides = [1, 1]} : vector<32x256xbf16> to vector<32x32xbf16>
    %cst_16 = arith.constant dense<0.000000e+00> : vector<16x32xf32>
    %28 = tpu.matmul %26, %27, %cst_16 {dimension_numbers = #tpu.dot_dimension_numbers<[1], [0], [0], [1], [0, 0, 1, 1], [], []>} : vector<16x32xbf16>, vector<32x32xbf16>, vector<16x32xf32> -> vector<16x32xf32>
    %29 = vector.extract_strided_slice %13 {offsets = [2, 0], sizes = [1, 32], strides = [1, 1]} : vector<16x32xf32> to vector<1x32xf32>
    %30 = vector.broadcast %29 : vector<1x32xf32> to vector<16x32xf32>
    %31 = arith.addf %28, %30 : vector<16x32xf32>
    %32 = vector.extract_strided_slice %21 {offsets = [0, 0], sizes = [8, 32], strides = [1, 1]} : vector<16x32xf32> to vector<8x32xf32>
    %cst_17 = arith.constant 0.353553385 : f32
    %33 = vector.broadcast %cst_17 : f32 to vector<8x32xf32>
    %34 = arith.mulf %32, %33 : vector<8x32xf32>
    %35 = vector.shape_cast %34 : vector<8x32xf32> to vector<8x4x8xf32>
    %36 = vector.extract_strided_slice %25 {offsets = [0, 0], sizes = [8, 32], strides = [1, 1]} : vector<16x32xf32> to vector<8x32xf32>
    %37 = vector.shape_cast %36 : vector<8x32xf32> to vector<8x4x8xf32>
    %38 = vector.extract_strided_slice %31 {offsets = [0, 0], sizes = [8, 32], strides = [1, 1]} : vector<16x32xf32> to vector<8x32xf32>
    %39 = vector.shape_cast %38 : vector<8x32xf32> to vector<8x4x8xf32>
    "tpu.trace_start"() <{level = 10 : i32, message = "thd,shd->hts"}> : () -> ()
    %cst_18 = arith.constant dense<0.000000e+00> : vector<4x8x8xf32>
    %40 = tpu.matmul %35, %37, %cst_18 {dimension_numbers = #tpu.dot_dimension_numbers<[2], [2], [0], [0], [0, 1, 0, 0, 1, 0], [1], [1]>} : vector<8x4x8xf32>, vector<8x4x8xf32>, vector<4x8x8xf32> -> vector<4x8x8xf32>
    "tpu.trace_stop"() : () -> ()
    %cst_19 = arith.constant dense<0xFF800000> : vector<4x8xf32>
    %41 = vector.multi_reduction <maximumf>, %40, %cst_19 [2] : vector<4x8x8xf32> to vector<4x8xf32>
    %42 = vector.shape_cast %41 : vector<4x8xf32> to vector<4x8x1xf32>
    %43 = vector.broadcast %42 : vector<4x8x1xf32> to vector<4x8x8xf32>
    %44 = arith.subf %40, %43 : vector<4x8x8xf32>
    %45 = math.exp %44 : vector<4x8x8xf32>
    %cst_20 = arith.constant dense<0.000000e+00> : vector<4x8xf32>
    %46 = vector.multi_reduction <add>, %45, %cst_20 [2] : vector<4x8x8xf32> to vector<4x8xf32>
    %47 = vector.shape_cast %46 : vector<4x8xf32> to vector<4x8x1xf32>
    %48 = vector.broadcast %47 : vector<4x8x1xf32> to vector<4x8x8xf32>
    %49 = arith.divf %45, %48 : vector<4x8x8xf32>
    "tpu.trace_start"() <{level = 10 : i32, message = "hts,shd->thd"}> : () -> ()
    %cst_21 = arith.constant dense<0.000000e+00> : vector<4x8x8xf32>
    %50 = tpu.matmul %39, %49, %cst_21 {dimension_numbers = #tpu.dot_dimension_numbers<[0], [2], [2], [1], [0, 1, 0, 2, 1, 1], [1], [0]>} : vector<8x4x8xf32>, vector<4x8x8xf32>, vector<4x8x8xf32> -> vector<4x8x8xf32>
    %51 = tpu.transpose %50, [2, 0, 1] : vector<4x8x8xf32> -> vector<8x4x8xf32>
    "tpu.trace_stop"() : () -> ()
    %52 = vector.shape_cast %51 : vector<8x4x8xf32> to vector<8x32xf32>
    %53 = vector.extract_strided_slice %21 {offsets = [8, 0], sizes = [8, 32], strides = [1, 1]} : vector<16x32xf32> to vector<8x32xf32>
    %cst_22 = arith.constant 0.353553385 : f32
    %54 = vector.broadcast %cst_22 : f32 to vector<8x32xf32>
    %55 = arith.mulf %53, %54 : vector<8x32xf32>
    %56 = vector.shape_cast %55 : vector<8x32xf32> to vector<8x4x8xf32>
    %57 = vector.extract_strided_slice %25 {offsets = [8, 0], sizes = [8, 32], strides = [1, 1]} : vector<16x32xf32> to vector<8x32xf32>
    %58 = vector.shape_cast %57 : vector<8x32xf32> to vector<8x4x8xf32>
    %59 = vector.extract_strided_slice %31 {offsets = [8, 0], sizes = [8, 32], strides = [1, 1]} : vector<16x32xf32> to vector<8x32xf32>
    %60 = vector.shape_cast %59 : vector<8x32xf32> to vector<8x4x8xf32>
    "tpu.trace_start"() <{level = 10 : i32, message = "thd,shd->hts"}> : () -> ()
    %cst_23 = arith.constant dense<0.000000e+00> : vector<4x8x8xf32>
    %61 = tpu.matmul %56, %58, %cst_23 {dimension_numbers = #tpu.dot_dimension_numbers<[2], [2], [0], [0], [0, 1, 0, 0, 1, 0], [1], [1]>} : vector<8x4x8xf32>, vector<8x4x8xf32>, vector<4x8x8xf32> -> vector<4x8x8xf32>
    "tpu.trace_stop"() : () -> ()
    %cst_24 = arith.constant dense<0xFF800000> : vector<4x8xf32>
    %62 = vector.multi_reduction <maximumf>, %61, %cst_24 [2] : vector<4x8x8xf32> to vector<4x8xf32>
    %63 = vector.shape_cast %62 : vector<4x8xf32> to vector<4x8x1xf32>
    %64 = vector.broadcast %63 : vector<4x8x1xf32> to vector<4x8x8xf32>
    %65 = arith.subf %61, %64 : vector<4x8x8xf32>
    %66 = math.exp %65 : vector<4x8x8xf32>
    %cst_25 = arith.constant dense<0.000000e+00> : vector<4x8xf32>
    %67 = vector.multi_reduction <add>, %66, %cst_25 [2] : vector<4x8x8xf32> to vector<4x8xf32>
    %68 = vector.shape_cast %67 : vector<4x8xf32> to vector<4x8x1xf32>
    %69 = vector.broadcast %68 : vector<4x8x1xf32> to vector<4x8x8xf32>
    %70 = arith.divf %66, %69 : vector<4x8x8xf32>
    "tpu.trace_start"() <{level = 10 : i32, message = "hts,shd->thd"}> : () -> ()
    %cst_26 = arith.constant dense<0.000000e+00> : vector<4x8x8xf32>
    %71 = tpu.matmul %60, %70, %cst_26 {dimension_numbers = #tpu.dot_dimension_numbers<[0], [2], [2], [1], [0, 1, 0, 2, 1, 1], [1], [0]>} : vector<8x4x8xf32>, vector<4x8x8xf32>, vector<4x8x8xf32> -> vector<4x8x8xf32>
    %72 = tpu.transpose %71, [2, 0, 1] : vector<4x8x8xf32> -> vector<8x4x8xf32>
    "tpu.trace_stop"() : () -> ()
    %73 = vector.shape_cast %72 : vector<8x4x8xf32> to vector<8x32xf32>
    %74 = tpu.concatenate %52, %73 in 0 : vector<8x32xf32>, vector<8x32xf32> -> vector<16x32xf32>
    %75 = arith.truncf %74 : vector<16x32xf32> to vector<16x32xbf16>
    %76 = vector.extract_strided_slice %11 {offsets = [0, 96], sizes = [32, 32], strides = [1, 1]} : vector<32x256xbf16> to vector<32x32xbf16>
    %cst_27 = arith.constant dense<0.000000e+00> : vector<16x32xf32>
    %77 = tpu.matmul %75, %76, %cst_27 {dimension_numbers = #tpu.dot_dimension_numbers<[1], [0], [0], [1], [0, 0, 1, 1], [], []>} : vector<16x32xbf16>, vector<32x32xbf16>, vector<16x32xf32> -> vector<16x32xf32>
    %78 = vector.extract_strided_slice %13 {offsets = [3, 0], sizes = [1, 32], strides = [1, 1]} : vector<16x32xf32> to vector<1x32xf32>
    %79 = vector.broadcast %78 : vector<1x32xf32> to vector<16x32xf32>
    %80 = arith.addf %77, %79 : vector<16x32xf32>
    %81 = arith.addf %1, %80 : vector<16x32xf32>
    %82 = vector.extract_strided_slice %13 {offsets = [9, 0], sizes = [1, 32], strides = [1, 1]} : vector<16x32xf32> to vector<1x32xf32>
    %83 = vector.extract_strided_slice %13 {offsets = [10, 0], sizes = [1, 32], strides = [1, 1]} : vector<16x32xf32> to vector<1x32xf32>
    %cst_28 = arith.constant dense<0.000000e+00> : vector<16xf32>
    %84 = vector.multi_reduction <add>, %81, %cst_28 [1] : vector<16x32xf32> to vector<16xf32>
    %85 = vector.shape_cast %84 : vector<16xf32> to vector<16x1xf32>
    %cst_29 = arith.constant 3.200000e+01 : f32
    %86 = vector.broadcast %cst_29 : f32 to vector<16x1xf32>
    %87 = arith.divf %85, %86 : vector<16x1xf32>
    %88 = vector.broadcast %87 : vector<16x1xf32> to vector<16x32xf32>
    %89 = arith.subf %81, %88 : vector<16x32xf32>
    %90 = arith.mulf %89, %89 : vector<16x32xf32>
    %cst_30 = arith.constant dense<0.000000e+00> : vector<16xf32>
    %91 = vector.multi_reduction <add>, %90, %cst_30 [1] : vector<16x32xf32> to vector<16xf32>
    %92 = vector.shape_cast %91 : vector<16xf32> to vector<16x1xf32>
    %cst_31 = arith.constant 3.200000e+01 : f32
    %93 = vector.broadcast %cst_31 : f32 to vector<16x1xf32>
    %94 = arith.divf %92, %93 : vector<16x1xf32>
    %95 = vector.broadcast %87 : vector<16x1xf32> to vector<16x32xf32>
    %96 = arith.subf %81, %95 : vector<16x32xf32>
    %cst_32 = arith.constant 9.99999974E-6 : f32
    %97 = vector.broadcast %cst_32 : f32 to vector<16x1xf32>
    %98 = arith.addf %94, %97 : vector<16x1xf32>
    %99 = math.rsqrt %98 : vector<16x1xf32>
    %100 = vector.broadcast %99 : vector<16x1xf32> to vector<16x32xf32>
    %101 = arith.mulf %96, %100 : vector<16x32xf32>
    %102 = vector.broadcast %82 : vector<1x32xf32> to vector<16x32xf32>
    %103 = arith.mulf %101, %102 : vector<16x32xf32>
    %104 = vector.broadcast %83 : vector<1x32xf32> to vector<16x32xf32>
    %105 = arith.addf %103, %104 : vector<16x32xf32>
    %106 = arith.addf %105, %3 : vector<16x32xf32>
    %107 = arith.truncf %106 : vector<16x32xf32> to vector<16x32xbf16>
    %108 = vector.extract_strided_slice %11 {offsets = [0, 128], sizes = [32, 32], strides = [1, 1]} : vector<32x256xbf16> to vector<32x32xbf16>
    %cst_33 = arith.constant dense<0.000000e+00> : vector<16x32xf32>
    %109 = tpu.matmul %107, %108, %cst_33 {dimension_numbers = #tpu.dot_dimension_numbers<[1], [0], [0], [1], [0, 0, 1, 1], [], []>} : vector<16x32xbf16>, vector<32x32xbf16>, vector<16x32xf32> -> vector<16x32xf32>
    %110 = vector.extract_strided_slice %13 {offsets = [4, 0], sizes = [1, 32], strides = [1, 1]} : vector<16x32xf32> to vector<1x32xf32>
    %111 = vector.broadcast %110 : vector<1x32xf32> to vector<16x32xf32>
    %112 = arith.addf %109, %111 : vector<16x32xf32>
    %113 = vector.extract_strided_slice %11 {offsets = [0, 160], sizes = [32, 32], strides = [1, 1]} : vector<32x256xbf16> to vector<32x32xbf16>
    %cst_34 = arith.constant dense<0.000000e+00> : vector<32x32xf32>
    %114 = tpu.matmul %9, %113, %cst_34 {dimension_numbers = #tpu.dot_dimension_numbers<[1], [0], [0], [1], [0, 0, 1, 1], [], []>} : vector<32x32xbf16>, vector<32x32xbf16>, vector<32x32xf32> -> vector<32x32xf32>
    %115 = vector.extract_strided_slice %13 {offsets = [5, 0], sizes = [1, 32], strides = [1, 1]} : vector<16x32xf32> to vector<1x32xf32>
    %116 = vector.broadcast %115 : vector<1x32xf32> to vector<32x32xf32>
    %117 = arith.addf %114, %116 : vector<32x32xf32>
    %118 = vector.extract_strided_slice %11 {offsets = [0, 192], sizes = [32, 32], strides = [1, 1]} : vector<32x256xbf16> to vector<32x32xbf16>
    %cst_35 = arith.constant dense<0.000000e+00> : vector<32x32xf32>
    %119 = tpu.matmul %6, %118, %cst_35 {dimension_numbers = #tpu.dot_dimension_numbers<[1], [0], [0], [1], [0, 0, 1, 1], [], []>} : vector<32x32xbf16>, vector<32x32xbf16>, vector<32x32xf32> -> vector<32x32xf32>
    %120 = vector.extract_strided_slice %13 {offsets = [6, 0], sizes = [1, 32], strides = [1, 1]} : vector<16x32xf32> to vector<1x32xf32>
    %121 = vector.broadcast %120 : vector<1x32xf32> to vector<32x32xf32>
    %122 = arith.addf %119, %121 : vector<32x32xf32>
    %123 = vector.extract_strided_slice %112 {offsets = [0, 0], sizes = [8, 32], strides = [1, 1]} : vector<16x32xf32> to vector<8x32xf32>
    %cst_36 = arith.constant 0.353553385 : f32
    %124 = vector.broadcast %cst_36 : f32 to vector<8x32xf32>
    %125 = arith.mulf %123, %124 : vector<8x32xf32>
    %126 = vector.shape_cast %125 : vector<8x32xf32> to vector<8x4x8xf32>
    %127 = vector.extract_strided_slice %117 {offsets = [0, 0], sizes = [16, 32], strides = [1, 1]} : vector<32x32xf32> to vector<16x32xf32>
    %128 = vector.shape_cast %127 : vector<16x32xf32> to vector<16x4x8xf32>
    %129 = vector.extract_strided_slice %122 {offsets = [0, 0], sizes = [16, 32], strides = [1, 1]} : vector<32x32xf32> to vector<16x32xf32>
    %130 = vector.shape_cast %129 : vector<16x32xf32> to vector<16x4x8xf32>
    "tpu.trace_start"() <{level = 10 : i32, message = "thd,shd->hts"}> : () -> ()
    %cst_37 = arith.constant dense<0.000000e+00> : vector<4x8x16xf32>
    %131 = tpu.matmul %126, %128, %cst_37 {dimension_numbers = #tpu.dot_dimension_numbers<[2], [2], [0], [0], [0, 1, 0, 0, 1, 0], [1], [1]>} : vector<8x4x8xf32>, vector<16x4x8xf32>, vector<4x8x16xf32> -> vector<4x8x16xf32>
    "tpu.trace_stop"() : () -> ()
    %cst_38 = arith.constant dense<0xFF800000> : vector<4x8xf32>
    %132 = vector.multi_reduction <maximumf>, %131, %cst_38 [2] : vector<4x8x16xf32> to vector<4x8xf32>
    %133 = vector.shape_cast %132 : vector<4x8xf32> to vector<4x8x1xf32>
    %134 = vector.broadcast %133 : vector<4x8x1xf32> to vector<4x8x16xf32>
    %135 = arith.subf %131, %134 : vector<4x8x16xf32>
    %136 = math.exp %135 : vector<4x8x16xf32>
    %cst_39 = arith.constant dense<0.000000e+00> : vector<4x8xf32>
    %137 = vector.multi_reduction <add>, %136, %cst_39 [2] : vector<4x8x16xf32> to vector<4x8xf32>
    %138 = vector.shape_cast %137 : vector<4x8xf32> to vector<4x8x1xf32>
    %139 = vector.broadcast %138 : vector<4x8x1xf32> to vector<4x8x16xf32>
    %140 = arith.divf %136, %139 : vector<4x8x16xf32>
    "tpu.trace_start"() <{level = 10 : i32, message = "hts,shd->thd"}> : () -> ()
    %cst_40 = arith.constant dense<0.000000e+00> : vector<4x8x8xf32>
    %141 = tpu.matmul %130, %140, %cst_40 {dimension_numbers = #tpu.dot_dimension_numbers<[0], [2], [2], [1], [0, 1, 0, 2, 1, 1], [1], [0]>} : vector<16x4x8xf32>, vector<4x8x16xf32>, vector<4x8x8xf32> -> vector<4x8x8xf32>
    %142 = tpu.transpose %141, [2, 0, 1] : vector<4x8x8xf32> -> vector<8x4x8xf32>
    "tpu.trace_stop"() : () -> ()
    %143 = vector.shape_cast %142 : vector<8x4x8xf32> to vector<8x32xf32>
    %144 = vector.extract_strided_slice %112 {offsets = [8, 0], sizes = [8, 32], strides = [1, 1]} : vector<16x32xf32> to vector<8x32xf32>
    %cst_41 = arith.constant 0.353553385 : f32
    %145 = vector.broadcast %cst_41 : f32 to vector<8x32xf32>
    %146 = arith.mulf %144, %145 : vector<8x32xf32>
    %147 = vector.shape_cast %146 : vector<8x32xf32> to vector<8x4x8xf32>
    %148 = vector.extract_strided_slice %117 {offsets = [16, 0], sizes = [16, 32], strides = [1, 1]} : vector<32x32xf32> to vector<16x32xf32>
    %149 = vector.shape_cast %148 : vector<16x32xf32> to vector<16x4x8xf32>
    %150 = vector.extract_strided_slice %122 {offsets = [16, 0], sizes = [16, 32], strides = [1, 1]} : vector<32x32xf32> to vector<16x32xf32>
    %151 = vector.shape_cast %150 : vector<16x32xf32> to vector<16x4x8xf32>
    "tpu.trace_start"() <{level = 10 : i32, message = "thd,shd->hts"}> : () -> ()
    %cst_42 = arith.constant dense<0.000000e+00> : vector<4x8x16xf32>
    %152 = tpu.matmul %147, %149, %cst_42 {dimension_numbers = #tpu.dot_dimension_numbers<[2], [2], [0], [0], [0, 1, 0, 0, 1, 0], [1], [1]>} : vector<8x4x8xf32>, vector<16x4x8xf32>, vector<4x8x16xf32> -> vector<4x8x16xf32>
    "tpu.trace_stop"() : () -> ()
    %cst_43 = arith.constant dense<0xFF800000> : vector<4x8xf32>
    %153 = vector.multi_reduction <maximumf>, %152, %cst_43 [2] : vector<4x8x16xf32> to vector<4x8xf32>
    %154 = vector.shape_cast %153 : vector<4x8xf32> to vector<4x8x1xf32>
    %155 = vector.broadcast %154 : vector<4x8x1xf32> to vector<4x8x16xf32>
    %156 = arith.subf %152, %155 : vector<4x8x16xf32>
    %157 = math.exp %156 : vector<4x8x16xf32>
    %cst_44 = arith.constant dense<0.000000e+00> : vector<4x8xf32>
    %158 = vector.multi_reduction <add>, %157, %cst_44 [2] : vector<4x8x16xf32> to vector<4x8xf32>
    %159 = vector.shape_cast %158 : vector<4x8xf32> to vector<4x8x1xf32>
    %160 = vector.broadcast %159 : vector<4x8x1xf32> to vector<4x8x16xf32>
    %161 = arith.divf %157, %160 : vector<4x8x16xf32>
    "tpu.trace_start"() <{level = 10 : i32, message = "hts,shd->thd"}> : () -> ()
    %cst_45 = arith.constant dense<0.000000e+00> : vector<4x8x8xf32>
    %162 = tpu.matmul %151, %161, %cst_45 {dimension_numbers = #tpu.dot_dimension_numbers<[0], [2], [2], [1], [0, 1, 0, 2, 1, 1], [1], [0]>} : vector<16x4x8xf32>, vector<4x8x16xf32>, vector<4x8x8xf32> -> vector<4x8x8xf32>
    %163 = tpu.transpose %162, [2, 0, 1] : vector<4x8x8xf32> -> vector<8x4x8xf32>
    "tpu.trace_stop"() : () -> ()
    %164 = vector.shape_cast %163 : vector<8x4x8xf32> to vector<8x32xf32>
    %165 = tpu.concatenate %143, %164 in 0 : vector<8x32xf32>, vector<8x32xf32> -> vector<16x32xf32>
    %166 = arith.truncf %165 : vector<16x32xf32> to vector<16x32xbf16>
    %167 = vector.extract_strided_slice %11 {offsets = [0, 224], sizes = [32, 32], strides = [1, 1]} : vector<32x256xbf16> to vector<32x32xbf16>
    %cst_46 = arith.constant dense<0.000000e+00> : vector<16x32xf32>
    %168 = tpu.matmul %166, %167, %cst_46 {dimension_numbers = #tpu.dot_dimension_numbers<[1], [0], [0], [1], [0, 0, 1, 1], [], []>} : vector<16x32xbf16>, vector<32x32xbf16>, vector<16x32xf32> -> vector<16x32xf32>
    %169 = vector.extract_strided_slice %13 {offsets = [7, 0], sizes = [1, 32], strides = [1, 1]} : vector<16x32xf32> to vector<1x32xf32>
    %170 = vector.broadcast %169 : vector<1x32xf32> to vector<16x32xf32>
    %171 = arith.addf %168, %170 : vector<16x32xf32>
    %172 = arith.addf %105, %171 : vector<16x32xf32>
    %173 = vector.extract_strided_slice %13 {offsets = [11, 0], sizes = [1, 32], strides = [1, 1]} : vector<16x32xf32> to vector<1x32xf32>
    %174 = vector.extract_strided_slice %13 {offsets = [12, 0], sizes = [1, 32], strides = [1, 1]} : vector<16x32xf32> to vector<1x32xf32>
    %cst_47 = arith.constant dense<0.000000e+00> : vector<16xf32>
    %175 = vector.multi_reduction <add>, %172, %cst_47 [1] : vector<16x32xf32> to vector<16xf32>
    %176 = vector.shape_cast %175 : vector<16xf32> to vector<16x1xf32>
    %cst_48 = arith.constant 3.200000e+01 : f32
    %177 = vector.broadcast %cst_48 : f32 to vector<16x1xf32>
    %178 = arith.divf %176, %177 : vector<16x1xf32>
    %179 = vector.broadcast %178 : vector<16x1xf32> to vector<16x32xf32>
    %180 = arith.subf %172, %179 : vector<16x32xf32>
    %181 = arith.mulf %180, %180 : vector<16x32xf32>
    %cst_49 = arith.constant dense<0.000000e+00> : vector<16xf32>
    %182 = vector.multi_reduction <add>, %181, %cst_49 [1] : vector<16x32xf32> to vector<16xf32>
    %183 = vector.shape_cast %182 : vector<16xf32> to vector<16x1xf32>
    %cst_50 = arith.constant 3.200000e+01 : f32
    %184 = vector.broadcast %cst_50 : f32 to vector<16x1xf32>
    %185 = arith.divf %183, %184 : vector<16x1xf32>
    %186 = vector.broadcast %178 : vector<16x1xf32> to vector<16x32xf32>
    %187 = arith.subf %172, %186 : vector<16x32xf32>
    %cst_51 = arith.constant 9.99999974E-6 : f32
    %188 = vector.broadcast %cst_51 : f32 to vector<16x1xf32>
    %189 = arith.addf %185, %188 : vector<16x1xf32>
    %190 = math.rsqrt %189 : vector<16x1xf32>
    %191 = vector.broadcast %190 : vector<16x1xf32> to vector<16x32xf32>
    %192 = arith.mulf %187, %191 : vector<16x32xf32>
    %193 = vector.broadcast %173 : vector<1x32xf32> to vector<16x32xf32>
    %194 = arith.mulf %192, %193 : vector<16x32xf32>
    %195 = vector.broadcast %174 : vector<1x32xf32> to vector<16x32xf32>
    %196 = arith.addf %194, %195 : vector<16x32xf32>
    %197 = arith.truncf %196 : vector<16x32xf32> to vector<16x32xbf16>
    %c0_52 = arith.constant 0 : index
    %c0_53 = arith.constant 0 : index
    %c0_54 = arith.constant 0 : index
    %198 = vector.load %arg4[%c0_52, %c0_53, %c0_54] : memref<2x32x64xbf16, #tpu.memory_space<vmem>>, vector<1x32x64xbf16>
    %199 = vector.shape_cast %198 : vector<1x32x64xbf16> to vector<32x64xbf16>
    %cst_55 = arith.constant dense<0.000000e+00> : vector<16x64xf32>
    %200 = tpu.matmul %197, %199, %cst_55 {dimension_numbers = #tpu.dot_dimension_numbers<[1], [0], [0], [1], [0, 0, 1, 1], [], []>} : vector<16x32xbf16>, vector<32x64xbf16>, vector<16x64xf32> -> vector<16x64xf32>
    %c0_56 = arith.constant 0 : index
    %c0_57 = arith.constant 0 : index
    %c0_58 = arith.constant 0 : index
    %201 = vector.load %arg7[%c0_56, %c0_57, %c0_58] : memref<2x1x64xf32, #tpu.memory_space<vmem>>, vector<1x1x64xf32>
    %202 = vector.shape_cast %201 : vector<1x1x64xf32> to vector<1x64xf32>
    %203 = vector.broadcast %202 : vector<1x64xf32> to vector<16x64xf32>
    %204 = arith.addf %200, %203 : vector<16x64xf32>
    %cst_59 = arith.constant 0.000000e+00 : f32
    %205 = vector.broadcast %cst_59 : f32 to vector<16x64xf32>
    %206 = arith.maximumf %204, %205 : vector<16x64xf32>
    %207 = arith.truncf %206 : vector<16x64xf32> to vector<16x64xbf16>
    %c0_60 = arith.constant 0 : index
    %c0_61 = arith.constant 0 : index
    %c0_62 = arith.constant 0 : index
    %208 = vector.load %arg5[%c0_60, %c0_61, %c0_62] : memref<2x64x32xbf16, #tpu.memory_space<vmem>>, vector<1x64x32xbf16>
    %209 = vector.shape_cast %208 : vector<1x64x32xbf16> to vector<64x32xbf16>
    %cst_63 = arith.constant dense<0.000000e+00> : vector<16x32xf32>
    %210 = tpu.matmul %207, %209, %cst_63 {dimension_numbers = #tpu.dot_dimension_numbers<[1], [0], [0], [1], [0, 0, 1, 1], [], []>} : vector<16x64xbf16>, vector<64x32xbf16>, vector<16x32xf32> -> vector<16x32xf32>
    %211 = vector.extract_strided_slice %13 {offsets = [8, 0], sizes = [1, 32], strides = [1, 1]} : vector<16x32xf32> to vector<1x32xf32>
    %212 = vector.broadcast %211 : vector<1x32xf32> to vector<16x32xf32>
    %213 = arith.addf %210, %212 : vector<16x32xf32>
    %214 = arith.addf %196, %213 : vector<16x32xf32>
    %215 = vector.extract_strided_slice %13 {offsets = [13, 0], sizes = [1, 32], strides = [1, 1]} : vector<16x32xf32> to vector<1x32xf32>
    %216 = vector.extract_strided_slice %13 {offsets = [14, 0], sizes = [1, 32], strides = [1, 1]} : vector<16x32xf32> to vector<1x32xf32>
    %cst_64 = arith.constant dense<0.000000e+00> : vector<16xf32>
    %217 = vector.multi_reduction <add>, %214, %cst_64 [1] : vector<16x32xf32> to vector<16xf32>
    %218 = vector.shape_cast %217 : vector<16xf32> to vector<16x1xf32>
    %cst_65 = arith.constant 3.200000e+01 : f32
    %219 = vector.broadcast %cst_65 : f32 to vector<16x1xf32>
    %220 = arith.divf %218, %219 : vector<16x1xf32>
    %221 = vector.broadcast %220 : vector<16x1xf32> to vector<16x32xf32>
    %222 = arith.subf %214, %221 : vector<16x32xf32>
    %223 = arith.mulf %222, %222 : vector<16x32xf32>
    %cst_66 = arith.constant dense<0.000000e+00> : vector<16xf32>
    %224 = vector.multi_reduction <add>, %223, %cst_66 [1] : vector<16x32xf32> to vector<16xf32>
    %225 = vector.shape_cast %224 : vector<16xf32> to vector<16x1xf32>
    %cst_67 = arith.constant 3.200000e+01 : f32
    %226 = vector.broadcast %cst_67 : f32 to vector<16x1xf32>
    %227 = arith.divf %225, %226 : vector<16x1xf32>
    %228 = vector.broadcast %220 : vector<16x1xf32> to vector<16x32xf32>
    %229 = arith.subf %214, %228 : vector<16x32xf32>
    %cst_68 = arith.constant 9.99999974E-6 : f32
    %230 = vector.broadcast %cst_68 : f32 to vector<16x1xf32>
    %231 = arith.addf %227, %230 : vector<16x1xf32>
    %232 = math.rsqrt %231 : vector<16x1xf32>
    %233 = vector.broadcast %232 : vector<16x1xf32> to vector<16x32xf32>
    %234 = arith.mulf %229, %233 : vector<16x32xf32>
    %235 = vector.broadcast %215 : vector<1x32xf32> to vector<16x32xf32>
    %236 = arith.mulf %234, %235 : vector<16x32xf32>
    %237 = vector.broadcast %216 : vector<1x32xf32> to vector<16x32xf32>
    %238 = arith.addf %236, %237 : vector<16x32xf32>
    %c1_69 = arith.constant 1 : index
    %c0_70 = arith.constant 0 : index
    %c0_71 = arith.constant 0 : index
    %239 = vector.load %arg3[%c1_69, %c0_70, %c0_71] : memref<2x32x256xbf16, #tpu.memory_space<vmem>>, vector<1x32x256xbf16>
    %240 = vector.shape_cast %239 : vector<1x32x256xbf16> to vector<32x256xbf16>
    %c1_72 = arith.constant 1 : index
    %c0_73 = arith.constant 0 : index
    %c0_74 = arith.constant 0 : index
    %241 = vector.load %arg6[%c1_72, %c0_73, %c0_74] : memref<2x16x32xf32, #tpu.memory_space<vmem>>, vector<1x16x32xf32>
    %242 = vector.shape_cast %241 : vector<1x16x32xf32> to vector<16x32xf32>
    %243 = arith.addf %238, %3 : vector<16x32xf32>
    %244 = arith.truncf %243 : vector<16x32xf32> to vector<16x32xbf16>
    %245 = vector.extract_strided_slice %240 {offsets = [0, 0], sizes = [32, 64], strides = [1, 1]} : vector<32x256xbf16> to vector<32x64xbf16>
    %cst_75 = arith.constant dense<0.000000e+00> : vector<16x64xf32>
    %246 = tpu.matmul %244, %245, %cst_75 {dimension_numbers = #tpu.dot_dimension_numbers<[1], [0], [0], [1], [0, 0, 1, 1], [], []>} : vector<16x32xbf16>, vector<32x64xbf16>, vector<16x64xf32> -> vector<16x64xf32>
    %247 = vector.extract_strided_slice %246 {offsets = [0, 0], sizes = [16, 32], strides = [1, 1]} : vector<16x64xf32> to vector<16x32xf32>
    %248 = vector.extract_strided_slice %242 {offsets = [0, 0], sizes = [1, 32], strides = [1, 1]} : vector<16x32xf32> to vector<1x32xf32>
    %249 = vector.broadcast %248 : vector<1x32xf32> to vector<16x32xf32>
    %250 = arith.addf %247, %249 : vector<16x32xf32>
    %251 = vector.extract_strided_slice %246 {offsets = [0, 32], sizes = [16, 32], strides = [1, 1]} : vector<16x64xf32> to vector<16x32xf32>
    %252 = vector.extract_strided_slice %242 {offsets = [1, 0], sizes = [1, 32], strides = [1, 1]} : vector<16x32xf32> to vector<1x32xf32>
    %253 = vector.broadcast %252 : vector<1x32xf32> to vector<16x32xf32>
    %254 = arith.addf %251, %253 : vector<16x32xf32>
    %255 = arith.truncf %238 : vector<16x32xf32> to vector<16x32xbf16>
    %256 = vector.extract_strided_slice %240 {offsets = [0, 64], sizes = [32, 32], strides = [1, 1]} : vector<32x256xbf16> to vector<32x32xbf16>
    %cst_76 = arith.constant dense<0.000000e+00> : vector<16x32xf32>
    %257 = tpu.matmul %255, %256, %cst_76 {dimension_numbers = #tpu.dot_dimension_numbers<[1], [0], [0], [1], [0, 0, 1, 1], [], []>} : vector<16x32xbf16>, vector<32x32xbf16>, vector<16x32xf32> -> vector<16x32xf32>
    %258 = vector.extract_strided_slice %242 {offsets = [2, 0], sizes = [1, 32], strides = [1, 1]} : vector<16x32xf32> to vector<1x32xf32>
    %259 = vector.broadcast %258 : vector<1x32xf32> to vector<16x32xf32>
    %260 = arith.addf %257, %259 : vector<16x32xf32>
    %261 = vector.extract_strided_slice %250 {offsets = [0, 0], sizes = [8, 32], strides = [1, 1]} : vector<16x32xf32> to vector<8x32xf32>
    %cst_77 = arith.constant 0.353553385 : f32
    %262 = vector.broadcast %cst_77 : f32 to vector<8x32xf32>
    %263 = arith.mulf %261, %262 : vector<8x32xf32>
    %264 = vector.shape_cast %263 : vector<8x32xf32> to vector<8x4x8xf32>
    %265 = vector.extract_strided_slice %254 {offsets = [0, 0], sizes = [8, 32], strides = [1, 1]} : vector<16x32xf32> to vector<8x32xf32>
    %266 = vector.shape_cast %265 : vector<8x32xf32> to vector<8x4x8xf32>
    %267 = vector.extract_strided_slice %260 {offsets = [0, 0], sizes = [8, 32], strides = [1, 1]} : vector<16x32xf32> to vector<8x32xf32>
    %268 = vector.shape_cast %267 : vector<8x32xf32> to vector<8x4x8xf32>
    "tpu.trace_start"() <{level = 10 : i32, message = "thd,shd->hts"}> : () -> ()
    %cst_78 = arith.constant dense<0.000000e+00> : vector<4x8x8xf32>
    %269 = tpu.matmul %264, %266, %cst_78 {dimension_numbers = #tpu.dot_dimension_numbers<[2], [2], [0], [0], [0, 1, 0, 0, 1, 0], [1], [1]>} : vector<8x4x8xf32>, vector<8x4x8xf32>, vector<4x8x8xf32> -> vector<4x8x8xf32>
    "tpu.trace_stop"() : () -> ()
    %cst_79 = arith.constant dense<0xFF800000> : vector<4x8xf32>
    %270 = vector.multi_reduction <maximumf>, %269, %cst_79 [2] : vector<4x8x8xf32> to vector<4x8xf32>
    %271 = vector.shape_cast %270 : vector<4x8xf32> to vector<4x8x1xf32>
    %272 = vector.broadcast %271 : vector<4x8x1xf32> to vector<4x8x8xf32>
    %273 = arith.subf %269, %272 : vector<4x8x8xf32>
    %274 = math.exp %273 : vector<4x8x8xf32>
    %cst_80 = arith.constant dense<0.000000e+00> : vector<4x8xf32>
    %275 = vector.multi_reduction <add>, %274, %cst_80 [2] : vector<4x8x8xf32> to vector<4x8xf32>
    %276 = vector.shape_cast %275 : vector<4x8xf32> to vector<4x8x1xf32>
    %277 = vector.broadcast %276 : vector<4x8x1xf32> to vector<4x8x8xf32>
    %278 = arith.divf %274, %277 : vector<4x8x8xf32>
    "tpu.trace_start"() <{level = 10 : i32, message = "hts,shd->thd"}> : () -> ()
    %cst_81 = arith.constant dense<0.000000e+00> : vector<4x8x8xf32>
    %279 = tpu.matmul %268, %278, %cst_81 {dimension_numbers = #tpu.dot_dimension_numbers<[0], [2], [2], [1], [0, 1, 0, 2, 1, 1], [1], [0]>} : vector<8x4x8xf32>, vector<4x8x8xf32>, vector<4x8x8xf32> -> vector<4x8x8xf32>
    %280 = tpu.transpose %279, [2, 0, 1] : vector<4x8x8xf32> -> vector<8x4x8xf32>
    "tpu.trace_stop"() : () -> ()
    %281 = vector.shape_cast %280 : vector<8x4x8xf32> to vector<8x32xf32>
    %282 = vector.extract_strided_slice %250 {offsets = [8, 0], sizes = [8, 32], strides = [1, 1]} : vector<16x32xf32> to vector<8x32xf32>
    %cst_82 = arith.constant 0.353553385 : f32
    %283 = vector.broadcast %cst_82 : f32 to vector<8x32xf32>
    %284 = arith.mulf %282, %283 : vector<8x32xf32>
    %285 = vector.shape_cast %284 : vector<8x32xf32> to vector<8x4x8xf32>
    %286 = vector.extract_strided_slice %254 {offsets = [8, 0], sizes = [8, 32], strides = [1, 1]} : vector<16x32xf32> to vector<8x32xf32>
    %287 = vector.shape_cast %286 : vector<8x32xf32> to vector<8x4x8xf32>
    %288 = vector.extract_strided_slice %260 {offsets = [8, 0], sizes = [8, 32], strides = [1, 1]} : vector<16x32xf32> to vector<8x32xf32>
    %289 = vector.shape_cast %288 : vector<8x32xf32> to vector<8x4x8xf32>
    "tpu.trace_start"() <{level = 10 : i32, message = "thd,shd->hts"}> : () -> ()
    %cst_83 = arith.constant dense<0.000000e+00> : vector<4x8x8xf32>
    %290 = tpu.matmul %285, %287, %cst_83 {dimension_numbers = #tpu.dot_dimension_numbers<[2], [2], [0], [0], [0, 1, 0, 0, 1, 0], [1], [1]>} : vector<8x4x8xf32>, vector<8x4x8xf32>, vector<4x8x8xf32> -> vector<4x8x8xf32>
    "tpu.trace_stop"() : () -> ()
    %cst_84 = arith.constant dense<0xFF800000> : vector<4x8xf32>
    %291 = vector.multi_reduction <maximumf>, %290, %cst_84 [2] : vector<4x8x8xf32> to vector<4x8xf32>
    %292 = vector.shape_cast %291 : vector<4x8xf32> to vector<4x8x1xf32>
    %293 = vector.broadcast %292 : vector<4x8x1xf32> to vector<4x8x8xf32>
    %294 = arith.subf %290, %293 : vector<4x8x8xf32>
    %295 = math.exp %294 : vector<4x8x8xf32>
    %cst_85 = arith.constant dense<0.000000e+00> : vector<4x8xf32>
    %296 = vector.multi_reduction <add>, %295, %cst_85 [2] : vector<4x8x8xf32> to vector<4x8xf32>
    %297 = vector.shape_cast %296 : vector<4x8xf32> to vector<4x8x1xf32>
    %298 = vector.broadcast %297 : vector<4x8x1xf32> to vector<4x8x8xf32>
    %299 = arith.divf %295, %298 : vector<4x8x8xf32>
    "tpu.trace_start"() <{level = 10 : i32, message = "hts,shd->thd"}> : () -> ()
    %cst_86 = arith.constant dense<0.000000e+00> : vector<4x8x8xf32>
    %300 = tpu.matmul %289, %299, %cst_86 {dimension_numbers = #tpu.dot_dimension_numbers<[0], [2], [2], [1], [0, 1, 0, 2, 1, 1], [1], [0]>} : vector<8x4x8xf32>, vector<4x8x8xf32>, vector<4x8x8xf32> -> vector<4x8x8xf32>
    %301 = tpu.transpose %300, [2, 0, 1] : vector<4x8x8xf32> -> vector<8x4x8xf32>
    "tpu.trace_stop"() : () -> ()
    %302 = vector.shape_cast %301 : vector<8x4x8xf32> to vector<8x32xf32>
    %303 = tpu.concatenate %281, %302 in 0 : vector<8x32xf32>, vector<8x32xf32> -> vector<16x32xf32>
    %304 = arith.truncf %303 : vector<16x32xf32> to vector<16x32xbf16>
    %305 = vector.extract_strided_slice %240 {offsets = [0, 96], sizes = [32, 32], strides = [1, 1]} : vector<32x256xbf16> to vector<32x32xbf16>
    %cst_87 = arith.constant dense<0.000000e+00> : vector<16x32xf32>
    %306 = tpu.matmul %304, %305, %cst_87 {dimension_numbers = #tpu.dot_dimension_numbers<[1], [0], [0], [1], [0, 0, 1, 1], [], []>} : vector<16x32xbf16>, vector<32x32xbf16>, vector<16x32xf32> -> vector<16x32xf32>
    %307 = vector.extract_strided_slice %242 {offsets = [3, 0], sizes = [1, 32], strides = [1, 1]} : vector<16x32xf32> to vector<1x32xf32>
    %308 = vector.broadcast %307 : vector<1x32xf32> to vector<16x32xf32>
    %309 = arith.addf %306, %308 : vector<16x32xf32>
    %310 = arith.addf %238, %309 : vector<16x32xf32>
    %311 = vector.extract_strided_slice %242 {offsets = [9, 0], sizes = [1, 32], strides = [1, 1]} : vector<16x32xf32> to vector<1x32xf32>
    %312 = vector.extract_strided_slice %242 {offsets = [10, 0], sizes = [1, 32], strides = [1, 1]} : vector<16x32xf32> to vector<1x32xf32>
    %cst_88 = arith.constant dense<0.000000e+00> : vector<16xf32>
    %313 = vector.multi_reduction <add>, %310, %cst_88 [1] : vector<16x32xf32> to vector<16xf32>
    %314 = vector.shape_cast %313 : vector<16xf32> to vector<16x1xf32>
    %cst_89 = arith.constant 3.200000e+01 : f32
    %315 = vector.broadcast %cst_89 : f32 to vector<16x1xf32>
    %316 = arith.divf %314, %315 : vector<16x1xf32>
    %317 = vector.broadcast %316 : vector<16x1xf32> to vector<16x32xf32>
    %318 = arith.subf %310, %317 : vector<16x32xf32>
    %319 = arith.mulf %318, %318 : vector<16x32xf32>
    %cst_90 = arith.constant dense<0.000000e+00> : vector<16xf32>
    %320 = vector.multi_reduction <add>, %319, %cst_90 [1] : vector<16x32xf32> to vector<16xf32>
    %321 = vector.shape_cast %320 : vector<16xf32> to vector<16x1xf32>
    %cst_91 = arith.constant 3.200000e+01 : f32
    %322 = vector.broadcast %cst_91 : f32 to vector<16x1xf32>
    %323 = arith.divf %321, %322 : vector<16x1xf32>
    %324 = vector.broadcast %316 : vector<16x1xf32> to vector<16x32xf32>
    %325 = arith.subf %310, %324 : vector<16x32xf32>
    %cst_92 = arith.constant 9.99999974E-6 : f32
    %326 = vector.broadcast %cst_92 : f32 to vector<16x1xf32>
    %327 = arith.addf %323, %326 : vector<16x1xf32>
    %328 = math.rsqrt %327 : vector<16x1xf32>
    %329 = vector.broadcast %328 : vector<16x1xf32> to vector<16x32xf32>
    %330 = arith.mulf %325, %329 : vector<16x32xf32>
    %331 = vector.broadcast %311 : vector<1x32xf32> to vector<16x32xf32>
    %332 = arith.mulf %330, %331 : vector<16x32xf32>
    %333 = vector.broadcast %312 : vector<1x32xf32> to vector<16x32xf32>
    %334 = arith.addf %332, %333 : vector<16x32xf32>
    %335 = arith.addf %334, %3 : vector<16x32xf32>
    %336 = arith.truncf %335 : vector<16x32xf32> to vector<16x32xbf16>
    %337 = vector.extract_strided_slice %240 {offsets = [0, 128], sizes = [32, 32], strides = [1, 1]} : vector<32x256xbf16> to vector<32x32xbf16>
    %cst_93 = arith.constant dense<0.000000e+00> : vector<16x32xf32>
    %338 = tpu.matmul %336, %337, %cst_93 {dimension_numbers = #tpu.dot_dimension_numbers<[1], [0], [0], [1], [0, 0, 1, 1], [], []>} : vector<16x32xbf16>, vector<32x32xbf16>, vector<16x32xf32> -> vector<16x32xf32>
    %339 = vector.extract_strided_slice %242 {offsets = [4, 0], sizes = [1, 32], strides = [1, 1]} : vector<16x32xf32> to vector<1x32xf32>
    %340 = vector.broadcast %339 : vector<1x32xf32> to vector<16x32xf32>
    %341 = arith.addf %338, %340 : vector<16x32xf32>
    %342 = vector.extract_strided_slice %240 {offsets = [0, 160], sizes = [32, 32], strides = [1, 1]} : vector<32x256xbf16> to vector<32x32xbf16>
    %cst_94 = arith.constant dense<0.000000e+00> : vector<32x32xf32>
    %343 = tpu.matmul %9, %342, %cst_94 {dimension_numbers = #tpu.dot_dimension_numbers<[1], [0], [0], [1], [0, 0, 1, 1], [], []>} : vector<32x32xbf16>, vector<32x32xbf16>, vector<32x32xf32> -> vector<32x32xf32>
    %344 = vector.extract_strided_slice %242 {offsets = [5, 0], sizes = [1, 32], strides = [1, 1]} : vector<16x32xf32> to vector<1x32xf32>
    %345 = vector.broadcast %344 : vector<1x32xf32> to vector<32x32xf32>
    %346 = arith.addf %343, %345 : vector<32x32xf32>
    %347 = vector.extract_strided_slice %240 {offsets = [0, 192], sizes = [32, 32], strides = [1, 1]} : vector<32x256xbf16> to vector<32x32xbf16>
    %cst_95 = arith.constant dense<0.000000e+00> : vector<32x32xf32>
    %348 = tpu.matmul %6, %347, %cst_95 {dimension_numbers = #tpu.dot_dimension_numbers<[1], [0], [0], [1], [0, 0, 1, 1], [], []>} : vector<32x32xbf16>, vector<32x32xbf16>, vector<32x32xf32> -> vector<32x32xf32>
    %349 = vector.extract_strided_slice %242 {offsets = [6, 0], sizes = [1, 32], strides = [1, 1]} : vector<16x32xf32> to vector<1x32xf32>
    %350 = vector.broadcast %349 : vector<1x32xf32> to vector<32x32xf32>
    %351 = arith.addf %348, %350 : vector<32x32xf32>
    %352 = vector.extract_strided_slice %341 {offsets = [0, 0], sizes = [8, 32], strides = [1, 1]} : vector<16x32xf32> to vector<8x32xf32>
    %cst_96 = arith.constant 0.353553385 : f32
    %353 = vector.broadcast %cst_96 : f32 to vector<8x32xf32>
    %354 = arith.mulf %352, %353 : vector<8x32xf32>
    %355 = vector.shape_cast %354 : vector<8x32xf32> to vector<8x4x8xf32>
    %356 = vector.extract_strided_slice %346 {offsets = [0, 0], sizes = [16, 32], strides = [1, 1]} : vector<32x32xf32> to vector<16x32xf32>
    %357 = vector.shape_cast %356 : vector<16x32xf32> to vector<16x4x8xf32>
    %358 = vector.extract_strided_slice %351 {offsets = [0, 0], sizes = [16, 32], strides = [1, 1]} : vector<32x32xf32> to vector<16x32xf32>
    %359 = vector.shape_cast %358 : vector<16x32xf32> to vector<16x4x8xf32>
    "tpu.trace_start"() <{level = 10 : i32, message = "thd,shd->hts"}> : () -> ()
    %cst_97 = arith.constant dense<0.000000e+00> : vector<4x8x16xf32>
    %360 = tpu.matmul %355, %357, %cst_97 {dimension_numbers = #tpu.dot_dimension_numbers<[2], [2], [0], [0], [0, 1, 0, 0, 1, 0], [1], [1]>} : vector<8x4x8xf32>, vector<16x4x8xf32>, vector<4x8x16xf32> -> vector<4x8x16xf32>
    "tpu.trace_stop"() : () -> ()
    %cst_98 = arith.constant dense<0xFF800000> : vector<4x8xf32>
    %361 = vector.multi_reduction <maximumf>, %360, %cst_98 [2] : vector<4x8x16xf32> to vector<4x8xf32>
    %362 = vector.shape_cast %361 : vector<4x8xf32> to vector<4x8x1xf32>
    %363 = vector.broadcast %362 : vector<4x8x1xf32> to vector<4x8x16xf32>
    %364 = arith.subf %360, %363 : vector<4x8x16xf32>
    %365 = math.exp %364 : vector<4x8x16xf32>
    %cst_99 = arith.constant dense<0.000000e+00> : vector<4x8xf32>
    %366 = vector.multi_reduction <add>, %365, %cst_99 [2] : vector<4x8x16xf32> to vector<4x8xf32>
    %367 = vector.shape_cast %366 : vector<4x8xf32> to vector<4x8x1xf32>
    %368 = vector.broadcast %367 : vector<4x8x1xf32> to vector<4x8x16xf32>
    %369 = arith.divf %365, %368 : vector<4x8x16xf32>
    "tpu.trace_start"() <{level = 10 : i32, message = "hts,shd->thd"}> : () -> ()
    %cst_100 = arith.constant dense<0.000000e+00> : vector<4x8x8xf32>
    %370 = tpu.matmul %359, %369, %cst_100 {dimension_numbers = #tpu.dot_dimension_numbers<[0], [2], [2], [1], [0, 1, 0, 2, 1, 1], [1], [0]>} : vector<16x4x8xf32>, vector<4x8x16xf32>, vector<4x8x8xf32> -> vector<4x8x8xf32>
    %371 = tpu.transpose %370, [2, 0, 1] : vector<4x8x8xf32> -> vector<8x4x8xf32>
    "tpu.trace_stop"() : () -> ()
    %372 = vector.shape_cast %371 : vector<8x4x8xf32> to vector<8x32xf32>
    %373 = vector.extract_strided_slice %341 {offsets = [8, 0], sizes = [8, 32], strides = [1, 1]} : vector<16x32xf32> to vector<8x32xf32>
    %cst_101 = arith.constant 0.353553385 : f32
    %374 = vector.broadcast %cst_101 : f32 to vector<8x32xf32>
    %375 = arith.mulf %373, %374 : vector<8x32xf32>
    %376 = vector.shape_cast %375 : vector<8x32xf32> to vector<8x4x8xf32>
    %377 = vector.extract_strided_slice %346 {offsets = [16, 0], sizes = [16, 32], strides = [1, 1]} : vector<32x32xf32> to vector<16x32xf32>
    %378 = vector.shape_cast %377 : vector<16x32xf32> to vector<16x4x8xf32>
    %379 = vector.extract_strided_slice %351 {offsets = [16, 0], sizes = [16, 32], strides = [1, 1]} : vector<32x32xf32> to vector<16x32xf32>
    %380 = vector.shape_cast %379 : vector<16x32xf32> to vector<16x4x8xf32>
    "tpu.trace_start"() <{level = 10 : i32, message = "thd,shd->hts"}> : () -> ()
    %cst_102 = arith.constant dense<0.000000e+00> : vector<4x8x16xf32>
    %381 = tpu.matmul %376, %378, %cst_102 {dimension_numbers = #tpu.dot_dimension_numbers<[2], [2], [0], [0], [0, 1, 0, 0, 1, 0], [1], [1]>} : vector<8x4x8xf32>, vector<16x4x8xf32>, vector<4x8x16xf32> -> vector<4x8x16xf32>
    "tpu.trace_stop"() : () -> ()
    %cst_103 = arith.constant dense<0xFF800000> : vector<4x8xf32>
    %382 = vector.multi_reduction <maximumf>, %381, %cst_103 [2] : vector<4x8x16xf32> to vector<4x8xf32>
    %383 = vector.shape_cast %382 : vector<4x8xf32> to vector<4x8x1xf32>
    %384 = vector.broadcast %383 : vector<4x8x1xf32> to vector<4x8x16xf32>
    %385 = arith.subf %381, %384 : vector<4x8x16xf32>
    %386 = math.exp %385 : vector<4x8x16xf32>
    %cst_104 = arith.constant dense<0.000000e+00> : vector<4x8xf32>
    %387 = vector.multi_reduction <add>, %386, %cst_104 [2] : vector<4x8x16xf32> to vector<4x8xf32>
    %388 = vector.shape_cast %387 : vector<4x8xf32> to vector<4x8x1xf32>
    %389 = vector.broadcast %388 : vector<4x8x1xf32> to vector<4x8x16xf32>
    %390 = arith.divf %386, %389 : vector<4x8x16xf32>
    "tpu.trace_start"() <{level = 10 : i32, message = "hts,shd->thd"}> : () -> ()
    %cst_105 = arith.constant dense<0.000000e+00> : vector<4x8x8xf32>
    %391 = tpu.matmul %380, %390, %cst_105 {dimension_numbers = #tpu.dot_dimension_numbers<[0], [2], [2], [1], [0, 1, 0, 2, 1, 1], [1], [0]>} : vector<16x4x8xf32>, vector<4x8x16xf32>, vector<4x8x8xf32> -> vector<4x8x8xf32>
    %392 = tpu.transpose %391, [2, 0, 1] : vector<4x8x8xf32> -> vector<8x4x8xf32>
    "tpu.trace_stop"() : () -> ()
    %393 = vector.shape_cast %392 : vector<8x4x8xf32> to vector<8x32xf32>
    %394 = tpu.concatenate %372, %393 in 0 : vector<8x32xf32>, vector<8x32xf32> -> vector<16x32xf32>
    %395 = arith.truncf %394 : vector<16x32xf32> to vector<16x32xbf16>
    %396 = vector.extract_strided_slice %240 {offsets = [0, 224], sizes = [32, 32], strides = [1, 1]} : vector<32x256xbf16> to vector<32x32xbf16>
    %cst_106 = arith.constant dense<0.000000e+00> : vector<16x32xf32>
    %397 = tpu.matmul %395, %396, %cst_106 {dimension_numbers = #tpu.dot_dimension_numbers<[1], [0], [0], [1], [0, 0, 1, 1], [], []>} : vector<16x32xbf16>, vector<32x32xbf16>, vector<16x32xf32> -> vector<16x32xf32>
    %398 = vector.extract_strided_slice %242 {offsets = [7, 0], sizes = [1, 32], strides = [1, 1]} : vector<16x32xf32> to vector<1x32xf32>
    %399 = vector.broadcast %398 : vector<1x32xf32> to vector<16x32xf32>
    %400 = arith.addf %397, %399 : vector<16x32xf32>
    %401 = arith.addf %334, %400 : vector<16x32xf32>
    %402 = vector.extract_strided_slice %242 {offsets = [11, 0], sizes = [1, 32], strides = [1, 1]} : vector<16x32xf32> to vector<1x32xf32>
    %403 = vector.extract_strided_slice %242 {offsets = [12, 0], sizes = [1, 32], strides = [1, 1]} : vector<16x32xf32> to vector<1x32xf32>
    %cst_107 = arith.constant dense<0.000000e+00> : vector<16xf32>
    %404 = vector.multi_reduction <add>, %401, %cst_107 [1] : vector<16x32xf32> to vector<16xf32>
    %405 = vector.shape_cast %404 : vector<16xf32> to vector<16x1xf32>
    %cst_108 = arith.constant 3.200000e+01 : f32
    %406 = vector.broadcast %cst_108 : f32 to vector<16x1xf32>
    %407 = arith.divf %405, %406 : vector<16x1xf32>
    %408 = vector.broadcast %407 : vector<16x1xf32> to vector<16x32xf32>
    %409 = arith.subf %401, %408 : vector<16x32xf32>
    %410 = arith.mulf %409, %409 : vector<16x32xf32>
    %cst_109 = arith.constant dense<0.000000e+00> : vector<16xf32>
    %411 = vector.multi_reduction <add>, %410, %cst_109 [1] : vector<16x32xf32> to vector<16xf32>
    %412 = vector.shape_cast %411 : vector<16xf32> to vector<16x1xf32>
    %cst_110 = arith.constant 3.200000e+01 : f32
    %413 = vector.broadcast %cst_110 : f32 to vector<16x1xf32>
    %414 = arith.divf %412, %413 : vector<16x1xf32>
    %415 = vector.broadcast %407 : vector<16x1xf32> to vector<16x32xf32>
    %416 = arith.subf %401, %415 : vector<16x32xf32>
    %cst_111 = arith.constant 9.99999974E-6 : f32
    %417 = vector.broadcast %cst_111 : f32 to vector<16x1xf32>
    %418 = arith.addf %414, %417 : vector<16x1xf32>
    %419 = math.rsqrt %418 : vector<16x1xf32>
    %420 = vector.broadcast %419 : vector<16x1xf32> to vector<16x32xf32>
    %421 = arith.mulf %416, %420 : vector<16x32xf32>
    %422 = vector.broadcast %402 : vector<1x32xf32> to vector<16x32xf32>
    %423 = arith.mulf %421, %422 : vector<16x32xf32>
    %424 = vector.broadcast %403 : vector<1x32xf32> to vector<16x32xf32>
    %425 = arith.addf %423, %424 : vector<16x32xf32>
    %426 = arith.truncf %425 : vector<16x32xf32> to vector<16x32xbf16>
    %c1_112 = arith.constant 1 : index
    %c0_113 = arith.constant 0 : index
    %c0_114 = arith.constant 0 : index
    %427 = vector.load %arg4[%c1_112, %c0_113, %c0_114] : memref<2x32x64xbf16, #tpu.memory_space<vmem>>, vector<1x32x64xbf16>
    %428 = vector.shape_cast %427 : vector<1x32x64xbf16> to vector<32x64xbf16>
    %cst_115 = arith.constant dense<0.000000e+00> : vector<16x64xf32>
    %429 = tpu.matmul %426, %428, %cst_115 {dimension_numbers = #tpu.dot_dimension_numbers<[1], [0], [0], [1], [0, 0, 1, 1], [], []>} : vector<16x32xbf16>, vector<32x64xbf16>, vector<16x64xf32> -> vector<16x64xf32>
    %c1_116 = arith.constant 1 : index
    %c0_117 = arith.constant 0 : index
    %c0_118 = arith.constant 0 : index
    %430 = vector.load %arg7[%c1_116, %c0_117, %c0_118] : memref<2x1x64xf32, #tpu.memory_space<vmem>>, vector<1x1x64xf32>
    %431 = vector.shape_cast %430 : vector<1x1x64xf32> to vector<1x64xf32>
    %432 = vector.broadcast %431 : vector<1x64xf32> to vector<16x64xf32>
    %433 = arith.addf %429, %432 : vector<16x64xf32>
    %cst_119 = arith.constant 0.000000e+00 : f32
    %434 = vector.broadcast %cst_119 : f32 to vector<16x64xf32>
    %435 = arith.maximumf %433, %434 : vector<16x64xf32>
    %436 = arith.truncf %435 : vector<16x64xf32> to vector<16x64xbf16>
    %c1_120 = arith.constant 1 : index
    %c0_121 = arith.constant 0 : index
    %c0_122 = arith.constant 0 : index
    %437 = vector.load %arg5[%c1_120, %c0_121, %c0_122] : memref<2x64x32xbf16, #tpu.memory_space<vmem>>, vector<1x64x32xbf16>
    %438 = vector.shape_cast %437 : vector<1x64x32xbf16> to vector<64x32xbf16>
    %cst_123 = arith.constant dense<0.000000e+00> : vector<16x32xf32>
    %439 = tpu.matmul %436, %438, %cst_123 {dimension_numbers = #tpu.dot_dimension_numbers<[1], [0], [0], [1], [0, 0, 1, 1], [], []>} : vector<16x64xbf16>, vector<64x32xbf16>, vector<16x32xf32> -> vector<16x32xf32>
    %440 = vector.extract_strided_slice %242 {offsets = [8, 0], sizes = [1, 32], strides = [1, 1]} : vector<16x32xf32> to vector<1x32xf32>
    %441 = vector.broadcast %440 : vector<1x32xf32> to vector<16x32xf32>
    %442 = arith.addf %439, %441 : vector<16x32xf32>
    %443 = arith.addf %425, %442 : vector<16x32xf32>
    %444 = vector.extract_strided_slice %242 {offsets = [13, 0], sizes = [1, 32], strides = [1, 1]} : vector<16x32xf32> to vector<1x32xf32>
    %445 = vector.extract_strided_slice %242 {offsets = [14, 0], sizes = [1, 32], strides = [1, 1]} : vector<16x32xf32> to vector<1x32xf32>
    %cst_124 = arith.constant dense<0.000000e+00> : vector<16xf32>
    %446 = vector.multi_reduction <add>, %443, %cst_124 [1] : vector<16x32xf32> to vector<16xf32>
    %447 = vector.shape_cast %446 : vector<16xf32> to vector<16x1xf32>
    %cst_125 = arith.constant 3.200000e+01 : f32
    %448 = vector.broadcast %cst_125 : f32 to vector<16x1xf32>
    %449 = arith.divf %447, %448 : vector<16x1xf32>
    %450 = vector.broadcast %449 : vector<16x1xf32> to vector<16x32xf32>
    %451 = arith.subf %443, %450 : vector<16x32xf32>
    %452 = arith.mulf %451, %451 : vector<16x32xf32>
    %cst_126 = arith.constant dense<0.000000e+00> : vector<16xf32>
    %453 = vector.multi_reduction <add>, %452, %cst_126 [1] : vector<16x32xf32> to vector<16xf32>
    %454 = vector.shape_cast %453 : vector<16xf32> to vector<16x1xf32>
    %cst_127 = arith.constant 3.200000e+01 : f32
    %455 = vector.broadcast %cst_127 : f32 to vector<16x1xf32>
    %456 = arith.divf %454, %455 : vector<16x1xf32>
    %457 = vector.broadcast %449 : vector<16x1xf32> to vector<16x32xf32>
    %458 = arith.subf %443, %457 : vector<16x32xf32>
    %cst_128 = arith.constant 9.99999974E-6 : f32
    %459 = vector.broadcast %cst_128 : f32 to vector<16x1xf32>
    %460 = arith.addf %456, %459 : vector<16x1xf32>
    %461 = math.rsqrt %460 : vector<16x1xf32>
    %462 = vector.broadcast %461 : vector<16x1xf32> to vector<16x32xf32>
    %463 = arith.mulf %458, %462 : vector<16x32xf32>
    %464 = vector.broadcast %444 : vector<1x32xf32> to vector<16x32xf32>
    %465 = arith.mulf %463, %464 : vector<16x32xf32>
    %466 = vector.broadcast %445 : vector<1x32xf32> to vector<16x32xf32>
    %467 = arith.addf %465, %466 : vector<16x32xf32>
    %c0_129 = arith.constant 0 : index
    %c0_130 = arith.constant 0 : index
    %468 = vector.load %arg8[%c0_129, %c0_130] : memref<16x32xf32, #tpu.memory_space<vmem>>, vector<16x32xf32>
    tpu.vector_store %arg8[%c0_129, %c0_130], %467 {strides = array<i32>} : memref<16x32xf32, #tpu.memory_space<vmem>>, vector<16x32xf32>,
    return
  }
  func.func @transform_0(%arg0: i32) -> (i32, i32, i32) {
    %c0_i32 = arith.constant 0 : i32
    %c0_i32_0 = arith.constant 0 : i32
    %c0_i32_1 = arith.constant 0 : i32
    %c0_i32_2 = arith.constant 0 : i32
    return %c0_i32, %c0_i32_0, %c0_i32_1 : i32, i32, i32
  }
  func.func @transform_1(%arg0: i32) -> (i32, i32, i32) {
    %c0_i32 = arith.constant 0 : i32
    %c0_i32_0 = arith.constant 0 : i32
    %c0_i32_1 = arith.constant 0 : i32
    %c0_i32_2 = arith.constant 0 : i32
    return %c0_i32, %c0_i32_0, %c0_i32_1 : i32, i32, i32
  }
  func.func @transform_2(%arg0: i32) -> (i32, i32, i32) {
    %c0_i32 = arith.constant 0 : i32
    %c0_i32_0 = arith.constant 0 : i32
    %c0_i32_1 = arith.constant 0 : i32
    %c0_i32_2 = arith.constant 0 : i32
    return %c0_i32, %c0_i32_0, %c0_i32_1 : i32, i32, i32
  }
  func.func @transform_3(%arg0: i32) -> (i32, i32, i32) {
    %c0_i32 = arith.constant 0 : i32
    %c0_i32_0 = arith.constant 0 : i32
    %c0_i32_1 = arith.constant 0 : i32
    %c0_i32_2 = arith.constant 0 : i32
    return %c0_i32, %c0_i32_0, %c0_i32_1 : i32, i32, i32
  }
  func.func @transform_4(%arg0: i32) -> (i32, i32, i32) {
    %c0_i32 = arith.constant 0 : i32
    %c0_i32_0 = arith.constant 0 : i32
    %c0_i32_1 = arith.constant 0 : i32
    %c0_i32_2 = arith.constant 0 : i32
    return %c0_i32, %c0_i32_0, %c0_i32_1 : i32, i32, i32
  }
  func.func @transform_5(%arg0: i32) -> (i32, i32, i32) {
    %c0_i32 = arith.constant 0 : i32
    %c0_i32_0 = arith.constant 0 : i32
    %c0_i32_1 = arith.constant 0 : i32
    %c0_i32_2 = arith.constant 0 : i32
    return %c0_i32, %c0_i32_0, %c0_i32_1 : i32, i32, i32
  }
  func.func @transform_6(%arg0: i32) -> (i32, i32, i32) {
    %c0_i32 = arith.constant 0 : i32
    %c0_i32_0 = arith.constant 0 : i32
    %c0_i32_1 = arith.constant 0 : i32
    %c0_i32_2 = arith.constant 0 : i32
    return %c0_i32, %c0_i32_0, %c0_i32_1 : i32, i32, i32
  }
  func.func @transform_7(%arg0: i32) -> (i32, i32) {
    %c0_i32 = arith.constant 0 : i32
    %c0_i32_0 = arith.constant 0 : i32
    %c0_i32_1 = arith.constant 0 : i32
    return %c0_i32, %c0_i32_0 : i32, i32
  }
}

</mosaic_0001>

<bundles_post_ra>
// kernel: tpu_custom_call.1
= control target key start
LH: loop header
LB: loop body
LE: loop exit
PB: predicated region body
PF: predicated region fallthrough
CT: control target
= control target key end

     0   :  { %12 = vsyncpa [#allocation3], 0  ;;  %s13761_s0 = inlined_call_operand.vmem [shape: f32[2,16,32], index: 0, kind: input, shape index: {}]   ;;  %s13762_s1 = inlined_call_operand.vmem [shape: f32[2,32,32], index: 1, kind: input, shape index: {}]   ;;  %s13763_s2 = inlined_call_operand.hbm [shape: bf16[2,32,256], index: 2, kind: input, shape index: {}]   ;;  %s13764_s3 = inlined_call_operand.hbm [shape: bf16[2,32,64], index: 3, kind: input, shape index: {}]   ;;  %s13765_s4 = inlined_call_operand.vmem [shape: bf16[2,64,32], index: 4, kind: input, shape index: {}]   ;;  %s13766_s5 = inlined_call_operand.hbm [shape: f32[2,16,32], index: 5, kind: input, shape index: {}]   ;;  %s13767_s6 = inlined_call_operand.vmem [shape: f32[2,1,64], index: 6, kind: input, shape index: {}]   ;;  %s13768_s7 = inlined_call_operand.hbm [shape: f32[16,32], index: 7, kind: output, shape index: {}]  }
   0x1   :  { %13 = vsyncpa [#allocation6], 0 }
   0x2   :  { %14 = vsyncpa [#allocation4], 0  ;;  %s12418_s24 = smov [#allocation5]   ;;  %s12324_s28 = scalar_lea.hbm %s13764_s3, 512 }
   0x3   :  { %s36_s25 = sshll.u32 %s12418_s24, 4  ;;  %p12325_p0 = scmp.ne.s32.totalorder %s13764_s3, %s12324_s28  ;;  %s37_s25 = int_to_ptr.vmem [resolvable:$true] %s36_s25 }
   0x4   :  { %p12328_p1 = scmp.lt.u32.totalorder %s12324_s28, %s13764_s3 }
   0x6   :  { %p12330_p2 = pnand %p12328_p1, %p12325_p0 }
   0x8   :  { %12333 = shalt.err (!%p12330_p2)
}
   0x9   :  { %s12334_s10 = scalar_lea.vmem %s37_s25, 512  ;;  %p12339_p4 = scmp.lt.s32.totalorder %s37_s25, %s37_s25 }
   0xa   :  { %p12335_p3 = scmp.ne.s32.totalorder %s37_s25, %s12334_s10  ;;  %p12340_p5 = scmp.lt.s32.totalorder %s12334_s10, %s12334_s10 }
   0xc   :  { %p12341_p6 = por %p12340_p5, %p12339_p4 }
   0xe   :  { %p12342_p7 = pnand %p12341_p6, %p12335_p3 }
  0x10   :  { %12345 = shalt.err (!%p12342_p7)
}
  0x11   :  { %s12419_s11 = smov 64   ;;  %s12420_s12 = smov 4  }
  0x12   :  { %42 = dma.hbm_to_vmem [thread:$0]  %s13764_s3, 512, %s37_s25, [#allocation6], %s12419_s11, %s12419_s11, %s12420_s12  }
  0x13   :  { %s12421_s15 = smov [#allocation2]   ;;  %s12346_s19 = scalar_lea.hbm %s13763_s2, 1024 }
  0x14   :  { %s24_s16 = sshll.u32 %s12421_s15, 4  ;;  %p12347_p8 = scmp.ne.s32.totalorder %s13763_s2, %s12346_s19  ;;  %s25_s16 = int_to_ptr.vmem [resolvable:$true] %s24_s16 }
  0x15   :  { %p12350_p9 = scmp.lt.u32.totalorder %s12346_s19, %s13763_s2 }
  0x17   :  { %p12352_p10 = pnand %p12350_p9, %p12347_p8 }
  0x19   :  { %12355 = shalt.err (!%p12352_p10)
}
  0x1a   :  { %s12356_s24 = scalar_lea.vmem %s25_s16, 1024  ;;  %p12361_p12 = scmp.lt.s32.totalorder %s25_s16, %s25_s16 }
  0x1b   :  { %p12357_p11 = scmp.ne.s32.totalorder %s25_s16, %s12356_s24  ;;  %p12362_p13 = scmp.lt.s32.totalorder %s12356_s24, %s12356_s24 }
  0x1d   :  { %p12363_p0 = por %p12362_p13, %p12361_p12 }
  0x1f   :  { %p12364_p1 = pnand %p12363_p0, %p12357_p11 }
  0x21   :  { %12367 = shalt.err (!%p12364_p1)
}
  0x22   :  { %s12422_s3 = smov 128   ;;  %s12423_s25 = smov 8  }
  0x23   :  { %30 = dma.hbm_to_vmem [thread:$0]  %s13763_s2, 1024, %s25_s16, [#allocation3], %s12422_s3, %s12422_s3, %s12423_s25  }
  0x24   :  { %s12424_s28 = smov [#allocation7]   ;;  %s12368_s9 = scalar_lea.hbm %s13766_s5, 512 }
  0x25   :  { %s50_s29 = sshll.u32 %s12424_s28, 4  ;;  %p12369_p2 = scmp.ne.s32.totalorder %s13766_s5, %s12368_s9  ;;  %s51_s29 = int_to_ptr.vmem [resolvable:$true] %s50_s29 }
  0x26   :  { %p12372_p3 = scmp.lt.u32.totalorder %s12368_s9, %s13766_s5 }
  0x28   :  { %p12374_p4 = pnand %p12372_p3, %p12369_p2 }
  0x2a   :  { %12377 = shalt.err (!%p12374_p4)
}
  0x2b   :  { %s12378_s15 = scalar_lea.vmem %s51_s29, 512  ;;  %p12383_p6 = scmp.lt.s32.totalorder %s51_s29, %s51_s29 }
  0x2c   :  { %p12379_p5 = scmp.ne.s32.totalorder %s51_s29, %s12378_s15  ;;  %p12384_p7 = scmp.lt.s32.totalorder %s12378_s15, %s12378_s15 }
  0x2e   :  { %p12385_p8 = por %p12384_p7, %p12383_p6 }
  0x30   :  { %p12386_p9 = pnand %p12385_p8, %p12379_p5 }
  0x32   :  { %12389 = shalt.err (!%p12386_p9)
}
  0x33   :  { %56 = dma.hbm_to_vmem [thread:$0]  %s13766_s5, 512, %s51_s29, [#allocation6], %s12422_s3, %s12422_s3, %s12423_s25  }
  0x34   :  { %12412 = dma.done.wait [#allocation3], 1024  }
  0x35   :  { %12413 = vsyncadd [#allocation3], 4294966272 }
  0x36   :  { %12414 = dma.done.wait [#allocation6], 1024  }
  0x37   :  { %12415 = vsyncadd [#allocation6], 4294966272  ;;  %v153_v0 = vlaneseq  ;;  %v12425_v1 = vmov 0.0   ;;  %vm12426_vm0 = vmmov 0   ;;  %v12529_v3 = vld [vmem:[#allocation2] ss:$8 sps:$4 sm:$0xff]  }
  0x38   :  { %11587 = vmatprep.subr.bf16.mxu1 %v12425_v1  ;;  %11591 = vmatprep.mubr.msk.bf16.mxu1 %vm12426_vm0, %v12425_v1  ;;  %v12535_v5 = vld [vmem:[#allocation2 + $0x10] ss:$8 sps:$4 sm:$0xff]   ;;  %v12540_v6 = vld [vmem:[%s13761_s0] sm:$0xff]  ;;  %v12546_v7 = vld [vmem:[%s13761_s0 + $0x8] sm:$0xff]  ;;  %vm108_vm1 = vcmask 261120   ;;  %s12427_s24 = smov 32  }
  0x39   :  { %11603 = vmatprep.subr.mxu0 %v12425_v1  ;;  %11605 = vmatprep.mubr.msk.f32.mxu0 %vm12426_vm0, %v12425_v1  ;;  %v12527_v2 = vshrl.u32 %v153_v0, 7  ;;  %v11226_v8 = vld [vmem:[%s13761_s0 + $0x10] sm:$0xff]  ;;  %v11227_v9 = vld [vmem:[%s13761_s0 + $0x18] sm:$0xff]  ;;  %v12556_v12 = vld [vmem:[#allocation7] sm:$0xff]  ;;  %s12428_s26 = smov 112   ;;  %s12429_s27 = smov 120   ;;  %v169_v35 = vpack.c.bf16 %v12546_v7, %v12540_v6 }
  0x3a   :  { %11588 = vmatpush3.bf16.msra.mxu1 %v12529_v3  ;;  %v93_v10 = vadd.f32 %v11226_v8, %v12540_v6  ;;  %v94_v11 = vadd.f32 %v11227_v9, %v12546_v7  ;;  %s12430_s28 = smov 104   ;;  %s12431_s29 = smov 96   ;;  %vm389_vm2 = vcmask 64512   ;;  %vm1431_vm3 = vcmask 130048  }
  0x3b   :  { %v12532_v4 = vsub.s32 1, %v12527_v2  ;;  %11589 = vmatprep.subr.bf16.mxu1 %v12425_v1  ;;  %v12567_v15 = vsub.s32 0, %v12527_v2  ;;  %v12617_v43 = vsub.s32 2, %v12527_v2  ;;  %s12434_s30 = smov 16   ;;  %s12435_s8 = smov 24   ;;  %vm1433_vm4 = vcmask 195584  }
  0x3c   :  { %v95_v14 = vpack.c.bf16 %v94_v11, %v93_v10  ;;  %vm5568_vm5 = vcmask 523264  }
  0x3d   :  { %v162_v13 = vrot.slane %v12556_v12, %v12532_v4  ;;  %v156_v18 = vrot.slane %v12556_v12, %v12567_v15  ;;  %v173_v44 = vrot.slane %v12556_v12, %v12617_v43 }
  0x3e   :  { %11590 = vmatpush3.bf16.msra.mxu1 %v12535_v5 }
  0x3f   :  { %164 = vrot.lane.b32.xlu0 %v162_v13, %s12427_s24  ;;  %11595 = vmatprep.subr.bf16.mxu1 %v12425_v1 }
  0x41   :  { %11592 = vmatmul.mubr.msk.bf16.vlgmr.msra.gmra.mrb[0].mxu1 %vm108_vm1, %v95_v14 }
  0x42   :  { %11599 = vmatprep.mubr.msk.bf16.mxu1 %vm12426_vm0, %v12425_v1 }
  0xb1   :  { %v12569_v16 = vpop.permute.xlu0 %164 }
 0x114   :  { %v146_v17 = vpop.f32.mrb[0].mxu1 }
 0x115   :  { %v167_v19 = vadd.f32 %v12569_v16, %v146_v17  ;;  %v11593_v20 = vpop.f32.mrb[1].mxu1  ;;  %v157_v26 = vadd.f32 %v156_v18, %v146_v17 }
 0x116   :  { %v12574_v21 = vpop.f32.mrb[2].mxu1 }
 0x117   :  { %v12577_v22 = vadd.f32 %v156_v18, %v12574_v21  ;;  %235 = vrot.lane.b32.xlu1 %v167_v19, %s12428_s26  ;;  %233 = vrot.lane.b32.xlu0 %v167_v19, %s12429_s27  ;;  %v11594_v23 = vpop.f32.mrb[3].mxu1  ;;  %v224_v28 = vmul.f32 0.35355338, %v157_v26  ;;  %v168_v53 = vadd.f32 %v12569_v16, %v12574_v21 }
 0x119   :  { %v12638_v9 = vmul.f32 0.35355338, %v12577_v22 }
 0x11b   :  { %237 = vrot.lane.b32.xlu1 %v167_v19, %s12430_s28  ;;  %249 = vrot.lane.b32.xlu0 %v167_v19, %s12431_s29 }
 0x189   :  { %v236_v24 = vpop.permute.xlu1 %235  ;;  %v234_v25 = vpop.permute.xlu0 %233 }
 0x18a   :  { %253 = vrot.lane.b32.xlu0 %v236_v24, %s12431_s29  ;;  %251 = vrot.lane.b32.xlu1 %v234_v25, %s12431_s29 }
 0x18d   :  { %v238_v27 = vpop.permute.xlu1 %237  ;;  %v250_v29 = vpop.permute.xlu0 %249 }
 0x18e   :  { %174 = vrot.lane.b32.xlu0 %v12529_v3, %s12419_s11  ;;  %255 = vrot.lane.b32.xlu1 %v238_v27, %s12431_s29 }
 0x192   :  { %176 = vrot.lane.b32.xlu1 %v12535_v5, %s12419_s11  ;;  %226 = vrot.lane.b32.xlu0 %v224_v28, %s12429_s27 }
 0x196   :  { %228 = vrot.lane.b32.xlu1 %v224_v28, %s12428_s26  ;;  %230 = vrot.lane.b32.xlu0 %v224_v28, %s12430_s28 }
 0x1bf   :  { %261 = vxpose.xlu1.b32.start.end [1/1] (short) (narrow) %v250_v29, 8 }
 0x1fc   :  { %v252_v30 = vpop.permute.xlu1 %251  ;;  %v254_v31 = vpop.permute.xlu0 %253 }
 0x1fd   :  { %293 = vxpose.xlu0.b32.start.end [1/1] (short) (narrow) %v252_v30, 8 }
 0x200   :  { %v256_v32 = vpop.permute.xlu1 %255  ;;  %v175_v33 = vpop.permute.xlu0 %174 }
 0x201   :  { %325 = vxpose.xlu0.b32.start.end [1/1] (short) (narrow) %v254_v31, 8  ;;  %11596 = vmatpush3.bf16.msra.mxu1 %v175_v33 }
 0x202   :  { %11597 = vmatprep.subr.bf16.mxu1 %v12425_v1 }
 0x204   :  { %v177_v34 = vpop.permute.xlu1 %176  ;;  %v227_v38 = vpop.permute.xlu0 %226 }
 0x205   :  { %357 = vxpose.xlu0.b32.start.end [1/1] (short) (narrow) %v256_v32, 8  ;;  %11598 = vmatpush3.bf16.msra.mxu1 %v177_v34 }
 0x206   :  { %11618 = vmatprep.subr.mxu1 %v12425_v1 }
 0x208   :  { %11600 = vmatmul.mubr.msk.bf16.vlgmr.msra.gmra.mrb[4].mxu1 %vm108_vm1, %v169_v35  ;;  %v229_v36 = vpop.permute.xlu1 %228  ;;  %v231_v39 = vpop.permute.xlu0 %230 }
 0x209   :  { %11620 = vmatprep.mubr.msk.f32.mxu1 %vm12426_vm0, %v12425_v1 }
 0x23f   :  { %v277_v37 = vpop.trf.xlu1 }
 0x240   :  { %11604 = vmatpush3.msra.mxu0 %v277_v37 }
 0x241   :  { %11606 = vmatmul.mubr.msk.f32.vlgmr.msra.gmra.mrb[0].mxu0 %vm389_vm2, %v224_v28  ;;  %11608 = vmatprep.subr.mxu0 %v12425_v1 }
 0x242   :  { %11610 = vmatprep.mubr.msk.f32.mxu0 %vm12426_vm0, %v12425_v1 }
 0x27d   :  { %v309_v40 = vpop.trf.xlu0 }
 0x27e   :  { %11609 = vmatpush3.msra.mxu0 %v309_v40 }
 0x27f   :  { %11611 = vmatmul.mubr.msk.f32.vlgmr.msra.gmra.mrb[2].mxu0 %vm389_vm2, %v227_v38  ;;  %11613 = vmatprep.subr.mxu0 %v12425_v1 }
 0x280   :  { %11615 = vmatprep.mubr.msk.f32.mxu0 %vm12426_vm0, %v12425_v1 }
 0x281   :  { %v341_v41 = vpop.trf.xlu0 }
 0x282   :  { %11614 = vmatpush3.msra.mxu0 %v341_v41 }
 0x283   :  { %11616 = vmatmul.mubr.msk.f32.vlgmr.msra.gmra.mrb[4].mxu0 %vm389_vm2, %v229_v36  ;;  %11623 = vmatprep.subr.mxu0 %v12425_v1 }
 0x284   :  { %11625 = vmatprep.mubr.msk.f32.mxu0 %vm12426_vm0, %v12425_v1 }
 0x285   :  { %v373_v42 = vpop.trf.xlu0 }
 0x286   :  { %11619 = vmatpush3.msra.mxu1 %v373_v42 }
 0x287   :  { %11621 = vmatmul.mubr.msk.f32.vlgmr.msra.gmra.mrb[8].mxu1 %vm389_vm2, %v231_v39  ;;  %11628 = vmatprep.subr.mxu1 %v12425_v1 }
 0x288   :  { %11630 = vmatprep.mubr.msk.f32.mxu1 %vm12426_vm0, %v12425_v1 }
 0x2db   :  { %v217_v45 = vpop.f32.mrb[4].mxu1 }
 0x2dc   :  { %v11601_v46 = vpop.f32.mrb[5].mxu1  ;;  %v218_v63 = vadd.f32 %v217_v45, %v173_v44 }
 0x2dd   :  { %v220_v47 = vpop.f32.mrb[6].mxu1 }
 0x2de   :  { %v12621_v48 = vadd.f32 %v220_v47, %v173_v44  ;;  %v11602_v49 = vpop.f32.mrb[7].mxu1 }
 0x314   :  { %v458_v50 = vpop.f32.mrb[0].mxu0 }
 0x315   :  { %v11607_v51 = vpop.f32.mrb[1].mxu0  ;;  %v678_v52 = vsel %vm389_vm2, %v458_v50, -inf }
 0x316   :  { %679 = vmax.xlane.f32.xlu1 %v678_v52 }
 0x327   :  { %1446 = vrot.lane.b32.xlu1 %v168_v53, %s12428_s26 }
 0x352   :  { %v530_v54 = vpop.f32.mrb[2].mxu0 }
 0x353   :  { %v11612_v55 = vpop.f32.mrb[3].mxu0  ;;  %v681_v56 = vsel %vm389_vm2, %v530_v54, -inf }
 0x354   :  { %682 = vmax.xlane.f32.xlu0 %v681_v56 }
 0x356   :  { %v602_v57 = vpop.f32.mrb[4].mxu0 }
 0x357   :  { %v11617_v58 = vpop.f32.mrb[5].mxu0  ;;  %v684_v62 = vsel %vm389_vm2, %v602_v57, -inf }
 0x35a   :  { %v674_v59 = vpop.f32.mrb[8].mxu1 }
 0x35b   :  { %v11622_v60 = vpop.f32.mrb[9].mxu1  ;;  %v687_v61 = vsel %vm389_vm2, %v674_v59, -inf }
 0x35c   :  { %688 = vmax.xlane.f32.xlu1 %v687_v61 }
 0x360   :  { %685 = vmax.xlane.f32.xlu1 %v684_v62 }
 0x36a   :  { %1444 = vrot.lane.b32.xlu0 %v168_v53, %s12429_s27 }
 0x36e   :  { %240 = vrot.lane.b32.xlu0 %v218_v63, %s12429_s27 }
 0x371   :  { %1448 = vrot.lane.b32.xlu1 %v168_v53, %s12430_s28 }
 0x372   :  { %246 = vrot.lane.b32.xlu0 %v218_v63, %s12430_s28 }
 0x375   :  { %243 = vrot.lane.b32.xlu1 %v218_v63, %s12428_s26 }
 0x376   :  { %1460 = vrot.lane.b32.xlu0 %v168_v53, %s12431_s29 }
 0x3a3   :  { %v680_v0 = vpop.xlane.xlu1 %679 }
 0x3a4   :  { %v690_v25 = vsub.f32 %v458_v50, %v680_v0 }
 0x3a6   :  { %v694_v26 = vmul.f32 1.442695, %v690_v25 }
 0x3a7   :  { %v1447_v8 = vpop.permute.xlu1 %1446 }
 0x3a8   :  { %1464 = vrot.lane.b32.xlu0 %v1447_v8, %s12431_s29 }
 0x3ac   :  { %1439 = vrot.lane.b32.xlu0 %v12638_v9, %s12428_s26 }
 0x3e1   :  { %v683_v10 = vpop.xlane.xlu0 %682 }
 0x3e2   :  { %v691_v11 = vsub.f32 %v530_v54, %v683_v10 }
 0x3e4   :  { %v696_v13 = vmul.f32 1.442695, %v691_v11 }
 0x3e5   :  { %v1445_v14 = vpop.permute.xlu0 %1444 }
 0x3e6   :  { %12162 = vpow2.f32 %v696_v13  ;;  %1462 = vrot.lane.b32.xlu1 %v1445_v14, %s12431_s29 }
 0x3e9   :  { %v689_v16 = vpop.xlane.xlu1 %688  ;;  %v241_v33 = vpop.permute.xlu0 %240 }
 0x3ea   :  { %v693_v17 = vsub.f32 %v674_v59, %v689_v16 }
 0x3ec   :  { %v700_v18 = vmul.f32 1.442695, %v693_v17 }
 0x3ed   :  { %v686_v19 = vpop.xlane.xlu1 %685  ;;  %v247_v35 = vpop.permute.xlu0 %246 }
 0x3ee   :  { %12164 = vpow2.f32 %v700_v18  ;;  %v692_v27 = vsub.f32 %v602_v57, %v686_v19 }
 0x3ef   :  { %12166 = vpow2.f32 %v694_v26 }
 0x3f0   :  { %v12163_v20 = vpop.eup %12162  ;;  %v698_v28 = vmul.f32 1.442695, %v692_v27 }
 0x3f1   :  { %v1449_v21 = vpop.permute.xlu1 %1448  ;;  %v705_v22 = vsel %vm389_vm2, %v12163_v20, 0.0  ;;  %v1461_v36 = vpop.permute.xlu0 %1460 }
 0x3f2   :  { %706 = vadd.xlane.f32.xlu0 %v705_v22  ;;  %1466 = vrot.lane.b32.xlu1 %v1449_v21, %s12431_s29  ;;  %12168 = vpow2.f32 %v698_v28 }
 0x3f5   :  { %v244_v34 = vpop.permute.xlu1 %243 }
 0x3f6   :  { %1437 = vrot.lane.b32.xlu1 %v12638_v9, %s12429_s27 }
 0x3f8   :  { %v12647_v23 = vpop.eup %12164 }
 0x3f9   :  { %v711_v24 = vsel %vm389_vm2, %v12647_v23, 0.0  ;;  %v12167_v29 = vpop.eup %12166 }
 0x3fa   :  { %712 = vadd.xlane.f32.xlu0 %v711_v24  ;;  %1441 = vrot.lane.b32.xlu1 %v12638_v9, %s12430_s28  ;;  %v702_v30 = vsel %vm389_vm2, %v12167_v29, 0.0 }
 0x3fc   :  { %v12169_v31 = vpop.eup %12168 }
 0x3fd   :  { %v708_v32 = vsel %vm389_vm2, %v12169_v31, 0.0 }
 0x41a   :  { %v1465_v37 = vpop.permute.xlu0 %1464 }
 0x41e   :  { %703 = vadd.xlane.f32.xlu1 %v702_v30  ;;  %v1440_v40 = vpop.permute.xlu0 %1439 }
 0x422   :  { %709 = vadd.xlane.f32.xlu1 %v708_v32 }
 0x427   :  { %722 = vxpose.xlu0.b32.start.end [1/1] (short) (narrow) %v218_v63, 8 }
 0x42b   :  { %786 = vxpose.xlu0.b32.start.end [1/1] (short) (narrow) %v244_v34, 8 }
 0x42f   :  { %818 = vxpose.xlu0.b32.start.end [1/1] (short) (narrow) %v247_v35, 8 }
 0x433   :  { %1472 = vxpose.xlu0.b32.start.end [1/1] (short) (narrow) %v1461_v36, 8 }
 0x437   :  { %1536 = vxpose.xlu0.b32.start.end [1/1] (short) (narrow) %v1465_v37, 8 }
 0x455   :  { %754 = vxpose.xlu1.b32.start.end [1/1] (short) (narrow) %v241_v33, 8 }
 0x458   :  { %v1463_v38 = vpop.permute.xlu1 %1462 }
 0x459   :  { %1504 = vxpose.xlu1.b32.start.end [1/1] (short) (narrow) %v1463_v38, 8 }
 0x464   :  { %v1467_v39 = vpop.permute.xlu1 %1466 }
 0x465   :  { %1568 = vxpose.xlu1.b32.start.end [1/1] (short) (narrow) %v1467_v39, 8 }
 0x468   :  { %v1438_v45 = vpop.permute.xlu1 %1437 }
 0x46c   :  { %v1442_v47 = vpop.permute.xlu1 %1441 }
 0x47f   :  { %v707_v41 = vpop.xlane.xlu0 %706 }
 0x480   :  { %12170 = vrcp.f32 %v707_v41 }
 0x487   :  { %v713_v46 = vpop.xlane.xlu0 %712 }
 0x48a   :  { %v12171_v42 = vpop.eup %12170 }
 0x48b   :  { %v717_v44 = vmul.f32 %v12171_v42, %v12163_v20 }
 0x48d   :  { %11629 = vmatpush3.xpose.msk.msra.mxu1 %vm389_vm2, %v717_v44 }
 0x48e   :  { %11638 = vmatprep.subr.mxu1 %v12425_v1 }
 0x4a7   :  { %v738_v49 = vpop.trf.xlu0 }
 0x4ab   :  { %v704_v50 = vpop.xlane.xlu1 %703  ;;  %v802_v52 = vpop.trf.xlu0 }
 0x4ac   :  { %12172 = vrcp.f32 %v704_v50 }
 0x4af   :  { %v710_v51 = vpop.xlane.xlu1 %709  ;;  %v834_v54 = vpop.trf.xlu0 }
 0x4b0   :  { %12174 = vrcp.f32 %v710_v51 }
 0x4b1   :  { %12176 = vrcp.f32 %v713_v46 }
 0x4b3   :  { %v1488_v58 = vpop.trf.xlu0 }
 0x4b6   :  { %v12173_v53 = vpop.eup %12172 }
 0x4b7   :  { %v715_v55 = vmul.f32 %v12173_v53, %v12167_v29  ;;  %v1552_v59 = vpop.trf.xlu0 }
 0x4b9   :  { %11624 = vmatpush3.xpose.msk.msra.mxu0 %vm389_vm2, %v715_v55 }
 0x4ba   :  { %v12175_v56 = vpop.eup %12174  ;;  %11633 = vmatprep.subr.mxu0 %v12425_v1 }
 0x4bb   :  { %v719_v57 = vmul.f32 %v12175_v56, %v12169_v31  ;;  %v12177_v60 = vpop.eup %12176 }
 0x4bc   :  { %11626 = vmatmul.mubr.msk.f32.vlgmr.msra.gmra.mrb[6].mxu0 %vm389_vm2, %v738_v49  ;;  %v721_v62 = vmul.f32 %v12177_v60, %v12647_v23 }
 0x4bd   :  { %11634 = vmatpush3.xpose.msk.msra.mxu0 %vm389_vm2, %v719_v57  ;;  %11635 = vmatprep.mubr.msk.f32.mxu0 %vm12426_vm0, %v12425_v1 }
 0x4be   :  { %11643 = vmatprep.subr.mxu0 %v12425_v1 }
 0x4c0   :  { %11636 = vmatmul.mubr.msk.f32.vlgmr.msra.gmra.mrb[8].mxu0 %vm389_vm2, %v802_v52 }
 0x4c1   :  { %11644 = vmatpush3.msra.mxu0 %v1488_v58  ;;  %11645 = vmatprep.mubr.msk.f32.mxu0 %vm12426_vm0, %v12425_v1 }
 0x4c2   :  { %11653 = vmatprep.subr.mxu0 %v12425_v1 }
 0x4c4   :  { %11646 = vmatmul.mubr.msk.f32.vlgmr.msra.gmra.mrb[10].mxu0 %vm389_vm2, %v12638_v9 }
 0x4c5   :  { %11654 = vmatpush3.msra.mxu0 %v1552_v59  ;;  %11655 = vmatprep.mubr.msk.f32.mxu0 %vm12426_vm0, %v12425_v1 }
 0x4c6   :  { %11663 = vmatprep.subr.mxu0 %v12425_v1 }
 0x4c8   :  { %11656 = vmatmul.mubr.msk.f32.vlgmr.msra.gmra.mrb[12].mxu0 %vm389_vm2, %v1440_v40 }
 0x4c9   :  { %11665 = vmatprep.mubr.msk.f32.mxu0 %vm12426_vm0, %v12425_v1 }
 0x4d5   :  { %v770_v61 = vpop.trf.xlu1 }
 0x4d6   :  { %11631 = vmatmul.mubr.msk.f32.vlgmr.msra.gmra.mrb[10].mxu1 %vm389_vm2, %v770_v61 }
 0x4d7   :  { %11639 = vmatpush3.xpose.msk.msra.mxu1 %vm389_vm2, %v721_v62  ;;  %11640 = vmatprep.mubr.msk.f32.mxu1 %vm12426_vm0, %v12425_v1 }
 0x4d8   :  { %11648 = vmatprep.subr.mxu1 %v12425_v1 }
 0x4d9   :  { %v1520_v63 = vpop.trf.xlu1 }
 0x4da   :  { %11641 = vmatmul.mubr.msk.f32.vlgmr.msra.gmra.mrb[12].mxu1 %vm389_vm2, %v834_v54 }
 0x4db   :  { %11649 = vmatpush3.msra.mxu1 %v1520_v63  ;;  %11650 = vmatprep.mubr.msk.f32.mxu1 %vm12426_vm0, %v12425_v1 }
 0x4dc   :  { %11658 = vmatprep.subr.mxu1 %v12425_v1 }
 0x4de   :  { %11651 = vmatmul.mubr.msk.f32.vlgmr.msra.gmra.mrb[14].mxu1 %vm389_vm2, %v1438_v45 }
 0x4df   :  { %11660 = vmatprep.mubr.msk.f32.mxu1 %vm12426_vm0, %v12425_v1 }
 0x4e5   :  { %v1584_v0 = vpop.trf.xlu1 }
 0x4e6   :  { %11659 = vmatpush3.msra.mxu1 %v1584_v0 }
 0x4e7   :  { %11661 = vmatmul.mubr.msk.f32.vlgmr.msra.gmra.mrb[16].mxu1 %vm389_vm2, %v1442_v47  ;;  %11668 = vmatprep.subr.mxu1 %v12425_v1 }
 0x4e8   :  { %11670 = vmatprep.mubr.msk.f32.mxu1 %vm12426_vm0, %v12425_v1 }
 0x58f   :  { %v922_v8 = vpop.f32.mrb[6].mxu0 }
 0x590   :  { %v11627_v9 = vpop.f32.mrb[7].mxu0 }
 0x593   :  { %v1074_v10 = vpop.f32.mrb[8].mxu0 }
 0x594   :  { %v11637_v11 = vpop.f32.mrb[9].mxu0 }
 0x597   :  { %v1668_v13 = vpop.f32.mrb[10].mxu0 }
 0x598   :  { %v11647_v14 = vpop.f32.mrb[11].mxu0  ;;  %v1888_v16 = vsel %vm389_vm2, %v1668_v13, -inf }
 0x599   :  { %1889 = vmax.xlane.f32.xlu0 %v1888_v16  ;;  %v12725_v14 = vld [vmem:[#allocation2 + $0x4] ss:$8 sps:$4 sm:$0xff]   ;;  %v12732_v16 = vld [vmem:[#allocation2 + $0x14] ss:$8 sps:$4 sm:$0xff]  }
 0x59b   :  { %v1812_v17 = vpop.f32.mrb[12].mxu0 }
 0x59c   :  { %v11657_v18 = vpop.f32.mrb[13].mxu0  ;;  %v1894_v26 = vsel %vm389_vm2, %v1812_v17, -inf }
 0x5a9   :  { %v998_v19 = vpop.f32.mrb[10].mxu1 }
 0x5aa   :  { %v11632_v20 = vpop.f32.mrb[11].mxu1 }
 0x5ad   :  { %v1150_v21 = vpop.f32.mrb[12].mxu1 }
 0x5ae   :  { %v11642_v22 = vpop.f32.mrb[13].mxu1 }
 0x5b1   :  { %v1740_v23 = vpop.f32.mrb[14].mxu1 }
 0x5b2   :  { %v11652_v24 = vpop.f32.mrb[15].mxu1  ;;  %v1891_v25 = vsel %vm389_vm2, %v1740_v23, -inf }
 0x5b3   :  { %1892 = vmax.xlane.f32.xlu1 %v1891_v25  ;;  %v12433_v25 = vmov 1934713408  }
 0x5b7   :  { %1895 = vmax.xlane.f32.xlu1 %v1894_v26  ;;  %v1317_v26 = vunpack.c.l.s4 %v12433_v25 }
 0x5ba   :  { %v1884_v27 = vpop.f32.mrb[16].mxu1 }
 0x5bb   :  { %v11662_v28 = vpop.f32.mrb[17].mxu1  ;;  %v1897_v29 = vsel %vm389_vm2, %v1884_v27, -inf }
 0x5bc   :  { %1898 = vmax.xlane.f32.xlu0 %v1897_v29 }
 0x5c8   :  { %1451 = vrot.lane.b32.xlu1 %v12621_v48, %s12429_s27 }
 0x5cc   :  { %1457 = vrot.lane.b32.xlu1 %v12621_v48, %s12430_s28 }
 0x5d2   :  { %1454 = vrot.lane.b32.xlu0 %v12621_v48, %s12428_s26 }
 0x626   :  { %v1890_v30 = vpop.xlane.xlu0 %1889 }
 0x627   :  { %v1900_v31 = vsub.f32 %v1668_v13, %v1890_v30 }
 0x629   :  { %v1904_v32 = vmul.f32 1.442695, %v1900_v31  ;;  %v1318_v31 = vunpack.c.0.s8 %v1317_v26 }
 0x62b   :  { %12178 = vpow2.f32 %v1904_v32 }
 0x635   :  { %v12179_v33 = vpop.eup %12178 }
 0x636   :  { %v1912_v34 = vsel %vm389_vm2, %v12179_v33, 0.0 }
 0x637   :  { %1913 = vadd.xlane.f32.xlu1 %v1912_v34 }
 0x640   :  { %v1893_v35 = vpop.xlane.xlu1 %1892 }
 0x641   :  { %v1901_v36 = vsub.f32 %v1740_v23, %v1893_v35 }
 0x643   :  { %v1906_v37 = vmul.f32 1.442695, %v1901_v36 }
 0x644   :  { %v1896_v38 = vpop.xlane.xlu1 %1895 }
 0x645   :  { %12180 = vpow2.f32 %v1906_v37  ;;  %v1902_v39 = vsub.f32 %v1812_v17, %v1896_v38  ;;  %v12432_v17 = vmov 1983009808   ;;  %v12743_v38 = vsub.s32 %v1318_v31, %v12527_v2 }
 0x646   :  { %v1285_v18 = vunpack.c.l.s4 %v12432_v17 }
 0x647   :  { %v1908_v40 = vmul.f32 1.442695, %v1902_v39 }
 0x648   :  { %v1452_v52 = vpop.permute.xlu1 %1451 }
 0x649   :  { %12182 = vpow2.f32 %v1908_v40  ;;  %v1899_v41 = vpop.xlane.xlu0 %1898 }
 0x64a   :  { %v1903_v42 = vsub.f32 %v1884_v27, %v1899_v41 }
 0x64c   :  { %v1910_v44 = vmul.f32 1.442695, %v1903_v42  ;;  %v1458_v54 = vpop.permute.xlu1 %1457 }
 0x64d   :  { %v1455_v53 = vpop.permute.xlu0 %1454 }
 0x64e   :  { %12184 = vpow2.f32 %v1910_v44 }
 0x64f   :  { %v12181_v45 = vpop.eup %12180 }
 0x650   :  { %v1915_v46 = vsel %vm389_vm2, %v12181_v45, 0.0 }
 0x651   :  { %1916 = vadd.xlane.f32.xlu0 %v1915_v46 }
 0x653   :  { %v12183_v47 = vpop.eup %12182 }
 0x654   :  { %v1918_v49 = vsel %vm389_vm2, %v12183_v47, 0.0 }
 0x655   :  { %1919 = vadd.xlane.f32.xlu0 %v1918_v49 }
 0x658   :  { %v12185_v50 = vpop.eup %12184 }
 0x659   :  { %v1921_v51 = vsel %vm389_vm2, %v12185_v50, 0.0 }
 0x65a   :  { %1922 = vadd.xlane.f32.xlu1 %v1921_v51 }
 0x682   :  { %1932 = vxpose.xlu0.b32.start.end [1/1] (short) (narrow) %v12621_v48, 8 }
 0x686   :  { %1996 = vxpose.xlu0.b32.start.end [1/1] (short) (narrow) %v1455_v53, 8 }
 0x68a   :  { %2028 = vxpose.xlu0.b32.start.end [1/1] (short) (narrow) %v1458_v54, 8 }
 0x68d   :  { %1964 = vxpose.xlu1.b32.start.end [1/1] (short) (narrow) %v1452_v52, 8 }
 0x68e   :  { %1186 = vxpose.xlu0.b32.start.end [1/1] (short) (narrow) %v998_v19, 8 }
 0x691   :  { %1154 = vxpose.xlu1.b32.start.end [1/1] (short) (narrow) %v922_v8, 8 }
 0x692   :  { %1250 = vxpose.xlu0.b32.start.end [1/1] (short) (narrow) %v1150_v21, 8  ;;  %v1286_v21 = vunpack.c.0.s8 %v1285_v18 }
 0x694   :  { %v12736_v24 = vsub.s32 %v1286_v21, %v12527_v2 }
 0x695   :  { %1218 = vxpose.xlu1.b32.start.end [1/1] (short) (narrow) %v1074_v10, 8 }
 0x6c4   :  { %v1914_v55 = vpop.xlane.xlu1 %1913 }
 0x6c5   :  { %12186 = vrcp.f32 %v1914_v55 }
 0x6cf   :  { %v12187_v56 = vpop.eup %12186 }
 0x6d0   :  { %v1925_v57 = vmul.f32 %v12187_v56, %v12179_v33 }
 0x6d2   :  { %11664 = vmatpush3.xpose.msk.msra.mxu0 %vm389_vm2, %v1925_v57 }
 0x6d3   :  { %11673 = vmatprep.subr.mxu0 %v12425_v1 }
 0x6de   :  { %v1917_v58 = vpop.xlane.xlu0 %1916 }
 0x6df   :  { %12188 = vrcp.f32 %v1917_v58 }
 0x6e2   :  { %v1920_v60 = vpop.xlane.xlu0 %1919 }
 0x6e3   :  { %12190 = vrcp.f32 %v1920_v60 }
 0x6e7   :  { %v1923_v61 = vpop.xlane.xlu1 %1922 }
 0x6e8   :  { %12192 = vrcp.f32 %v1923_v61 }
 0x6e9   :  { %v12189_v48 = vpop.eup %12188 }
 0x6ea   :  { %v1927_v59 = vmul.f32 %v12189_v48, %v12181_v45 }
 0x6ec   :  { %11669 = vmatpush3.xpose.msk.msra.mxu1 %vm389_vm2, %v1927_v59 }
 0x6ed   :  { %11678 = vmatprep.subr.mxu1 %v12425_v1  ;;  %v12191_v62 = vpop.eup %12190 }
 0x6ee   :  { %v1929_v0 = vmul.f32 %v12191_v62, %v12183_v47 }
 0x6f2   :  { %v12193_v9 = vpop.eup %12192 }
 0x6f3   :  { %v1931_v11 = vmul.f32 %v12193_v9, %v12185_v50 }
 0x702   :  { %v1948_v63 = vpop.trf.xlu0 }
 0x703   :  { %11666 = vmatmul.mubr.msk.f32.vlgmr.msra.gmra.mrb[14].mxu0 %vm389_vm2, %v1948_v63 }
 0x704   :  { %11674 = vmatpush3.xpose.msk.msra.mxu0 %vm389_vm2, %v1929_v0  ;;  %11675 = vmatprep.mubr.msk.f32.mxu0 %vm12426_vm0, %v12425_v1 }
 0x705   :  { %11683 = vmatprep.subr.bf16.mxu0 %v12425_v1 }
 0x706   :  { %v2012_v8 = vpop.trf.xlu0 }
 0x707   :  { %11676 = vmatmul.mubr.msk.f32.vlgmr.msra.gmra.mrb[16].mxu0 %vm389_vm2, %v2012_v8 }
 0x708   :  { %11687 = vmatprep.mubr.msk.bf16.mxu0 %vm12426_vm0, %v12425_v1 }
 0x70a   :  { %v2044_v13 = vpop.trf.xlu0 }
 0x70d   :  { %v1980_v10 = vpop.trf.xlu1 }
 0x70e   :  { %11671 = vmatmul.mubr.msk.f32.vlgmr.msra.gmra.mrb[18].mxu1 %vm389_vm2, %v1980_v10  ;;  %v1202_v20 = vpop.trf.xlu0 }
 0x70f   :  { %11679 = vmatpush3.xpose.msk.msra.mxu1 %vm389_vm2, %v1931_v11  ;;  %11680 = vmatprep.mubr.msk.f32.mxu1 %vm12426_vm0, %v12425_v1 }
 0x710   :  { %11691 = vmatprep.subr.bf16.mxu1 %v12425_v1 }
 0x711   :  { %v1170_v19 = vpop.trf.xlu1 }
 0x712   :  { %11681 = vmatmul.mubr.msk.f32.vlgmr.msra.gmra.mrb[20].mxu1 %vm389_vm2, %v2044_v13  ;;  %v1266_v23 = vpop.trf.xlu0 }
 0x713   :  { %11692 = vmatpush3.bf16.msra.mxu1 %v12725_v14  ;;  %11695 = vmatprep.mubr.msk.bf16.mxu1 %vm12426_vm0, %v12425_v1  ;;  %v1298_v29 = vcombine.low %v1202_v20, %v1266_v23  ;;  %v1299_v30 = vcombine.high %v1202_v20, %v1266_v23 }
 0x714   :  { %11693 = vmatprep.subr.bf16.mxu1 %v12425_v1 }
 0x715   :  { %v1234_v22 = vpop.trf.xlu1  ;;  %v1306_v35 = vrot.slane %v1298_v29, %v12736_v24  ;;  %v1313_v36 = vrot.slane %v1299_v30, %v12736_v24 }
 0x716   :  { %v1282_v27 = vcombine.low %v1170_v19, %v1234_v22  ;;  %v1283_v28 = vcombine.high %v1170_v19, %v1234_v22 }
 0x717   :  { %11694 = vmatpush3.bf16.msra.mxu1 %v12732_v16 }
 0x718   :  { %v1290_v33 = vrot.slane %v1282_v27, %v12736_v24  ;;  %v1297_v34 = vrot.slane %v1283_v28, %v12736_v24 }
 0x71a   :  { %v1314_v40 = vcombine.low %v1290_v33, %v1306_v35  ;;  %v1315_v41 = vcombine.high %v1290_v33, %v1306_v35  ;;  %v1330_v42 = vcombine.low %v1297_v34, %v1313_v36  ;;  %v1331_v44 = vcombine.high %v1297_v34, %v1313_v36 }
 0x71c   :  { %v1322_v46 = vrot.slane %v1314_v40, %v12743_v38  ;;  %v1329_v47 = vrot.slane %v1315_v41, %v12743_v38  ;;  %v1338_v49 = vrot.slane %v1330_v42, %v12743_v38  ;;  %v1345_v50 = vrot.slane %v1331_v44, %v12743_v38 }
 0x71e   :  { %v1350_v53 = vcombine.low %v1322_v46, %v1329_v47  ;;  %v11248_v54 = vcombine.high %v1322_v46, %v1329_v47  ;;  %v1366_v55 = vcombine.low %v1338_v49, %v1345_v50  ;;  %v11249_v56 = vcombine.high %v1338_v49, %v1345_v50 }
 0x720   :  { %v1357_v48 = vrot.slane %v1350_v53, %v12736_v24  ;;  %v1365_v59 = vrot.slane %v11248_v54, %v12736_v24  ;;  %v1373_v60 = vrot.slane %v1366_v55, %v12736_v24  ;;  %v1381_v61 = vrot.slane %v11249_v56, %v12736_v24 }
 0x722   :  { %v1382_v62 = vcombine.low %v1357_v48, %v1365_v59  ;;  %v1398_v63 = vcombine.low %v1373_v60, %v1381_v61  ;;  %v1383_v35 = vcombine.high %v1357_v48, %v1365_v59  ;;  %v1399_v36 = vcombine.high %v1373_v60, %v1381_v61 }
 0x724   :  { %v12754_v0 = vrot.slane %v1382_v62, %v12743_v38  ;;  %v12757_v8 = vrot.slane %v1398_v63, %v12743_v38  ;;  %v1397_v47 = vrot.slane %v1383_v35, %v12743_v38  ;;  %v1413_v49 = vrot.slane %v1399_v36, %v12743_v38 }
 0x726   :  { %v1414_v9 = vcombine.low %v12754_v0, %v12757_v8  ;;  %v1415_v59 = vcombine.high %v12754_v0, %v12757_v8  ;;  %v12800_v0 = vsub.s32 3, %v12527_v2 }
 0x728   :  { %v2647_v8 = vrot.slane %v12556_v12, %v12800_v0  ;;  %v11228_v12 = vld [vmem:[%s13762_s1 + $0x20] sm:$0xff] }
 0x7d6   :  { %v2132_v32 = vpop.f32.mrb[14].mxu0 }
 0x7d7   :  { %v11667_v37 = vpop.f32.mrb[15].mxu0  ;;  %2364 = vxpose.xlu1.b32.start.end [1/1] (short) (narrow) %v2132_v32, 8 }
 0x7da   :  { %v2284_v39 = vpop.f32.mrb[16].mxu0 }
 0x7db   :  { %v11677_v45 = vpop.f32.mrb[17].mxu0  ;;  %2428 = vxpose.xlu1.b32.start.end [1/1] (short) (narrow) %v2284_v39, 8 }
 0x7e1   :  { %v2208_v51 = vpop.f32.mrb[18].mxu1 }
 0x7e2   :  { %2396 = vxpose.xlu0.b32.start.end [1/1] (short) (narrow) %v2208_v51, 8  ;;  %v11672_v52 = vpop.f32.mrb[19].mxu1 }
 0x7e5   :  { %v2360_v57 = vpop.f32.mrb[20].mxu1 }
 0x7e6   :  { %2460 = vxpose.xlu0.b32.start.end [1/1] (short) (narrow) %v2360_v57, 8  ;;  %v11682_v58 = vpop.f32.mrb[21].mxu1 }
 0x7e7   :  { %v1416_v58 = vcombine.low %v1397_v47, %v1413_v49 }
 0x7f9   :  { %2648 = vrot.lane.b32.xlu1 %v12529_v3, %s12427_s24 }
 0x857   :  { %v2380_v10 = vpop.trf.xlu1 }
 0x85b   :  { %v2444_v11 = vpop.trf.xlu1 }
 0x85c   :  { %v2492_v17 = vcombine.low %v2380_v10, %v2444_v11  ;;  %v2493_v18 = vcombine.high %v2380_v10, %v2444_v11  ;;  %v1417_v11 = vcombine.high %v1397_v47, %v1413_v49 }
 0x85e   :  { %v2500_v22 = vrot.slane %v2492_v17, %v12736_v24  ;;  %v2507_v23 = vrot.slane %v2493_v18, %v12736_v24 }
 0x862   :  { %v2412_v13 = vpop.trf.xlu0 }
 0x866   :  { %v2476_v19 = vpop.trf.xlu0 }
 0x867   :  { %v2508_v20 = vcombine.low %v2412_v13, %v2476_v19  ;;  %v2509_v21 = vcombine.high %v2412_v13, %v2476_v19 }
 0x869   :  { %v2516_v25 = vrot.slane %v2508_v20, %v12736_v24  ;;  %v2523_v26 = vrot.slane %v2509_v21, %v12736_v24 }
 0x86b   :  { %v2524_v27 = vcombine.low %v2500_v22, %v2516_v25  ;;  %v2525_v28 = vcombine.high %v2500_v22, %v2516_v25  ;;  %v2540_v29 = vcombine.low %v2507_v23, %v2523_v26  ;;  %v2541_v3 = vcombine.high %v2507_v23, %v2523_v26  ;;  %v2649_v30 = vpop.permute.xlu1 %2648 }
 0x86c   :  { %11684 = vmatpush3.bf16.msra.mxu0 %v2649_v30 }
 0x86d   :  { %v2532_v31 = vrot.slane %v2524_v27, %v12743_v38  ;;  %v2539_v32 = vrot.slane %v2525_v28, %v12743_v38  ;;  %v2548_v33 = vrot.slane %v2540_v29, %v12743_v38  ;;  %v2555_v34 = vrot.slane %v2541_v3, %v12743_v38  ;;  %11685 = vmatprep.subr.bf16.mxu0 %v12425_v1 }
 0x86f   :  { %v2560_v37 = vcombine.low %v2532_v31, %v2539_v32  ;;  %v11262_v39 = vcombine.high %v2532_v31, %v2539_v32  ;;  %v2576_v40 = vcombine.low %v2548_v33, %v2555_v34  ;;  %v11263_v41 = vcombine.high %v2548_v33, %v2555_v34 }
 0x871   :  { %v2567_v42 = vrot.slane %v2560_v37, %v12736_v24  ;;  %v2575_v44 = vrot.slane %v11262_v39, %v12736_v24  ;;  %v2583_v45 = vrot.slane %v2576_v40, %v12736_v24  ;;  %v2591_v46 = vrot.slane %v11263_v41, %v12736_v24 }
 0x873   :  { %v2593_v50 = vcombine.high %v2567_v42, %v2575_v44  ;;  %v2609_v51 = vcombine.high %v2583_v45, %v2591_v46  ;;  %v2592_v52 = vcombine.low %v2567_v42, %v2575_v44  ;;  %v2608_v53 = vcombine.low %v2583_v45, %v2591_v46 }
 0x875   :  { %v2607_v54 = vrot.slane %v2593_v50, %v12743_v38  ;;  %v2623_v55 = vrot.slane %v2609_v51, %v12743_v38  ;;  %v2600_v56 = vrot.slane %v2592_v52, %v12743_v38  ;;  %v2616_v57 = vrot.slane %v2608_v53, %v12743_v38 }
 0x877   :  { %v2626_v48 = vcombine.low %v2607_v54, %v2623_v55  ;;  %v2625_v60 = vcombine.high %v2600_v56, %v2616_v57  ;;  %v2624_v61 = vcombine.low %v2600_v56, %v2616_v57  ;;  %v2627_v10 = vcombine.high %v2607_v54, %v2623_v55  ;;  %v11230_v54 = vld [vmem:[%s13762_s1 + $0x30] sm:$0xff]  ;;  %v11231_v55 = vld [vmem:[%s13762_s1 + $0x38] sm:$0xff] }
 0x879   :  { %v12083_v62 = vpack.i.bf16 %v2626_v48, %v1416_v58  ;;  %v12078_v63 = vpack.i.bf16 %v2625_v60, %v1415_v59  ;;  %v12088_v13 = vpack.i.bf16 %v2627_v10, %v1417_v11  ;;  %v12830_v48 = vpack.c.bf16 %v11231_v55, %v11230_v54  ;;  %v92_v11 = vld [vmem:[#allocation7 + $0x8] sm:$0xff] }
 0x87b   :  { %12084 = vrot.lane.b32.xlu1 %v12083_v62, %s12434_s30  ;;  %12079 = vrot.lane.b32.xlu0 %v12078_v63, %s12423_s25 }
 0x87f   :  { %12089 = vrot.lane.b32.xlu1 %v12088_v13, %s12435_s8  ;;  %v2730_v13 = vrot.slane %v92_v11, %v12532_v4 }
 0x883   :  { %2650 = vrot.lane.b32.xlu1 %v12535_v5, %s12427_s24 }
 0x8ed   :  { %v12085_v17 = vpop.permute.xlu1 %12084  ;;  %v12080_v18 = vpop.permute.xlu0 %12079 }
 0x8ee   :  { %v12082_v19 = vunpack.i.h.bf16 %v12080_v18  ;;  %v12081_v20 = vunpack.i.l.bf16 %v12080_v18  ;;  %v12087_v21 = vunpack.i.h.bf16 %v12085_v17  ;;  %v12086_v22 = vunpack.i.l.bf16 %v12085_v17 }
 0x8f0   :  { %v1430_v23 = vsel %vm389_vm2, %v1414_v9, %v12081_v20  ;;  %v2640_v25 = vsel %vm389_vm2, %v2624_v61, %v12082_v19  ;;  %v2736_v19 = vrot.slane %v92_v11, %v12617_v43 }
 0x8f1   :  { %v12090_v26 = vpop.permute.xlu1 %12089  ;;  %v1432_v5 = vsel %vm1431_vm3, %v1430_v23, %v12086_v22  ;;  %v2641_v29 = vsel %vm1431_vm3, %v2640_v25, %v12087_v21 }
 0x8f2   :  { %v12092_v27 = vunpack.i.h.bf16 %v12090_v26  ;;  %v12091_v28 = vunpack.i.l.bf16 %v12090_v26 }
 0x8f4   :  { %v1434_v3 = vsel %vm1433_vm4, %v1432_v5, %v12091_v28  ;;  %v2642_v30 = vsel %vm1433_vm4, %v2641_v29, %v12092_v27  ;;  %v12314_v27 = vld [vmem:[%s13761_s0 + $0x10] sm:$0xff]  ;;  %v12315_v5 = vld [vmem:[%s13761_s0 + $0x18] sm:$0xff] }
 0x8f5   :  { %v2643_v31 = vpack.c.bf16 %v2642_v30, %v1434_v3  ;;  %v2651_v32 = vpop.permute.xlu1 %2650  ;;  %v12853_v30 = vsub.s32 5, %v12527_v2 }
 0x8f6   :  { %11686 = vmatpush3.bf16.msra.mxu0 %v2651_v32 }
 0x8f9   :  { %11688 = vmatmul.mubr.msk.bf16.vlgmr.msra.gmra.mrb[20].mxu0 %vm108_vm1, %v2643_v31  ;;  %v12855_v31 = vld [vmem:[#allocation7] sm:$0xff] }
 0x8fa   :  { %v2801_v32 = vrot.slane %v12855_v31, %v12853_v30 }
 0x9cc   :  { %v2691_v9 = vpop.f32.mrb[20].mxu0 }
 0x9cd   :  { %v2692_v33 = vadd.f32 %v2691_v9, %v2647_v8  ;;  %v11689_v34 = vpop.f32.mrb[21].mxu0 }
 0x9ce   :  { %v2694_v35 = vpop.f32.mrb[22].mxu0 }
 0x9cf   :  { %v2695_v36 = vadd.f32 %v2694_v35, %v2647_v8  ;;  %v11690_v37 = vpop.f32.mrb[23].mxu0  ;;  %v2698_v39 = vadd.f32 %v2692_v33, %v12540_v6  ;;  %v11229_v6 = vld [vmem:[%s13762_s1 + $0x28] sm:$0xff] }
 0x9d0   :  { %v12818_v44 = vpack.c.bf16 %v11229_v6, %v11228_v12  ;;  %v75_v12 = vld [vmem:[%s13762_s1 + $0x8] sm:$0xff]  ;;  %v12878_v6 = vsub.s32 4, %v12527_v2 }
 0x9d1   :  { %v2700_v40 = vsel %vm108_vm1, %v2698_v39, 0.0  ;;  %v2699_v41 = vadd.f32 %v2695_v36, %v12546_v7 }
 0x9d2   :  { %2701 = vadd.xlane.f32.xlu0 %v2700_v40  ;;  %11703 = vmatprep.mubr.msk.bf16.mxu0 %vm108_vm1, %v12818_v44 }
 0x9d3   :  { %v2703_v42 = vsel %vm108_vm1, %v2699_v41, 0.0 }
 0x9d4   :  { %2704 = vadd.xlane.f32.xlu1 %v2703_v42  ;;  %v74_v42 = vld [vmem:[%s13762_s1] sm:$0xff] }
 0x9e5   :  { %2804 = vrot.lane.b32.xlu1 %v12732_v16, %s12431_s29 }
 0x9e8   :  { %2802 = vrot.lane.b32.xlu0 %v12725_v14, %s12431_s29 }
 0xa5f   :  { %v2702_v7 = vpop.xlane.xlu0 %2701 }
 0xa60   :  { %v2707_v45 = vmul.f32 0.03125, %v2702_v7  ;;  %v12880_v7 = vpack.c.bf16 %v75_v12, %v74_v42 }
 0xa61   :  { %v2705_v46 = vpop.xlane.xlu1 %2704 }
 0xa62   :  { %v2709_v47 = vsub.f32 %v2698_v39, %v2707_v45  ;;  %v2708_v49 = vmul.f32 0.03125, %v2705_v46 }
 0xa63   :  { %v2803_v50 = vpop.permute.xlu0 %2802 }
 0xa64   :  { %v2710_v51 = vsub.f32 %v2699_v41, %v2708_v49  ;;  %11699 = vmatprep.subr.bf16.mxu0 %v2803_v50  ;;  %v2711_v52 = vmul.f32 %v2709_v47, %v2709_v47 }
 0xa65   :  { %11700 = vmatpush3.bf16.msra.mxu0 %v2803_v50  ;;  %v2805_v53 = vpop.permute.xlu1 %2804 }
 0xa66   :  { %v2713_v56 = vsel %vm108_vm1, %v2711_v52, 0.0  ;;  %11701 = vmatprep.subr.bf16.mxu0 %v2805_v53  ;;  %v2712_v57 = vmul.f32 %v2710_v51, %v2710_v51 }
 0xa67   :  { %2714 = vadd.xlane.f32.xlu0 %v2713_v56 }
 0xa68   :  { %v2716_v58 = vsel %vm108_vm1, %v2712_v57, 0.0 }
 0xa69   :  { %2717 = vadd.xlane.f32.xlu1 %v2716_v58  ;;  %11702 = vmatpush3.bf16.msra.mxu0 %v2805_v53 }
 0xa6a   :  { %11715 = vmatprep.subr.mxu0 %v12425_v1 }
 0xa6c   :  { %11704 = vmatmul.mubr.msk.bf16.vlgmr.msra.gmra.mrb[24].mxu0 %vm108_vm1, %v12830_v48 }
 0xa6d   :  { %11717 = vmatprep.mubr.msk.f32.mxu0 %vm12426_vm0, %v12425_v1 }
 0xaf4   :  { %v2715_v59 = vpop.xlane.xlu0 %2714 }
 0xaf5   :  { %v2719_v60 = vmul.f32 0.03125, %v2715_v59 }
 0xaf6   :  { %v2718_v61 = vpop.xlane.xlu1 %2717 }
 0xaf7   :  { %v2721_v62 = vadd.f32 1e-05, %v2719_v60  ;;  %v2720_v63 = vmul.f32 0.03125, %v2718_v61  ;;  %v76_v60 = vld [vmem:[%s13762_s1 + $0x10] sm:$0xff]  ;;  %v77_v61 = vld [vmem:[%s13762_s1 + $0x18] sm:$0xff] }
 0xaf9   :  { %12194 = vrsqrt.f32 %v2721_v62  ;;  %v2722_v10 = vadd.f32 1e-05, %v2720_v63  ;;  %v12903_v62 = vpack.c.bf16 %v77_v61, %v76_v60 }
 0xafb   :  { %12196 = vrsqrt.f32 %v2722_v10 }
 0xb03   :  { %v12195_v17 = vpop.eup %12194 }
 0xb04   :  { %v2725_v18 = vmul.f32 %v12195_v17, %v2709_v47 }
 0xb05   :  { %v12197_v20 = vpop.eup %12196 }
 0xb06   :  { %v2731_v21 = vmul.f32 %v2730_v13, %v2725_v18  ;;  %v2726_v22 = vmul.f32 %v12197_v20, %v2710_v51  ;;  %v12923_v20 = vsub.s32 6, %v12527_v2 }
 0xb08   :  { %v2732_v23 = vmul.f32 %v2730_v13, %v2726_v22  ;;  %v12839_v25 = vadd.f32 %v2736_v19, %v2731_v21  ;;  %v2866_v21 = vrot.slane %v12855_v31, %v12923_v20 }
 0xb0a   :  { %v12841_v26 = vadd.f32 %v2736_v19, %v2732_v23  ;;  %v2739_v28 = vadd.f32 %v12314_v27, %v12839_v25 }
 0xb0c   :  { %v2740_v29 = vadd.f32 %v12315_v5, %v12841_v26 }
 0xb0e   :  { %v2741_v3 = vpack.c.bf16 %v2740_v29, %v2739_v28 }
 0xb10   :  { %11696 = vmatmul.mubr.msk.bf16.vlgmr.msra.gmra.mrb[24].mxu1 %vm108_vm1, %v2741_v3 }
 0xb11   :  { %11711 = vmatprep.mubr.msk.bf16.mxu1 %vm108_vm1, %v12880_v7 }
 0xb3f   :  { %v11705_v8 = vpop.f32.mrb[24].mxu0 }
 0xb40   :  { %v12859_v9 = vadd.f32 %v11705_v8, %v2801_v32  ;;  %v2848_v33 = vpop.f32.mrb[25].mxu0 }
 0xb41   :  { %v2849_v34 = vadd.f32 %v2848_v33, %v2801_v32  ;;  %v11706_v35 = vpop.f32.mrb[26].mxu0 }
 0xb42   :  { %v12861_v36 = vadd.f32 %v11706_v35, %v2801_v32  ;;  %v2851_v37 = vpop.f32.mrb[27].mxu0 }
 0xb43   :  { %v2852_v39 = vadd.f32 %v2851_v37, %v2801_v32  ;;  %2938 = vrot.lane.b32.xlu0 %v2849_v34, %s12429_s27 }
 0xb45   :  { %2940 = vrot.lane.b32.xlu1 %v2852_v39, %s12429_s27 }
 0xb47   :  { %2944 = vrot.lane.b32.xlu0 %v2849_v34, %s12428_s26 }
 0xb49   :  { %2950 = vrot.lane.b32.xlu1 %v2849_v34, %s12430_s28 }
 0xb4b   :  { %2946 = vrot.lane.b32.xlu0 %v2852_v39, %s12428_s26 }
 0xb4d   :  { %2952 = vrot.lane.b32.xlu1 %v2852_v39, %s12430_s28 }
 0xb76   :  { %2976 = vxpose.xlu1.b32.start [1/2] (short) (narrow) %v2849_v34, 8 }
 0xb7a   :  { %2977 = vxpose.xlu1.b32.end [2/2] (short) (narrow) %v2852_v39, 8 }
 0xb98   :  { %2869 = vrot.lane.b32.xlu1 %v12732_v16, %s12419_s11  ;;  %v2745_v16 = vrot.slane %v12855_v31, %v12878_v6 }
 0xbb5   :  { %v2939_v40 = vpop.permute.xlu0 %2938 }
 0xbb6   :  { %3008 = vxpose.xlu0.b32.start [1/2] (short) (narrow) %v2939_v40, 8 }
 0xbb7   :  { %v2941_v41 = vpop.permute.xlu1 %2940 }
 0xbba   :  { %3009 = vxpose.xlu0.b32.end [2/2] (short) (narrow) %v2941_v41, 8 }
 0xbbb   :  { %v2951_v53 = vpop.permute.xlu1 %2950 }
 0xbbf   :  { %v2953_v54 = vpop.permute.xlu1 %2952 }
 0xbe3   :  { %2867 = vrot.lane.b32.xlu0 %v12725_v14, %s12419_s11  ;;  %v2791_v45 = vpop.f32.mrb[24].mxu1  ;;  %v2945_v14 = vpop.permute.xlu0 %2944 }
 0xbe4   :  { %v2792_v46 = vadd.f32 %v2791_v45, %v2745_v16  ;;  %v11697_v47 = vpop.f32.mrb[25].mxu1 }
 0xbe5   :  { %v2794_v49 = vpop.f32.mrb[26].mxu1 }
 0xbe6   :  { %v2928_v50 = vmul.f32 0.35355338, %v2792_v46  ;;  %v12888_v51 = vadd.f32 %v2794_v49, %v2745_v16  ;;  %v11698_v52 = vpop.f32.mrb[27].mxu1 }
 0xbe7   :  { %v2947_v56 = vpop.permute.xlu0 %2946 }
 0xbe8   :  { %2932 = vrot.lane.b32.xlu1 %v2928_v50, %s12428_s26  ;;  %2930 = vrot.lane.b32.xlu0 %v2928_v50, %s12429_s27  ;;  %v12946_v46 = vmul.f32 0.35355338, %v12888_v51 }
 0xbec   :  { %2934 = vrot.lane.b32.xlu0 %v2928_v50, %s12430_s28 }
 0xbf6   :  { %v2992_v55 = vpop.trf.xlu1 }
 0xbf7   :  { %11716 = vmatpush3.msra.mxu0 %v2992_v55 }
 0xbf8   :  { %11718 = vmatmul.mubr.msk.f32.vlgmr.msra.gmra.mrb[18].mxu0 %vm389_vm2, %v2928_v50  ;;  %11725 = vmatprep.subr.mxu0 %v12425_v1 }
 0xbf9   :  { %11727 = vmatprep.mubr.msk.f32.mxu0 %vm12426_vm0, %v12425_v1 }
 0xc0a   :  { %3040 = vxpose.xlu0.b32.start [1/2] (short) (narrow) %v2945_v14, 8  ;;  %v2870_v59 = vpop.permute.xlu1 %2869 }
 0xc0e   :  { %3041 = vxpose.xlu0.b32.end [2/2] (short) (narrow) %v2947_v56, 8 }
 0xc11   :  { %3072 = vxpose.xlu1.b32.start [1/2] (short) (narrow) %v2951_v53, 8 }
 0xc15   :  { %3073 = vxpose.xlu1.b32.end [2/2] (short) (narrow) %v2953_v54, 8 }
 0xc36   :  { %v3024_v57 = vpop.trf.xlu0 }
 0xc55   :  { %v2868_v58 = vpop.permute.xlu0 %2867 }
 0xc56   :  { %11707 = vmatprep.subr.bf16.mxu1 %v2868_v58 }
 0xc57   :  { %11708 = vmatpush3.bf16.msra.mxu1 %v2868_v58 }
 0xc58   :  { %11709 = vmatprep.subr.bf16.mxu1 %v2870_v59 }
 0xc5a   :  { %v2931_v63 = vpop.permute.xlu0 %2930  ;;  %v2933_v13 = vpop.permute.xlu1 %2932 }
 0xc5b   :  { %11710 = vmatpush3.bf16.msra.mxu1 %v2870_v59 }
 0xc5c   :  { %11720 = vmatprep.subr.mxu1 %v12425_v1 }
 0xc5e   :  { %11712 = vmatmul.mubr.msk.bf16.vlgmr.msra.gmra.mrb[28].mxu1 %vm108_vm1, %v12903_v62  ;;  %v2935_v10 = vpop.permute.xlu0 %2934 }
 0xc5f   :  { %11721 = vmatpush3.msra.mxu1 %v3024_v57  ;;  %11722 = vmatprep.mubr.msk.f32.mxu1 %vm12426_vm0, %v12425_v1 }
 0xc60   :  { %11730 = vmatprep.subr.mxu1 %v12425_v1 }
 0xc66   :  { %11723 = vmatmul.mubr.msk.f32.vlgmr.msra.gmra.mrb[22].mxu1 %vm389_vm2, %v2931_v63 }
 0xc67   :  { %11732 = vmatprep.mubr.msk.f32.mxu1 %vm12426_vm0, %v12425_v1 }
 0xc8a   :  { %v3056_v11 = vpop.trf.xlu0 }
 0xc8b   :  { %11726 = vmatpush3.msra.mxu0 %v3056_v11 }
 0xc8c   :  { %11728 = vmatmul.mubr.msk.f32.vlgmr.msra.gmra.mrb[28].mxu0 %vm389_vm2, %v2933_v13  ;;  %11735 = vmatprep.subr.mxu0 %v12425_v1 }
 0xc8d   :  { %11737 = vmatprep.mubr.msk.f32.mxu0 %vm12426_vm0, %v12425_v1 }
 0xc91   :  { %v3088_v17 = vpop.trf.xlu1 }
 0xc92   :  { %11731 = vmatpush3.msra.mxu1 %v3088_v17 }
 0xc93   :  { %11733 = vmatmul.mubr.msk.f32.vlgmr.msra.gmra.mrb[32].mxu1 %vm389_vm2, %v2935_v10  ;;  %11740 = vmatprep.subr.mxu1 %v12425_v1 }
 0xc94   :  { %11742 = vmatprep.mubr.msk.f32.mxu1 %vm12426_vm0, %v12425_v1 }
 0xccb   :  { %v3172_v18 = vpop.f32.mrb[18].mxu0 }
 0xccc   :  { %v11719_v19 = vpop.f32.mrb[19].mxu0  ;;  %v3392_v42 = vsel %vm1431_vm3, %v3172_v18, -inf }
 0xd31   :  { %v11713_v22 = vpop.f32.mrb[28].mxu1 }
 0xd32   :  { %v12927_v23 = vadd.f32 %v11713_v22, %v2866_v21  ;;  %v2913_v27 = vpop.f32.mrb[29].mxu1 }
 0xd33   :  { %v2914_v28 = vadd.f32 %v2913_v27, %v2866_v21  ;;  %v11714_v5 = vpop.f32.mrb[30].mxu1 }
 0xd34   :  { %v12929_v29 = vadd.f32 %v11714_v5, %v2866_v21  ;;  %v2916_v3 = vpop.f32.mrb[31].mxu1 }
 0xd35   :  { %v2917_v32 = vadd.f32 %v2916_v3, %v2866_v21  ;;  %2958 = vrot.lane.b32.xlu0 %v2914_v28, %s12429_s27 }
 0xd37   :  { %2960 = vrot.lane.b32.xlu1 %v2917_v32, %s12429_s27 }
 0xd39   :  { %v3244_v8 = vpop.f32.mrb[22].mxu1 }
 0xd3a   :  { %v11724_v33 = vpop.f32.mrb[23].mxu1  ;;  %v3395_v34 = vsel %vm1431_vm3, %v3244_v8, -inf }
 0xd53   :  { %3436 = vxpose.xlu0.b32.start [1/2] (short) (narrow) %v2914_v28, 8 }
 0xd57   :  { %3437 = vxpose.xlu0.b32.end [2/2] (short) (narrow) %v2917_v32, 8 }
 0xd5b   :  { %3396 = vmax.xlane.f32.xlu1 %v3395_v34 }
 0xd5f   :  { %v3316_v35 = vpop.f32.mrb[28].mxu0 }
 0xd60   :  { %v11729_v37 = vpop.f32.mrb[29].mxu0  ;;  %v3398_v12 = vsel %vm1431_vm3, %v3316_v35, -inf }
 0xd66   :  { %v3388_v39 = vpop.f32.mrb[32].mxu1 }
 0xd67   :  { %v11734_v40 = vpop.f32.mrb[33].mxu1  ;;  %v3401_v41 = vsel %vm1431_vm3, %v3388_v39, -inf }
 0xd68   :  { %3402 = vmax.xlane.f32.xlu1 %v3401_v41 }
 0xd84   :  { %3393 = vmax.xlane.f32.xlu0 %v3392_v42 }
 0xd88   :  { %3399 = vmax.xlane.f32.xlu0 %v3398_v12 }
 0xda7   :  { %v2959_v16 = vpop.permute.xlu0 %2958 }
 0xda8   :  { %3468 = vxpose.xlu1.b32.start [1/2] (short) (narrow) %v2959_v16, 8 }
 0xda9   :  { %v2961_v45 = vpop.permute.xlu1 %2960 }
 0xdac   :  { %3469 = vxpose.xlu1.b32.end [2/2] (short) (narrow) %v2961_v45, 8 }
 0xdca   :  { %2964 = vrot.lane.b32.xlu1 %v2914_v28, %s12428_s26 }
 0xdce   :  { %2966 = vrot.lane.b32.xlu1 %v2917_v32, %s12428_s26 }
 0xdd2   :  { %4159 = vrot.lane.b32.xlu1 %v12861_v36, %s12429_s27 }
 0xdd3   :  { %v3452_v47 = vpop.trf.xlu0 }
 0xdd6   :  { %4169 = vrot.lane.b32.xlu1 %v12859_v9, %s12430_s28 }
 0xdda   :  { %4165 = vrot.lane.b32.xlu1 %v12861_v36, %s12428_s26 }
 0xdde   :  { %4149 = vrot.lane.b32.xlu1 %v12946_v46, %s12429_s27 }
 0xde2   :  { %4153 = vrot.lane.b32.xlu1 %v12946_v46, %s12430_s28 }
 0xde8   :  { %v3397_v58 = vpop.xlane.xlu1 %3396 }
 0xde9   :  { %v3405_v10 = vsub.f32 %v3244_v8, %v3397_v58 }
 0xdeb   :  { %v3410_v11 = vmul.f32 1.442695, %v3405_v10 }
 0xdf5   :  { %v3403_v59 = vpop.xlane.xlu1 %3402 }
 0xdf6   :  { %v3407_v13 = vsub.f32 %v3388_v39, %v3403_v59 }
 0xdf8   :  { %v3414_v17 = vmul.f32 1.442695, %v3407_v13 }
 0xe11   :  { %v3394_v49 = vpop.xlane.xlu0 %3393 }
 0xe12   :  { %v3404_v50 = vsub.f32 %v3172_v18, %v3394_v49 }
 0xe14   :  { %v3408_v52 = vmul.f32 1.442695, %v3404_v50 }
 0xe15   :  { %v3400_v53 = vpop.xlane.xlu0 %3399 }
 0xe16   :  { %12198 = vpow2.f32 %v3408_v52  ;;  %v3406_v54 = vsub.f32 %v3316_v35, %v3400_v53 }
 0xe18   :  { %v3412_v55 = vmul.f32 1.442695, %v3406_v54 }
 0xe1a   :  { %12200 = vpow2.f32 %v3412_v55 }
 0xe1b   :  { %12202 = vpow2.f32 %v3410_v11 }
 0xe1c   :  { %12204 = vpow2.f32 %v3414_v17 }
 0xe20   :  { %v12199_v14 = vpop.eup %12198 }
 0xe21   :  { %v3416_v56 = vsel %vm1431_vm3, %v12199_v14, 0.0 }
 0xe22   :  { %3417 = vadd.xlane.f32.xlu1 %v3416_v56 }
 0xe24   :  { %v12201_v51 = vpop.eup %12200 }
 0xe25   :  { %v3422_v57 = vsel %vm1431_vm3, %v12201_v51, 0.0  ;;  %v12203_v19 = vpop.eup %12202 }
 0xe26   :  { %3423 = vadd.xlane.f32.xlu1 %v3422_v57  ;;  %v3419_v22 = vsel %vm1431_vm3, %v12203_v19, 0.0  ;;  %v12205_v27 = vpop.eup %12204 }
 0xe28   :  { %v12954_v60 = vpop.trf.xlu1 }
 0xe3c   :  { %v2965_v61 = vpop.permute.xlu1 %2964 }
 0xe3d   :  { %3500 = vxpose.xlu0.b32.start [1/2] (short) (narrow) %v2965_v61, 8 }
 0xe40   :  { %v2967_v63 = vpop.permute.xlu1 %2966 }
 0xe41   :  { %3501 = vxpose.xlu0.b32.end [2/2] (short) (narrow) %v2967_v63, 8 }
 0xe44   :  { %v4160_v18 = vpop.permute.xlu1 %4159 }
 0xe48   :  { %v4170_v21 = vpop.permute.xlu1 %4169 }
 0xe59   :  { %4195 = vxpose.xlu1.b32.start [1/2] (short) (narrow) %v12859_v9, 8 }
 0xe5d   :  { %4196 = vxpose.xlu1.b32.end [2/2] (short) (narrow) %v12861_v36, 8 }
 0xe6a   :  { %2970 = vrot.lane.b32.xlu0 %v2914_v28, %s12430_s28  ;;  %v3425_v28 = vsel %vm1431_vm3, %v12205_v27, 0.0 }
 0xe6e   :  { %2972 = vrot.lane.b32.xlu0 %v2917_v32, %s12430_s28 }
 0xe72   :  { %4157 = vrot.lane.b32.xlu0 %v12859_v9, %s12429_s27 }
 0xe76   :  { %4163 = vrot.lane.b32.xlu0 %v12859_v9, %s12428_s26  ;;  %v4166_v9 = vpop.permute.xlu1 %4165 }
 0xe7a   :  { %4171 = vrot.lane.b32.xlu0 %v12861_v36, %s12430_s28  ;;  %v4150_v36 = vpop.permute.xlu1 %4149 }
 0xe7e   :  { %4151 = vrot.lane.b32.xlu0 %v12946_v46, %s12428_s26  ;;  %v12970_v5 = vpop.permute.xlu1 %4153 }
 0xe9d   :  { %3420 = vadd.xlane.f32.xlu0 %v3419_v22 }
 0xea1   :  { %3426 = vadd.xlane.f32.xlu0 %v3425_v28 }
 0xeaf   :  { %v3418_v3 = vpop.xlane.xlu1 %3417 }
 0xeb0   :  { %12206 = vrcp.f32 %v3418_v3 }
 0xeb3   :  { %v3424_v32 = vpop.xlane.xlu1 %3423 }
 0xeb4   :  { %12208 = vrcp.f32 %v3424_v32 }
 0xeba   :  { %v12207_v8 = vpop.eup %12206 }
 0xebb   :  { %v3429_v33 = vmul.f32 %v12207_v8, %v12199_v14 }
 0xebd   :  { %11736 = vmatpush3.xpose.msk.msra.mxu0 %vm1431_vm3, %v3429_v33  ;;  %v3516_v37 = vpop.trf.xlu0 }
 0xebe   :  { %v12209_v34 = vpop.eup %12208  ;;  %11745 = vmatprep.subr.mxu0 %v12425_v1 }
 0xebf   :  { %v3433_v35 = vmul.f32 %v12209_v34, %v12201_v51 }
 0xec0   :  { %11738 = vmatmul.mubr.msk.f32.vlgmr.msra.gmra.mrb[30].mxu0 %vm1431_vm3, %v3452_v47 }
 0xec1   :  { %11746 = vmatpush3.xpose.msk.msra.mxu0 %vm1431_vm3, %v3433_v35  ;;  %11747 = vmatprep.mubr.msk.f32.mxu0 %vm12426_vm0, %v12425_v1 }
 0xec2   :  { %11755 = vmatprep.subr.mxu0 %v12425_v1 }
 0xec4   :  { %11748 = vmatmul.mubr.msk.f32.vlgmr.msra.gmra.mrb[32].mxu0 %vm1431_vm3, %v3516_v37 }
 0xec5   :  { %11757 = vmatprep.mubr.msk.f32.mxu0 %vm12426_vm0, %v12425_v1 }
 0xed9   :  { %v4211_v39 = vpop.trf.xlu1 }
 0xeda   :  { %11756 = vmatpush3.msra.mxu0 %v4211_v39 }
 0xedb   :  { %11758 = vmatmul.mubr.msk.f32.vlgmr.msra.gmra.mrb[34].mxu0 %vm389_vm2, %v12946_v46  ;;  %11765 = vmatprep.subr.mxu0 %v12425_v1 }
 0xedc   :  { %v2971_v40 = vpop.permute.xlu0 %2970  ;;  %11767 = vmatprep.mubr.msk.f32.mxu0 %vm12426_vm0, %v12425_v1 }
 0xedd   :  { %3532 = vxpose.xlu0.b32.start [1/2] (short) (narrow) %v2971_v40, 8 }
 0xee0   :  { %v2973_v41 = vpop.permute.xlu0 %2972 }
 0xee1   :  { %3533 = vxpose.xlu0.b32.end [2/2] (short) (narrow) %v2973_v41, 8 }
 0xee4   :  { %v4158_v42 = vpop.permute.xlu0 %4157 }
 0xee5   :  { %4227 = vxpose.xlu0.b32.start [1/2] (short) (narrow) %v4158_v42, 8 }
 0xee8   :  { %v4164_v12 = vpop.permute.xlu0 %4163 }
 0xee9   :  { %4228 = vxpose.xlu0.b32.end [2/2] (short) (narrow) %v4160_v18, 8  ;;  %4259 = vxpose.xlu1.b32.start [1/2] (short) (narrow) %v4164_v12, 8 }
 0xeec   :  { %v4172_v16 = vpop.permute.xlu0 %4171 }
 0xeed   :  { %4291 = vxpose.xlu0.b32.start [1/2] (short) (narrow) %v4170_v21, 8  ;;  %4260 = vxpose.xlu1.b32.end [2/2] (short) (narrow) %v4166_v9, 8 }
 0xef0   :  { %v4152_v45 = vpop.permute.xlu0 %4151 }
 0xef1   :  { %4292 = vxpose.xlu0.b32.end [2/2] (short) (narrow) %v4172_v16, 8 }
 0xf2a   :  { %v3421_v46 = vpop.xlane.xlu0 %3420 }
 0xf2b   :  { %12210 = vrcp.f32 %v3421_v46 }
 0xf2e   :  { %v3427_v47 = vpop.xlane.xlu0 %3426 }
 0xf2f   :  { %12212 = vrcp.f32 %v3427_v47 }
 0xf35   :  { %v12211_v49 = vpop.eup %12210 }
 0xf36   :  { %v3431_v50 = vmul.f32 %v12211_v49, %v12203_v19 }
 0xf38   :  { %11741 = vmatpush3.xpose.msk.msra.mxu1 %vm1431_vm3, %v3431_v50 }
 0xf39   :  { %v12213_v52 = vpop.eup %12212  ;;  %11750 = vmatprep.subr.mxu1 %v12425_v1 }
 0xf3a   :  { %v3435_v53 = vmul.f32 %v12213_v52, %v12205_v27 }
 0xf3b   :  { %11743 = vmatmul.mubr.msk.f32.vlgmr.msra.gmra.mrb[34].mxu1 %vm1431_vm3, %v12954_v60 }
 0xf3c   :  { %11751 = vmatpush3.xpose.msk.msra.mxu1 %vm1431_vm3, %v3435_v53  ;;  %11752 = vmatprep.mubr.msk.f32.mxu1 %vm12426_vm0, %v12425_v1 }
 0xf3d   :  { %11760 = vmatprep.subr.mxu1 %v12425_v1 }
 0xf5d   :  { %v3548_v54 = vpop.trf.xlu0 }
 0xf5e   :  { %11753 = vmatmul.mubr.msk.f32.vlgmr.msra.gmra.mrb[36].mxu1 %vm1431_vm3, %v3548_v54 }
 0xf5f   :  { %11762 = vmatprep.mubr.msk.f32.mxu1 %vm12426_vm0, %v12425_v1 }
 0xf65   :  { %v4243_v55 = vpop.trf.xlu0 }
 0xf66   :  { %11761 = vmatpush3.msra.mxu1 %v4243_v55 }
 0xf67   :  { %11763 = vmatmul.mubr.msk.f32.vlgmr.msra.gmra.mrb[38].mxu1 %vm389_vm2, %v4150_v36  ;;  %11770 = vmatprep.subr.mxu1 %v12425_v1 }
 0xf68   :  { %11772 = vmatprep.mubr.msk.f32.mxu1 %vm12426_vm0, %v12425_v1 }
 0xf69   :  { %v4275_v14 = vpop.trf.xlu1 }
 0xf6a   :  { %11766 = vmatpush3.msra.mxu0 %v4275_v14 }
 0xf6b   :  { %11768 = vmatmul.mubr.msk.f32.vlgmr.msra.gmra.mrb[36].mxu0 %vm389_vm2, %v4152_v45  ;;  %11775 = vmatprep.subr.mxu0 %v12425_v1 }
 0xf6c   :  { %11777 = vmatprep.mubr.msk.f32.mxu0 %vm12426_vm0, %v12425_v1 }
 0xf6d   :  { %v4307_v56 = vpop.trf.xlu0 }
 0xf6e   :  { %11771 = vmatpush3.msra.mxu1 %v4307_v56 }
 0xf6f   :  { %11773 = vmatmul.mubr.msk.f32.vlgmr.msra.gmra.mrb[40].mxu1 %vm389_vm2, %v12970_v5  ;;  %11780 = vmatprep.subr.mxu1 %v12425_v1 }
 0xf70   :  { %11782 = vmatprep.mubr.msk.f32.mxu1 %vm12426_vm0, %v12425_v1 }
 0xf93   :  { %v13011_v51 = vpop.f32.mrb[30].mxu0 }
 0xf94   :  { %v11739_v57 = vpop.f32.mrb[31].mxu0 }
 0xf97   :  { %v13013_v58 = vpop.f32.mrb[32].mxu0 }
 0xf98   :  { %v11749_v59 = vpop.f32.mrb[33].mxu0 }
 0xfae   :  { %v4391_v60 = vpop.f32.mrb[34].mxu0 }
 0xfaf   :  { %v11759_v61 = vpop.f32.mrb[35].mxu0  ;;  %v4611_v63 = vsel %vm1431_vm3, %v4391_v60, -inf }
 0xfb0   :  { %4612 = vmax.xlane.f32.xlu1 %v4611_v63 }
0x100e   :  { %v13016_v10 = vpop.f32.mrb[34].mxu1 }
0x100f   :  { %v11744_v11 = vpop.f32.mrb[35].mxu1 }
0x1031   :  { %v13018_v13 = vpop.f32.mrb[36].mxu1 }
0x1032   :  { %v11754_v17 = vpop.f32.mrb[37].mxu1 }
0x103a   :  { %v4463_v18 = vpop.f32.mrb[38].mxu1 }
0x103b   :  { %v11764_v19 = vpop.f32.mrb[39].mxu1  ;;  %v4614_v21 = vsel %vm1431_vm3, %v4463_v18, -inf }
0x103c   :  { %4615 = vmax.xlane.f32.xlu0 %v4614_v21 }
0x103d   :  { %v4613_v3 = vpop.xlane.xlu1 %4612 }
0x103e   :  { %v4535_v22 = vpop.f32.mrb[36].mxu0  ;;  %v4623_v32 = vsub.f32 %v4391_v60, %v4613_v3 }
0x103f   :  { %v11769_v27 = vpop.f32.mrb[37].mxu0  ;;  %v4617_v9 = vsel %vm1431_vm3, %v4535_v22, -inf }
0x1040   :  { %4618 = vmax.xlane.f32.xlu1 %v4617_v9  ;;  %v4627_v8 = vmul.f32 1.442695, %v4623_v32 }
0x1042   :  { %v4607_v28 = vpop.f32.mrb[40].mxu1  ;;  %12214 = vpow2.f32 %v4627_v8 }
0x1043   :  { %v11774_v36 = vpop.f32.mrb[41].mxu1  ;;  %v4620_v5 = vsel %vm1431_vm3, %v4607_v28, -inf }
0x1044   :  { %4621 = vmax.xlane.f32.xlu1 %v4620_v5 }
0x104c   :  { %v12215_v33 = vpop.eup %12214 }
0x104d   :  { %v4635_v34 = vsel %vm1431_vm3, %v12215_v33, 0.0 }
0x1052   :  { %4179 = vrot.lane.b32.xlu0 %v12929_v29, %s12429_s27 }
0x1055   :  { %4177 = vrot.lane.b32.xlu1 %v12927_v23, %s12429_s27 }
0x1056   :  { %4185 = vrot.lane.b32.xlu0 %v12929_v29, %s12428_s26 }
0x1059   :  { %4183 = vrot.lane.b32.xlu1 %v12927_v23, %s12428_s26 }
0x105d   :  { %4189 = vrot.lane.b32.xlu1 %v12927_v23, %s12430_s28 }
0x1061   :  { %4191 = vrot.lane.b32.xlu1 %v12929_v29, %s12430_s28 }
0x1075   :  { %4636 = vadd.xlane.f32.xlu0 %v4635_v34 }
0x10c9   :  { %v4616_v35 = vpop.xlane.xlu0 %4615 }
0x10ca   :  { %v4624_v37 = vsub.f32 %v4463_v18, %v4616_v35 }
0x10cc   :  { %v4629_v39 = vmul.f32 1.442695, %v4624_v37 }
0x10cd   :  { %v4619_v40 = vpop.xlane.xlu1 %4618  ;;  %v4180_v54 = vpop.permute.xlu0 %4179 }
0x10ce   :  { %12216 = vpow2.f32 %v4629_v39  ;;  %v4625_v41 = vsub.f32 %v4535_v22, %v4619_v40 }
0x10d0   :  { %v4631_v42 = vmul.f32 1.442695, %v4625_v41 }
0x10d1   :  { %v4622_v12 = vpop.xlane.xlu1 %4621  ;;  %v4186_v55 = vpop.permute.xlu0 %4185 }
0x10d2   :  { %12218 = vpow2.f32 %v4631_v42  ;;  %v4626_v16 = vsub.f32 %v4607_v28, %v4622_v12 }
0x10d4   :  { %v4633_v45 = vmul.f32 1.442695, %v4626_v16 }
0x10d5   :  { %v4178_v56 = vpop.permute.xlu1 %4177 }
0x10d6   :  { %12220 = vpow2.f32 %v4633_v45 }
0x10d8   :  { %v12217_v46 = vpop.eup %12216 }
0x10d9   :  { %v4638_v47 = vsel %vm1431_vm3, %v12217_v46, 0.0  ;;  %v4184_v57 = vpop.permute.xlu1 %4183 }
0x10da   :  { %4639 = vadd.xlane.f32.xlu1 %v4638_v47 }
0x10dc   :  { %v12219_v49 = vpop.eup %12218 }
0x10dd   :  { %v4641_v50 = vsel %vm1431_vm3, %v12219_v49, 0.0  ;;  %v4190_v61 = vpop.permute.xlu1 %4189 }
0x10de   :  { %4642 = vadd.xlane.f32.xlu0 %v4641_v50 }
0x10e0   :  { %v12221_v52 = vpop.eup %12220 }
0x10e1   :  { %v4644_v53 = vsel %vm1431_vm3, %v12221_v52, 0.0  ;;  %v4192_v63 = vpop.permute.xlu1 %4191 }
0x10e2   :  { %4645 = vadd.xlane.f32.xlu0 %v4644_v53 }
0x1102   :  { %v4637_v14 = vpop.xlane.xlu0 %4636 }
0x1103   :  { %12222 = vrcp.f32 %v4637_v14 }
0x110d   :  { %v12223_v59 = vpop.eup %12222  ;;  %4655 = vxpose.xlu1.b32.start [1/2] (short) (narrow) %v12927_v23, 8 }
0x110e   :  { %v4648_v60 = vmul.f32 %v12223_v59, %v12215_v33 }
0x110f   :  { %4687 = vxpose.xlu0.b32.start [1/2] (short) (narrow) %v4178_v56, 8 }
0x1110   :  { %11776 = vmatpush3.xpose.msk.msra.mxu0 %vm1431_vm3, %v4648_v60 }
0x1111   :  { %4656 = vxpose.xlu1.b32.end [2/2] (short) (narrow) %v12929_v29, 8  ;;  %11785 = vmatprep.subr.mxu0 %v12425_v1 }
0x1113   :  { %4688 = vxpose.xlu0.b32.end [2/2] (short) (narrow) %v4180_v54, 8 }
0x1115   :  { %4751 = vxpose.xlu1.b32.start [1/2] (short) (narrow) %v4190_v61, 8 }
0x1117   :  { %4719 = vxpose.xlu0.b32.start [1/2] (short) (narrow) %v4184_v57, 8 }
0x1119   :  { %4752 = vxpose.xlu1.b32.end [2/2] (short) (narrow) %v4192_v63, 8 }
0x111b   :  { %4720 = vxpose.xlu0.b32.end [2/2] (short) (narrow) %v4186_v55, 8 }
0x111d   :  { %3900 = vxpose.xlu1.b32.start.end [1/1] (short) (narrow) %v13016_v10, 8 }
0x111f   :  { %3868 = vxpose.xlu0.b32.start.end [1/1] (short) (narrow) %v13011_v51, 8 }
0x1121   :  { %3964 = vxpose.xlu1.b32.start.end [1/1] (short) (narrow) %v13018_v13, 8 }
0x1123   :  { %3932 = vxpose.xlu0.b32.start.end [1/1] (short) (narrow) %v13013_v58, 8 }
0x1167   :  { %v4640_v23 = vpop.xlane.xlu1 %4639 }
0x1168   :  { %12224 = vrcp.f32 %v4640_v23 }
0x116b   :  { %v4643_v17 = vpop.xlane.xlu0 %4642 }
0x116c   :  { %12226 = vrcp.f32 %v4643_v17 }
0x116f   :  { %v4646_v18 = vpop.xlane.xlu0 %4645 }
0x1170   :  { %12228 = vrcp.f32 %v4646_v18 }
0x1172   :  { %v12225_v29 = vpop.eup %12224 }
0x1173   :  { %v4650_v11 = vmul.f32 %v12225_v29, %v12217_v46 }
0x1175   :  { %11781 = vmatpush3.xpose.msk.msra.mxu1 %vm1431_vm3, %v4650_v11 }
0x1176   :  { %11790 = vmatprep.subr.mxu1 %v12425_v1  ;;  %v12227_v19 = vpop.eup %12226 }
0x1177   :  { %v4652_v51 = vmul.f32 %v12227_v19, %v12219_v49 }
0x117a   :  { %v12229_v10 = vpop.eup %12228 }
0x117b   :  { %v4654_v13 = vmul.f32 %v12229_v10, %v12221_v52 }
0x118d   :  { %v4671_v21 = vpop.trf.xlu1 }
0x118e   :  { %11778 = vmatmul.mubr.msk.f32.vlgmr.msra.gmra.mrb[38].mxu0 %vm1431_vm3, %v4671_v21 }
0x118f   :  { %11786 = vmatpush3.xpose.msk.msra.mxu0 %vm1431_vm3, %v4652_v51  ;;  %v4703_v58 = vpop.trf.xlu0  ;;  %11787 = vmatprep.mubr.msk.f32.mxu0 %vm12426_vm0, %v12425_v1  ;;  %v12317_v51 = vld [vmem:[#allocation2 + $0x4] ss:$8 sps:$4 sm:$0xff]  }
0x1190   :  { %11783 = vmatmul.mubr.msk.f32.vlgmr.msra.gmra.mrb[42].mxu1 %vm1431_vm3, %v4703_v58  ;;  %11795 = vmatprep.subr.bf16.mxu0 %v12425_v1  ;;  %v12318_v58 = vld [vmem:[#allocation2 + $0x14] ss:$8 sps:$4 sm:$0xff]  }
0x1191   :  { %11791 = vmatpush3.xpose.msk.msra.mxu1 %vm1431_vm3, %v4654_v13  ;;  %11792 = vmatprep.mubr.msk.f32.mxu1 %vm12426_vm0, %v12425_v1 }
0x1192   :  { %11803 = vmatprep.subr.bf16.mxu1 %v12425_v1 }
0x1195   :  { %v4767_v22 = vpop.trf.xlu1 }
0x1196   :  { %11793 = vmatmul.mubr.msk.f32.vlgmr.msra.gmra.mrb[44].mxu1 %vm1431_vm3, %v4767_v22 }
0x1197   :  { %v4735_v27 = vpop.trf.xlu0  ;;  %11807 = vmatprep.mubr.msk.bf16.mxu1 %vm12426_vm0, %v12425_v1 }
0x1198   :  { %11788 = vmatmul.mubr.msk.f32.vlgmr.msra.gmra.mrb[40].mxu0 %vm1431_vm3, %v4735_v27 }
0x1199   :  { %11799 = vmatprep.mubr.msk.bf16.mxu0 %vm12426_vm0, %v12425_v1 }
0x119d   :  { %v3916_v9 = vpop.trf.xlu1 }
0x119f   :  { %v3884_v28 = vpop.trf.xlu0 }
0x11a1   :  { %v3980_v36 = vpop.trf.xlu1 }
0x11a2   :  { %v4012_v3 = vcombine.low %v3916_v9, %v3980_v36  ;;  %v4013_v32 = vcombine.high %v3916_v9, %v3980_v36 }
0x11a3   :  { %v3948_v5 = vpop.trf.xlu0 }
0x11a4   :  { %v3996_v8 = vcombine.low %v3884_v28, %v3948_v5  ;;  %v3997_v33 = vcombine.high %v3884_v28, %v3948_v5  ;;  %v4020_v34 = vrot.slane %v4012_v3, %v12736_v24  ;;  %v4027_v35 = vrot.slane %v4013_v32, %v12736_v24 }
0x11a6   :  { %v4004_v37 = vrot.slane %v3996_v8, %v12736_v24  ;;  %v4011_v39 = vrot.slane %v3997_v33, %v12736_v24 }
0x11a8   :  { %v4028_v40 = vcombine.low %v4004_v37, %v4020_v34  ;;  %v4029_v41 = vcombine.high %v4004_v37, %v4020_v34  ;;  %v4044_v42 = vcombine.low %v4011_v39, %v4027_v35  ;;  %v4045_v12 = vcombine.high %v4011_v39, %v4027_v35 }
0x11aa   :  { %v4036_v49 = vrot.slane %v4028_v40, %v12743_v38  ;;  %v4043_v50 = vrot.slane %v4029_v41, %v12743_v38  ;;  %v4052_v52 = vrot.slane %v4044_v42, %v12743_v38  ;;  %v4059_v53 = vrot.slane %v4045_v12, %v12743_v38 }
0x11ac   :  { %v4064_v54 = vcombine.low %v4036_v49, %v4043_v50  ;;  %v11284_v55 = vcombine.high %v4036_v49, %v4043_v50  ;;  %v4080_v14 = vcombine.low %v4052_v52, %v4059_v53  ;;  %v11285_v56 = vcombine.high %v4052_v52, %v4059_v53 }
0x11ae   :  { %v4071_v63 = vrot.slane %v4064_v54, %v12736_v24  ;;  %v4079_v23 = vrot.slane %v11284_v55, %v12736_v24  ;;  %v4087_v29 = vrot.slane %v4080_v14, %v12736_v24  ;;  %v4095_v11 = vrot.slane %v11285_v56, %v12736_v24 }
0x11b0   :  { %v4096_v17 = vcombine.low %v4071_v63, %v4079_v23  ;;  %v4112_v18 = vcombine.low %v4087_v29, %v4095_v11  ;;  %v4097_v55 = vcombine.high %v4071_v63, %v4079_v23  ;;  %v4113_v14 = vcombine.high %v4087_v29, %v4095_v11 }
0x11b2   :  { %v13078_v19 = vrot.slane %v4096_v17, %v12743_v38  ;;  %v13081_v10 = vrot.slane %v4112_v18, %v12743_v38  ;;  %v4127_v23 = vrot.slane %v4113_v14, %v12743_v38 }
0x11b4   :  { %v4128_v21 = vcombine.low %v13078_v19, %v13081_v10 }
0x1261   :  { %v4855_v16 = vpop.f32.mrb[38].mxu0 }
0x1262   :  { %v11779_v45 = vpop.f32.mrb[39].mxu0  ;;  %5087 = vxpose.xlu0.b32.start.end [1/1] (short) (narrow) %v4855_v16, 8 }
0x1263   :  { %v4931_v46 = vpop.f32.mrb[42].mxu1 }
0x1264   :  { %5119 = vxpose.xlu1.b32.start.end [1/1] (short) (narrow) %v4931_v46, 8  ;;  %v11784_v47 = vpop.f32.mrb[43].mxu1 }
0x1269   :  { %v5083_v57 = vpop.f32.mrb[44].mxu1 }
0x126a   :  { %5183 = vxpose.xlu1.b32.start.end [1/1] (short) (narrow) %v5083_v57, 8  ;;  %v11794_v59 = vpop.f32.mrb[45].mxu1 }
0x126b   :  { %v5007_v60 = vpop.f32.mrb[40].mxu0 }
0x126c   :  { %5151 = vxpose.xlu0.b32.start.end [1/1] (short) (narrow) %v5007_v60, 8  ;;  %v11789_v61 = vpop.f32.mrb[41].mxu0 }
0x1295   :  { %5371 = vrot.lane.b32.xlu0 %v12317_v51, %s12427_s24 }
0x1299   :  { %5373 = vrot.lane.b32.xlu0 %v12318_v58, %s12427_s24  ;;  %v4111_v58 = vrot.slane %v4097_v55, %v12743_v38 }
0x12e2   :  { %v5103_v22 = vpop.trf.xlu0 }
0x12e4   :  { %v5135_v13 = vpop.trf.xlu1 }
0x12ea   :  { %v5199_v27 = vpop.trf.xlu1 }
0x12eb   :  { %v5231_v9 = vcombine.low %v5135_v13, %v5199_v27  ;;  %v5232_v28 = vcombine.high %v5135_v13, %v5199_v27  ;;  %v4129_v13 = vcombine.high %v13078_v19, %v13081_v10  ;;  %v4130_v27 = vcombine.low %v4111_v58, %v4127_v23 }
0x12ec   :  { %v5167_v36 = vpop.trf.xlu0  ;;  %v5369_v19 = vsub.s32 7, %v12527_v2 }
0x12ed   :  { %v5215_v5 = vcombine.low %v5103_v22, %v5167_v36  ;;  %v5216_v3 = vcombine.high %v5103_v22, %v5167_v36  ;;  %v5239_v32 = vrot.slane %v5231_v9, %v12736_v24  ;;  %v5246_v8 = vrot.slane %v5232_v28, %v12736_v24 }
0x12ee   :  { %v4131_v36 = vcombine.high %v4111_v58, %v4127_v23  ;;  %v5370_v10 = vrot.slane %v12855_v31, %v5369_v19  ;;  %v12145_v23 = vld [vmem:[#allocation5 + $0x8] sm:$0xff]  }
0x12ef   :  { %v5223_v33 = vrot.slane %v5215_v5, %v12736_v24  ;;  %v5230_v34 = vrot.slane %v5216_v3, %v12736_v24 }
0x12f1   :  { %v5247_v35 = vcombine.low %v5223_v33, %v5239_v32  ;;  %v5248_v37 = vcombine.high %v5223_v33, %v5239_v32  ;;  %v5263_v39 = vcombine.low %v5230_v34, %v5246_v8  ;;  %v5264_v40 = vcombine.high %v5230_v34, %v5246_v8 }
0x12f3   :  { %v5255_v41 = vrot.slane %v5247_v35, %v12743_v38  ;;  %v5262_v42 = vrot.slane %v5248_v37, %v12743_v38  ;;  %v5271_v12 = vrot.slane %v5263_v39, %v12743_v38  ;;  %v5278_v16 = vrot.slane %v5264_v40, %v12743_v38 }
0x12f5   :  { %v5283_v45 = vcombine.low %v5255_v41, %v5262_v42  ;;  %v11298_v46 = vcombine.high %v5255_v41, %v5262_v42  ;;  %v5299_v47 = vcombine.low %v5271_v12, %v5278_v16  ;;  %v11299_v49 = vcombine.high %v5271_v12, %v5278_v16 }
0x12f7   :  { %v5290_v50 = vrot.slane %v5283_v45, %v12736_v24  ;;  %v5298_v52 = vrot.slane %v11298_v46, %v12736_v24  ;;  %v5306_v53 = vrot.slane %v5299_v47, %v12736_v24  ;;  %v5314_v54 = vrot.slane %v11299_v49, %v12736_v24 }
0x12f9   :  { %v5315_v56 = vcombine.low %v5290_v50, %v5298_v52  ;;  %v5331_v57 = vcombine.low %v5306_v53, %v5314_v54  ;;  %v5316_v59 = vcombine.high %v5290_v50, %v5298_v52  ;;  %v5332_v60 = vcombine.high %v5306_v53, %v5314_v54 }
0x12fb   :  { %v5323_v61 = vrot.slane %v5315_v56, %v12743_v38  ;;  %v5339_v17 = vrot.slane %v5331_v57, %v12743_v38  ;;  %v5330_v18 = vrot.slane %v5316_v59, %v12743_v38  ;;  %v5346_v51 = vrot.slane %v5332_v60, %v12743_v38 }
0x12fd   :  { %v5348_v22 = vcombine.high %v5323_v61, %v5339_v17  ;;  %v5347_v63 = vcombine.low %v5323_v61, %v5339_v17  ;;  %v5349_v11 = vcombine.low %v5330_v18, %v5346_v51  ;;  %v5350_v28 = vcombine.high %v5330_v18, %v5346_v51 }
0x12ff   :  { %v12093_v29 = vpack.i.bf16 %v5348_v22, %v4129_v13  ;;  %v12098_v9 = vpack.i.bf16 %v5349_v11, %v4130_v27  ;;  %v12103_v5 = vpack.i.bf16 %v5350_v28, %v4131_v36  ;;  %v12147_v11 = vld [vmem:[%s13765_s4 + $0x8] sm:$0xff]  }
0x1301   :  { %12094 = vrot.lane.b32.xlu1 %v12093_v29, %s12423_s25  ;;  %v12146_v29 = vld [vmem:[%s13765_s4] sm:$0xff]  }
0x1305   :  { %12099 = vrot.lane.b32.xlu1 %v12098_v9, %s12434_s30 }
0x1307   :  { %v5372_v3 = vpop.permute.xlu0 %5371 }
0x1308   :  { %11796 = vmatpush3.bf16.msra.mxu0 %v5372_v3 }
0x1309   :  { %12104 = vrot.lane.b32.xlu1 %v12103_v5, %s12435_s8  ;;  %11797 = vmatprep.subr.bf16.mxu0 %v12425_v1 }
0x130b   :  { %v5374_v32 = vpop.permute.xlu0 %5373 }
0x130c   :  { %11798 = vmatpush3.bf16.msra.mxu0 %v5374_v32  ;;  %v13144_v32 = vld [vmem:[#allocation7 + $0x8] sm:$0xff] }
0x130d   :  { %11811 = vmatprep.subr.bf16.mxu0 %v12425_v1 }
0x1373   :  { %v12095_v8 = vpop.permute.xlu1 %12094 }
0x1374   :  { %v12097_v34 = vunpack.i.h.bf16 %v12095_v8  ;;  %v12096_v35 = vunpack.i.l.bf16 %v12095_v8  ;;  %v5452_v8 = vrot.slane %v13144_v32, %v12800_v0 }
0x1376   :  { %v4144_v41 = vsel %vm389_vm2, %v4128_v21, %v12096_v35  ;;  %v5363_v42 = vsel %vm389_vm2, %v5347_v63, %v12097_v34 }
0x1377   :  { %v12100_v33 = vpop.permute.xlu1 %12099 }
0x1378   :  { %v12102_v37 = vunpack.i.h.bf16 %v12100_v33  ;;  %v12101_v39 = vunpack.i.l.bf16 %v12100_v33 }
0x137a   :  { %v4145_v45 = vsel %vm1431_vm3, %v4144_v41, %v12101_v39  ;;  %v5364_v46 = vsel %vm1431_vm3, %v5363_v42, %v12102_v37 }
0x137b   :  { %v12105_v40 = vpop.permute.xlu1 %12104 }
0x137c   :  { %v12107_v12 = vunpack.i.h.bf16 %v12105_v40  ;;  %v12106_v16 = vunpack.i.l.bf16 %v12105_v40  ;;  %v5458_v40 = vrot.slane %v13144_v32, %v12878_v6 }
0x137e   :  { %v4146_v47 = vsel %vm1433_vm4, %v4145_v45, %v12106_v16  ;;  %v5365_v49 = vsel %vm1433_vm4, %v5364_v46, %v12107_v12  ;;  %v12148_v45 = vld [vmem:[%s13765_s4 + $0x10] sm:$0xff]   ;;  %v12149_v46 = vld [vmem:[%s13765_s4 + $0x18] sm:$0xff]  }
0x137f   :  { %v5366_v50 = vpack.c.bf16 %v5365_v49, %v4146_v47  ;;  %v11301_v47 = vld [vmem:[%s13767_s6] ss:$0 sm:$0xff] }
0x1381   :  { %11800 = vmatmul.mubr.msk.bf16.vlgmr.msra.gmra.mrb[44].mxu0 %vm108_vm1, %v5366_v50 }
0x1382   :  { %11819 = vmatprep.mubr.msk.bf16.mxu0 %vm12426_vm0, %v12425_v1  ;;  %11812 = vmatpush3.bf16.msra.mxu0 %v12146_v29 }
0x1383   :  { %11813 = vmatprep.subr.bf16.mxu0 %v12425_v1 }
0x1386   :  { %11814 = vmatpush3.bf16.msra.mxu0 %v12147_v11 }
0x1387   :  { %11815 = vmatprep.subr.bf16.mxu0 %v12425_v1 }
0x138a   :  { %11816 = vmatpush3.bf16.msra.mxu0 %v12148_v45 }
0x138b   :  { %11817 = vmatprep.subr.bf16.mxu0 %v12425_v1 }
0x138e   :  { %11818 = vmatpush3.bf16.msra.mxu0 %v12149_v46 }
0x138f   :  { %11839 = vmatprep.subr.mxu0 %v12425_v1 }
0x1454   :  { %v5414_v21 = vpop.f32.mrb[44].mxu0 }
0x1455   :  { %v5415_v52 = vadd.f32 %v5414_v21, %v5370_v10  ;;  %v11801_v53 = vpop.f32.mrb[45].mxu0 }
0x1456   :  { %v5417_v54 = vpop.f32.mrb[46].mxu0 }
0x1457   :  { %v5421_v55 = vadd.f32 %v5415_v52, %v12839_v25  ;;  %v5418_v14 = vadd.f32 %v5417_v54, %v5370_v10  ;;  %v11802_v56 = vpop.f32.mrb[47].mxu0 }
0x1458   :  { %v5543_v56 = vrot.slane %v13144_v32, %v12567_v15 }
0x1459   :  { %v5422_v57 = vadd.f32 %v5418_v14, %v12841_v26  ;;  %v5423_v59 = vsel %vm108_vm1, %v5421_v55, 0.0  ;;  %v12144_v26 = vld [vmem:[#allocation5] sm:$0xff]  }
0x145a   :  { %5424 = vadd.xlane.f32.xlu1 %v5423_v59  ;;  %11804 = vmatpush3.bf16.msra.mxu1 %v12144_v26 }
0x145b   :  { %v5426_v60 = vsel %vm108_vm1, %v5422_v57, 0.0  ;;  %11805 = vmatprep.subr.bf16.mxu1 %v12425_v1 }
0x145c   :  { %5427 = vadd.xlane.f32.xlu0 %v5426_v60 }
0x145e   :  { %11806 = vmatpush3.bf16.msra.mxu1 %v12145_v23 }
0x145f   :  { %11823 = vmatprep.subr.bf16.mxu1 %v12425_v1 }
0x14e7   :  { %v5425_v61 = vpop.xlane.xlu1 %5424 }
0x14e8   :  { %v5429_v17 = vmul.f32 0.03125, %v5425_v61 }
0x14e9   :  { %v5428_v18 = vpop.xlane.xlu0 %5427 }
0x14ea   :  { %v5431_v31 = vsub.f32 %v5421_v55, %v5429_v17  ;;  %v5430_v51 = vmul.f32 0.03125, %v5428_v18 }
0x14ec   :  { %v5432_v58 = vsub.f32 %v5422_v57, %v5430_v51  ;;  %v5433_v13 = vmul.f32 %v5431_v31, %v5431_v31 }
0x14ee   :  { %v5435_v22 = vsel %vm108_vm1, %v5433_v13, 0.0  ;;  %v5434_v25 = vmul.f32 %v5432_v58, %v5432_v58 }
0x14ef   :  { %5436 = vadd.xlane.f32.xlu0 %v5435_v22 }
0x14f0   :  { %v5438_v63 = vsel %vm108_vm1, %v5434_v25, 0.0 }
0x14f1   :  { %5439 = vadd.xlane.f32.xlu1 %v5438_v63 }
0x157c   :  { %v5437_v27 = vpop.xlane.xlu0 %5436 }
0x157d   :  { %v5441_v9 = vmul.f32 0.03125, %v5437_v27 }
0x157e   :  { %v5440_v28 = vpop.xlane.xlu1 %5439 }
0x157f   :  { %v5443_v36 = vadd.f32 1e-05, %v5441_v9  ;;  %v5442_v5 = vmul.f32 0.03125, %v5440_v28 }
0x1581   :  { %12230 = vrsqrt.f32 %v5443_v36  ;;  %v5444_v3 = vadd.f32 1e-05, %v5442_v5  ;;  %v13173_v36 = vld [vmem:[#allocation2 + $0x20] ss:$8 sps:$4 sm:$0xff]   ;;  %v13176_v5 = vld [vmem:[#allocation2 + $0x30] ss:$8 sps:$4 sm:$0xff]  }
0x1583   :  { %12232 = vrsqrt.f32 %v5444_v3  ;;  %v13181_v3 = vld [vmem:[#allocation7 + $0x10] sm:$0xff] }
0x158b   :  { %v12231_v33 = vpop.eup %12230 }
0x158c   :  { %v5447_v34 = vmul.f32 %v12231_v33, %v5431_v31 }
0x158d   :  { %v12233_v35 = vpop.eup %12232 }
0x158e   :  { %v5453_v37 = vmul.f32 %v5452_v8, %v5447_v34  ;;  %v5448_v39 = vmul.f32 %v12233_v35, %v5432_v58 }
0x1590   :  { %v5454_v41 = vmul.f32 %v5452_v8, %v5448_v39  ;;  %v5459_v42 = vadd.f32 %v5458_v40, %v5453_v37  ;;  %v5729_v8 = vrot.slane %v13181_v3, %v12532_v4 }
0x1592   :  { %v5460_v12 = vadd.f32 %v5458_v40, %v5454_v41  ;;  %v5644_v41 = vrot.slane %v13144_v32, %v12853_v30 }
0x1594   :  { %v5461_v16 = vpack.c.bf16 %v5460_v12, %v5459_v42 }
0x1596   :  { %11808 = vmatmul.mubr.msk.bf16.vlgmr.msra.gmra.mrb[48].mxu1 %vm108_vm1, %v5461_v16 }
0x1597   :  { %11827 = vmatprep.mubr.msk.bf16.mxu1 %vm12426_vm0, %v12425_v1  ;;  %11824 = vmatpush3.bf16.msra.mxu1 %v13173_v36 }
0x1598   :  { %11825 = vmatprep.subr.bf16.mxu1 %v12425_v1 }
0x159b   :  { %11826 = vmatpush3.bf16.msra.mxu1 %v13176_v5 }
0x159c   :  { %11831 = vmatprep.subr.bf16.mxu1 %v12425_v1 }
0x1669   :  { %v5522_v49 = vpop.f32.mrb[48].mxu1 }
0x166a   :  { %v5523_v50 = vadd.f32 %v11301_v47, %v5522_v49  ;;  %v11809_v10 = vpop.f32.mrb[49].mxu1 }
0x166b   :  { %v5525_v21 = vpop.f32.mrb[50].mxu1 }
0x166c   :  { %v5526_v52 = vadd.f32 %v11301_v47, %v5525_v21  ;;  %v11810_v53 = vpop.f32.mrb[51].mxu1  ;;  %v5529_v54 = vmax.f32 %v5523_v50, 0.0  ;;  %v13197_v21 = vld [vmem:[%s13761_s0 + $0x10] sm:$0xff] }
0x166e   :  { %v5530_v55 = vmax.f32 %v5526_v52, 0.0 }
0x1670   :  { %v5531_v14 = vpack.c.bf16 %v5530_v55, %v5529_v54 }
0x1672   :  { %11820 = vmatmul.mubr.msk.bf16.vlgmr.msra.gmra.mrb[48].mxu0 %vm5568_vm5, %v5531_v14 }
0x1673   :  { %11841 = vmatprep.mubr.msk.f32.mxu0 %vm12426_vm0, %v12425_v1 }
0x1745   :  { %v5606_v57 = vpop.f32.mrb[48].mxu0 }
0x1746   :  { %v5607_v59 = vadd.f32 %v5606_v57, %v5543_v56  ;;  %v11821_v60 = vpop.f32.mrb[49].mxu0 }
0x1747   :  { %v5609_v61 = vpop.f32.mrb[50].mxu0 }
0x1748   :  { %v5613_v17 = vadd.f32 %v5607_v59, %v5459_v42  ;;  %v5610_v18 = vadd.f32 %v5609_v61, %v5543_v56  ;;  %v11822_v31 = vpop.f32.mrb[51].mxu0  ;;  %v5723_v56 = vrot.slane %v13181_v3, %v12567_v15 }
0x174a   :  { %v5614_v51 = vadd.f32 %v5610_v18, %v5460_v12  ;;  %v5615_v58 = vsel %vm108_vm1, %v5613_v17, 0.0  ;;  %v5650_v12 = vrot.slane %v13144_v32, %v12923_v20  ;;  %v13204_v32 = vld [vmem:[%s13761_s0 + $0x18] sm:$0xff] }
0x174b   :  { %5616 = vadd.xlane.f32.xlu0 %v5615_v58 }
0x174c   :  { %v5618_v13 = vsel %vm108_vm1, %v5614_v51, 0.0 }
0x174d   :  { %5619 = vadd.xlane.f32.xlu1 %v5618_v13 }
0x17d8   :  { %v5617_v22 = vpop.xlane.xlu0 %5616 }
0x17d9   :  { %v5621_v25 = vmul.f32 0.03125, %v5617_v22 }
0x17da   :  { %v5620_v63 = vpop.xlane.xlu1 %5619 }
0x17db   :  { %v5623_v26 = vsub.f32 %v5613_v17, %v5621_v25  ;;  %v5622_v23 = vmul.f32 0.03125, %v5620_v63 }
0x17dd   :  { %v5624_v29 = vsub.f32 %v5614_v51, %v5622_v23  ;;  %v5625_v11 = vmul.f32 %v5623_v26, %v5623_v26 }
0x17df   :  { %v5627_v27 = vsel %vm108_vm1, %v5625_v11, 0.0  ;;  %v5626_v9 = vmul.f32 %v5624_v29, %v5624_v29 }
0x17e0   :  { %5628 = vadd.xlane.f32.xlu0 %v5627_v27 }
0x17e1   :  { %v5630_v28 = vsel %vm108_vm1, %v5626_v9, 0.0 }
0x17e2   :  { %5631 = vadd.xlane.f32.xlu1 %v5630_v28 }
0x17f6   :  { %5731 = vrot.lane.b32.xlu0 %v5729_v8, %s12427_s24 }
0x186d   :  { %v5629_v33 = vpop.xlane.xlu0 %5628 }
0x186e   :  { %v5633_v34 = vmul.f32 0.03125, %v5629_v33 }
0x186f   :  { %v5632_v35 = vpop.xlane.xlu1 %5631 }
0x1870   :  { %v5635_v37 = vadd.f32 1e-05, %v5633_v34  ;;  %v5634_v39 = vmul.f32 0.03125, %v5632_v35 }
0x1871   :  { %v13211_v55 = vpop.permute.xlu0 %5731 }
0x1872   :  { %12234 = vrsqrt.f32 %v5635_v37  ;;  %v5636_v40 = vadd.f32 1e-05, %v5634_v39  ;;  %v5740_v39 = vrot.slane %v13181_v3, %v12617_v43 }
0x1874   :  { %12236 = vrsqrt.f32 %v5636_v40 }
0x187c   :  { %v12235_v42 = vpop.eup %12234 }
0x187d   :  { %v5639_v16 = vmul.f32 %v12235_v42, %v5623_v26 }
0x187e   :  { %v12237_v45 = vpop.eup %12236 }
0x187f   :  { %v5645_v46 = vmul.f32 %v5644_v41, %v5639_v16  ;;  %v5640_v47 = vmul.f32 %v12237_v45, %v5624_v29 }
0x1881   :  { %v13190_v49 = vadd.f32 %v5650_v12, %v5645_v46  ;;  %v5646_v50 = vmul.f32 %v5644_v41, %v5640_v47 }
0x1883   :  { %v13192_v10 = vadd.f32 %v5650_v12, %v5646_v50  ;;  %v5661_v52 = vadd.f32 %v13197_v21, %v13190_v49 }
0x1885   :  { %v5662_v53 = vadd.f32 %v13204_v32, %v13192_v10  ;;  %v5736_v11 = vpack.c.bf16 %v13192_v10, %v13190_v49 }
0x1887   :  { %v5663_v54 = vpack.c.bf16 %v5662_v53, %v5661_v52 }
0x1889   :  { %11828 = vmatmul.mubr.msk.bf16.vlgmr.msra.gmra.mrb[52].mxu1 %vm108_vm1, %v5663_v54 }
0x188a   :  { %11835 = vmatprep.mubr.msk.bf16.mxu1 %vm12426_vm0, %v12425_v1 }
0x195c   :  { %v5713_v14 = vpop.f32.mrb[52].mxu1 }
0x195d   :  { %v5734_v57 = vadd.f32 %v13211_v55, %v5713_v14  ;;  %v11829_v59 = vpop.f32.mrb[53].mxu1  ;;  %v5724_v58 = vadd.f32 %v5723_v56, %v5713_v14 }
0x195e   :  { %v13216_v60 = vpop.f32.mrb[54].mxu1 }
0x195f   :  { %v13219_v61 = vadd.f32 %v5723_v56, %v13216_v60  ;;  %5804 = vrot.lane.b32.xlu0 %v5734_v57, %s12430_s28  ;;  %5800 = vrot.lane.b32.xlu1 %v5734_v57, %s12429_s27  ;;  %v11830_v17 = vpop.f32.mrb[55].mxu1  ;;  %v5791_v13 = vmul.f32 0.35355338, %v5724_v58 }
0x1960   :  { %v5735_v17 = vadd.f32 %v13211_v55, %v13216_v60 }
0x1963   :  { %5802 = vrot.lane.b32.xlu1 %v5734_v57, %s12428_s26 }
0x1967   :  { %5816 = vrot.lane.b32.xlu1 %v5734_v57, %s12431_s29 }
0x19d1   :  { %v5801_v18 = vpop.permute.xlu1 %5800  ;;  %v5805_v31 = vpop.permute.xlu0 %5804 }
0x19d2   :  { %5818 = vrot.lane.b32.xlu0 %v5801_v18, %s12431_s29 }
0x19d5   :  { %v5803_v51 = vpop.permute.xlu1 %5802 }
0x19d6   :  { %5822 = vrot.lane.b32.xlu0 %v5805_v31, %s12431_s29  ;;  %5820 = vrot.lane.b32.xlu1 %v5803_v51, %s12431_s29 }
0x19d9   :  { %v5817_v22 = vpop.permute.xlu1 %5816 }
0x19da   :  { %5743 = vrot.lane.b32.xlu0 %v13176_v5, %s12419_s11  ;;  %5741 = vrot.lane.b32.xlu1 %v13173_v36, %s12419_s11 }
0x19de   :  { %5795 = vrot.lane.b32.xlu0 %v5791_v13, %s12428_s26  ;;  %5793 = vrot.lane.b32.xlu1 %v5791_v13, %s12429_s27 }
0x19e2   :  { %5797 = vrot.lane.b32.xlu1 %v5791_v13, %s12430_s28 }
0x19fc   :  { %5828 = vxpose.xlu0.b32.start.end [1/1] (short) (narrow) %v5817_v22, 8 }
0x1a44   :  { %v5819_v25 = vpop.permute.xlu0 %5818 }
0x1a45   :  { %5860 = vxpose.xlu1.b32.start.end [1/1] (short) (narrow) %v5819_v25, 8  ;;  %v13279_v25 = vmul.f32 0.35355338, %v13219_v61 }
0x1a48   :  { %v5821_v63 = vpop.permute.xlu1 %5820  ;;  %v5823_v26 = vpop.permute.xlu0 %5822 }
0x1a49   :  { %5892 = vxpose.xlu0.b32.start.end [1/1] (short) (narrow) %v5821_v63, 8 }
0x1a4c   :  { %v5742_v23 = vpop.permute.xlu1 %5741  ;;  %v5744_v29 = vpop.permute.xlu0 %5743 }
0x1a4d   :  { %11832 = vmatpush3.bf16.msra.mxu1 %v5742_v23  ;;  %5924 = vxpose.xlu0.b32.start.end [1/1] (short) (narrow) %v5823_v26, 8 }
0x1a4e   :  { %11833 = vmatprep.subr.bf16.mxu1 %v12425_v1 }
0x1a50   :  { %v5796_v27 = vpop.permute.xlu0 %5795  ;;  %v5794_v28 = vpop.permute.xlu1 %5793 }
0x1a51   :  { %11834 = vmatpush3.bf16.msra.mxu1 %v5744_v29 }
0x1a52   :  { %11844 = vmatprep.subr.mxu1 %v12425_v1 }
0x1a54   :  { %11836 = vmatmul.mubr.msk.bf16.vlgmr.msra.gmra.mrb[56].mxu1 %vm108_vm1, %v5736_v11  ;;  %v5798_v8 = vpop.permute.xlu1 %5797 }
0x1a55   :  { %11846 = vmatprep.mubr.msk.f32.mxu1 %vm12426_vm0, %v12425_v1 }
0x1a7c   :  { %v5844_v9 = vpop.trf.xlu0 }
0x1a7d   :  { %11840 = vmatpush3.msra.mxu0 %v5844_v9 }
0x1a7e   :  { %11842 = vmatmul.mubr.msk.f32.vlgmr.msra.gmra.mrb[42].mxu0 %vm389_vm2, %v5791_v13  ;;  %11849 = vmatprep.subr.mxu0 %v12425_v1 }
0x1a7f   :  { %11851 = vmatprep.mubr.msk.f32.mxu0 %vm12426_vm0, %v12425_v1 }
0x1ac5   :  { %v5876_v33 = vpop.trf.xlu1 }
0x1ac6   :  { %11845 = vmatpush3.msra.mxu1 %v5876_v33 }
0x1ac7   :  { %11847 = vmatmul.mubr.msk.f32.vlgmr.msra.gmra.mrb[46].mxu1 %vm389_vm2, %v5794_v28  ;;  %11854 = vmatprep.subr.mxu1 %v12425_v1 }
0x1ac8   :  { %11856 = vmatprep.mubr.msk.f32.mxu1 %vm12426_vm0, %v12425_v1 }
0x1ac9   :  { %v5908_v34 = vpop.trf.xlu0 }
0x1aca   :  { %11850 = vmatpush3.msra.mxu0 %v5908_v34 }
0x1acb   :  { %11852 = vmatmul.mubr.msk.f32.vlgmr.msra.gmra.mrb[52].mxu0 %vm389_vm2, %v5796_v27  ;;  %11859 = vmatprep.subr.mxu0 %v12425_v1 }
0x1acc   :  { %11861 = vmatprep.mubr.msk.f32.mxu0 %vm12426_vm0, %v12425_v1 }
0x1acd   :  { %v5940_v35 = vpop.trf.xlu0 }
0x1ace   :  { %11855 = vmatpush3.msra.mxu1 %v5940_v35 }
0x1acf   :  { %11857 = vmatmul.mubr.msk.f32.vlgmr.msra.gmra.mrb[60].mxu1 %vm389_vm2, %v5798_v8  ;;  %11864 = vmatprep.subr.mxu1 %v12425_v1 }
0x1ad0   :  { %11866 = vmatprep.mubr.msk.f32.mxu1 %vm12426_vm0, %v12425_v1 }
0x1b27   :  { %v5784_v37 = vpop.f32.mrb[56].mxu1 }
0x1b28   :  { %v11837_v40 = vpop.f32.mrb[57].mxu1  ;;  %v5785_v18 = vadd.f32 %v5784_v37, %v5740_v39 }
0x1b29   :  { %v5787_v41 = vpop.f32.mrb[58].mxu1 }
0x1b2a   :  { %v13260_v42 = vadd.f32 %v5787_v41, %v5740_v39  ;;  %v11838_v12 = vpop.f32.mrb[59].mxu1 }
0x1b51   :  { %v6024_v16 = vpop.f32.mrb[42].mxu0 }
0x1b52   :  { %v11843_v45 = vpop.f32.mrb[43].mxu0  ;;  %v6244_v46 = vsel %vm389_vm2, %v6024_v16, -inf }
0x1b53   :  { %6245 = vmax.xlane.f32.xlu0 %v6244_v46 }
0x1b9a   :  { %v6096_v47 = vpop.f32.mrb[46].mxu1 }
0x1b9b   :  { %v11848_v50 = vpop.f32.mrb[47].mxu1  ;;  %v6247_v52 = vsel %vm389_vm2, %v6096_v47, -inf }
0x1b9c   :  { %6248 = vmax.xlane.f32.xlu1 %v6247_v52 }
0x1b9e   :  { %v6168_v53 = vpop.f32.mrb[52].mxu0 }
0x1b9f   :  { %v11853_v54 = vpop.f32.mrb[53].mxu0  ;;  %v6250_v14 = vsel %vm389_vm2, %v6168_v53, -inf }
0x1ba0   :  { %6251 = vmax.xlane.f32.xlu1 %v6250_v14 }
0x1ba2   :  { %v6240_v56 = vpop.f32.mrb[60].mxu1 }
0x1ba3   :  { %v11858_v57 = vpop.f32.mrb[61].mxu1  ;;  %v6253_v59 = vsel %vm389_vm2, %v6240_v56, -inf }
0x1ba4   :  { %6254 = vmax.xlane.f32.xlu0 %v6253_v59 }
0x1bb1   :  { %7008 = vrot.lane.b32.xlu1 %v5735_v17, %s12429_s27 }
0x1bb5   :  { %7012 = vrot.lane.b32.xlu1 %v5735_v17, %s12430_s28 }
0x1bb9   :  { %5807 = vrot.lane.b32.xlu1 %v5785_v18, %s12429_s27 }
0x1bba   :  { %7010 = vrot.lane.b32.xlu0 %v5735_v17, %s12428_s26 }
0x1bbd   :  { %5813 = vrot.lane.b32.xlu1 %v5785_v18, %s12430_s28 }
0x1bbe   :  { %5810 = vrot.lane.b32.xlu0 %v5785_v18, %s12428_s26 }
0x1bc2   :  { %7024 = vrot.lane.b32.xlu0 %v5735_v17, %s12431_s29 }
0x1be0   :  { %v6246_v51 = vpop.xlane.xlu0 %6245 }
0x1be1   :  { %v6256_v63 = vsub.f32 %v6024_v16, %v6246_v51 }
0x1be3   :  { %v6260_v23 = vmul.f32 1.442695, %v6256_v63 }
0x1be5   :  { %12238 = vpow2.f32 %v6260_v23 }
0x1bef   :  { %v12239_v28 = vpop.eup %12238 }
0x1bf0   :  { %v6268_v33 = vsel %vm389_vm2, %v12239_v28, 0.0 }
0x1c29   :  { %v6249_v31 = vpop.xlane.xlu1 %6248 }
0x1c2a   :  { %v6257_v26 = vsub.f32 %v6096_v47, %v6249_v31 }
0x1c2c   :  { %v6262_v11 = vmul.f32 1.442695, %v6257_v26 }
0x1c2d   :  { %v6252_v58 = vpop.xlane.xlu1 %6251 }
0x1c2e   :  { %v6258_v29 = vsub.f32 %v6168_v53, %v6252_v58  ;;  %12240 = vpow2.f32 %v6262_v11 }
0x1c30   :  { %v6264_v9 = vmul.f32 1.442695, %v6258_v29 }
0x1c31   :  { %v6255_v13 = vpop.xlane.xlu0 %6254  ;;  %v7009_v55 = vpop.permute.xlu1 %7008 }
0x1c32   :  { %7026 = vrot.lane.b32.xlu1 %v7009_v55, %s12431_s29  ;;  %v6259_v27 = vsub.f32 %v6240_v56, %v6255_v13  ;;  %12242 = vpow2.f32 %v6264_v9 }
0x1c34   :  { %v6266_v61 = vmul.f32 1.442695, %v6259_v27 }
0x1c35   :  { %v7011_v60 = vpop.permute.xlu0 %7010  ;;  %v7013_v22 = vpop.permute.xlu1 %7012 }
0x1c36   :  { %7028 = vrot.lane.b32.xlu0 %v7011_v60, %s12431_s29  ;;  %7030 = vrot.lane.b32.xlu1 %v7013_v22, %s12431_s29  ;;  %12244 = vpow2.f32 %v6266_v61 }
0x1c38   :  { %v12241_v8 = vpop.eup %12240 }
0x1c39   :  { %v6271_v35 = vsel %vm389_vm2, %v12241_v8, 0.0  ;;  %v5808_v41 = vpop.permute.xlu1 %5807  ;;  %v5811_v12 = vpop.permute.xlu0 %5810 }
0x1c3a   :  { %7001 = vrot.lane.b32.xlu0 %v13279_v25, %s12429_s27  ;;  %7003 = vrot.lane.b32.xlu1 %v13279_v25, %s12428_s26 }
0x1c3c   :  { %v12243_v34 = vpop.eup %12242 }
0x1c3d   :  { %v6274_v39 = vsel %vm389_vm2, %v12243_v34, 0.0  ;;  %v5814_v16 = vpop.permute.xlu1 %5813  ;;  %v7025_v45 = vpop.permute.xlu0 %7024 }
0x1c3e   :  { %7005 = vrot.lane.b32.xlu0 %v13279_v25, %s12430_s28 }
0x1c40   :  { %v12245_v37 = vpop.eup %12244 }
0x1c41   :  { %v6277_v40 = vsel %vm389_vm2, %v12245_v37, 0.0 }
0x1c5d   :  { %6269 = vadd.xlane.f32.xlu0 %v6268_v33 }
0x1c5e   :  { %6272 = vadd.xlane.f32.xlu1 %v6271_v35 }
0x1c61   :  { %6275 = vadd.xlane.f32.xlu0 %v6274_v39 }
0x1c62   :  { %6278 = vadd.xlane.f32.xlu1 %v6277_v40 }
0x1c8e   :  { %6320 = vxpose.xlu0.b32.start.end [1/1] (short) (narrow) %v5808_v41, 8 }
0x1c92   :  { %6352 = vxpose.xlu0.b32.start.end [1/1] (short) (narrow) %v5811_v12, 8 }
0x1c95   :  { %6288 = vxpose.xlu1.b32.start.end [1/1] (short) (narrow) %v5785_v18, 8 }
0x1c96   :  { %6384 = vxpose.xlu0.b32.start.end [1/1] (short) (narrow) %v5814_v16, 8 }
0x1c99   :  { %7036 = vxpose.xlu1.b32.start.end [1/1] (short) (narrow) %v7025_v45, 8 }
0x1ca4   :  { %v7027_v46 = vpop.permute.xlu1 %7026 }
0x1ca5   :  { %7068 = vxpose.xlu0.b32.start.end [1/1] (short) (narrow) %v7027_v46, 8 }
0x1ca8   :  { %v7029_v47 = vpop.permute.xlu0 %7028  ;;  %v7031_v50 = vpop.permute.xlu1 %7030 }
0x1ca9   :  { %7100 = vxpose.xlu1.b32.start.end [1/1] (short) (narrow) %v7029_v47, 8  ;;  %7132 = vxpose.xlu0.b32.start.end [1/1] (short) (narrow) %v7031_v50, 8 }
0x1cac   :  { %v7002_v52 = vpop.permute.xlu0 %7001  ;;  %v7004_v54 = vpop.permute.xlu1 %7003 }
0x1cb0   :  { %v7006_v53 = vpop.permute.xlu0 %7005 }
0x1cea   :  { %v6270_v14 = vpop.xlane.xlu0 %6269 }
0x1ceb   :  { %12246 = vrcp.f32 %v6270_v14  ;;  %v6273_v56 = vpop.xlane.xlu1 %6272 }
0x1cec   :  { %12248 = vrcp.f32 %v6273_v56 }
0x1cee   :  { %v6276_v51 = vpop.xlane.xlu0 %6275 }
0x1cef   :  { %v6279_v31 = vpop.xlane.xlu1 %6278 }
0x1cf0   :  { %12250 = vrcp.f32 %v6279_v31 }
0x1cf1   :  { %12252 = vrcp.f32 %v6276_v51 }
0x1cf5   :  { %v12247_v57 = vpop.eup %12246 }
0x1cf6   :  { %v12249_v59 = vpop.eup %12248  ;;  %v6281_v17 = vmul.f32 %v12247_v57, %v12239_v28 }
0x1cf7   :  { %v6283_v18 = vmul.f32 %v12249_v59, %v12241_v8 }
0x1cf8   :  { %11860 = vmatpush3.xpose.msk.msra.mxu0 %vm389_vm2, %v6281_v17 }
0x1cf9   :  { %11865 = vmatpush3.xpose.msk.msra.mxu1 %vm389_vm2, %v6283_v18  ;;  %11869 = vmatprep.subr.mxu0 %v12425_v1 }
0x1cfa   :  { %11874 = vmatprep.subr.mxu1 %v12425_v1  ;;  %v12251_v58 = vpop.eup %12250 }
0x1cfb   :  { %v6287_v55 = vmul.f32 %v12251_v58, %v12245_v37  ;;  %v12253_v60 = vpop.eup %12252 }
0x1cfc   :  { %v6285_v26 = vmul.f32 %v12253_v60, %v12243_v34 }
0x1d0e   :  { %v6336_v13 = vpop.trf.xlu0 }
0x1d0f   :  { %11867 = vmatmul.mubr.msk.f32.vlgmr.msra.gmra.mrb[62].mxu1 %vm389_vm2, %v6336_v13 }
0x1d10   :  { %11875 = vmatpush3.xpose.msk.msra.mxu1 %vm389_vm2, %v6287_v55  ;;  %11876 = vmatprep.mubr.msk.f32.mxu1 %vm12426_vm0, %v12425_v1 }
0x1d11   :  { %11884 = vmatprep.subr.mxu1 %v12425_v1 }
0x1d12   :  { %v6368_v22 = vpop.trf.xlu0 }
0x1d15   :  { %v6304_v63 = vpop.trf.xlu1 }
0x1d16   :  { %11862 = vmatmul.mubr.msk.f32.vlgmr.msra.gmra.mrb[54].mxu0 %vm389_vm2, %v6304_v63  ;;  %v6400_v23 = vpop.trf.xlu0 }
0x1d17   :  { %11870 = vmatpush3.xpose.msk.msra.mxu0 %vm389_vm2, %v6285_v26  ;;  %11871 = vmatprep.mubr.msk.f32.mxu0 %vm12426_vm0, %v12425_v1 }
0x1d18   :  { %11879 = vmatprep.subr.mxu0 %v12425_v1  ;;  %11877 = vmatmul.mubr.msk.f32.vlgmr.msra.gmra.mrb[64].mxu1 %vm389_vm2, %v6400_v23 }
0x1d19   :  { %v7052_v29 = vpop.trf.xlu1  ;;  %11886 = vmatprep.mubr.msk.f32.mxu1 %vm12426_vm0, %v12425_v1 }
0x1d1a   :  { %11872 = vmatmul.mubr.msk.f32.vlgmr.msra.gmra.mrb[56].mxu0 %vm389_vm2, %v6368_v22 }
0x1d1b   :  { %11880 = vmatpush3.msra.mxu0 %v7052_v29  ;;  %11881 = vmatprep.mubr.msk.f32.mxu0 %vm12426_vm0, %v12425_v1 }
0x1d1c   :  { %11889 = vmatprep.subr.mxu0 %v12425_v1 }
0x1d1e   :  { %11882 = vmatmul.mubr.msk.f32.vlgmr.msra.gmra.mrb[58].mxu0 %vm389_vm2, %v13279_v25 }
0x1d1f   :  { %11891 = vmatprep.mubr.msk.f32.mxu0 %vm12426_vm0, %v12425_v1 }
0x1d25   :  { %v7084_v11 = vpop.trf.xlu0 }
0x1d26   :  { %11885 = vmatpush3.msra.mxu1 %v7084_v11 }
0x1d27   :  { %11887 = vmatmul.mubr.msk.f32.vlgmr.msra.gmra.mrb[66].mxu1 %vm389_vm2, %v7002_v52  ;;  %11894 = vmatprep.subr.mxu1 %v12425_v1 }
0x1d28   :  { %11896 = vmatprep.mubr.msk.f32.mxu1 %vm12426_vm0, %v12425_v1 }
0x1d29   :  { %v7148_v27 = vpop.trf.xlu0  ;;  %v7116_v9 = vpop.trf.xlu1 }
0x1d2a   :  { %11890 = vmatpush3.msra.mxu0 %v7116_v9  ;;  %11895 = vmatpush3.msra.mxu1 %v7148_v27 }
0x1d2b   :  { %11892 = vmatmul.mubr.msk.f32.vlgmr.msra.gmra.mrb[60].mxu0 %vm389_vm2, %v7004_v54  ;;  %11897 = vmatmul.mubr.msk.f32.vlgmr.msra.gmra.mrb[68].mxu1 %vm389_vm2, %v7006_v53 }
0x1d2c   :  { %11899 = vmatprep.subr.mxu0 %v12425_v1  ;;  %11904 = vmatprep.subr.mxu1 %v12425_v1 }
0x1d2d   :  { %11901 = vmatprep.mubr.msk.f32.mxu0 %vm12426_vm0, %v12425_v1  ;;  %11906 = vmatprep.mubr.msk.f32.mxu1 %vm12426_vm0, %v12425_v1 }
0x1de2   :  { %v6564_v25 = vpop.f32.mrb[62].mxu1 }
0x1de3   :  { %v11868_v61 = vpop.f32.mrb[63].mxu1 }
0x1de9   :  { %v6488_v28 = vpop.f32.mrb[54].mxu0 }
0x1dea   :  { %v11863_v8 = vpop.f32.mrb[55].mxu0 }
0x1deb   :  { %v6716_v33 = vpop.f32.mrb[64].mxu1 }
0x1dec   :  { %v11878_v34 = vpop.f32.mrb[65].mxu1 }
0x1ded   :  { %v6640_v35 = vpop.f32.mrb[56].mxu0 }
0x1dee   :  { %v11873_v37 = vpop.f32.mrb[57].mxu0 }
0x1df1   :  { %v7232_v39 = vpop.f32.mrb[58].mxu0 }
0x1df2   :  { %v11883_v40 = vpop.f32.mrb[59].mxu0  ;;  %v7452_v41 = vsel %vm389_vm2, %v7232_v39, -inf }
0x1df3   :  { %7453 = vmax.xlane.f32.xlu1 %v7452_v41 }
0x1dfa   :  { %v7304_v12 = vpop.f32.mrb[66].mxu1 }
0x1dfb   :  { %v11888_v16 = vpop.f32.mrb[67].mxu1  ;;  %v7455_v45 = vsel %vm389_vm2, %v7304_v12, -inf }
0x1dfc   :  { %7456 = vmax.xlane.f32.xlu0 %v7455_v45 }
0x1dfe   :  { %v7376_v46 = vpop.f32.mrb[60].mxu0  ;;  %v7448_v47 = vpop.f32.mrb[68].mxu1 }
0x1dff   :  { %v11893_v50 = vpop.f32.mrb[61].mxu0  ;;  %v11898_v52 = vpop.f32.mrb[69].mxu1  ;;  %v7458_v53 = vsel %vm389_vm2, %v7376_v46, -inf  ;;  %v7461_v54 = vsel %vm389_vm2, %v7448_v47, -inf }
0x1e00   :  { %7459 = vmax.xlane.f32.xlu1 %v7458_v53 }
0x1e04   :  { %7462 = vmax.xlane.f32.xlu1 %v7461_v54 }
0x1e12   :  { %7015 = vrot.lane.b32.xlu0 %v13260_v42, %s12429_s27 }
0x1e15   :  { %7018 = vrot.lane.b32.xlu1 %v13260_v42, %s12428_s26 }
0x1e19   :  { %7021 = vrot.lane.b32.xlu1 %v13260_v42, %s12430_s28 }
0x1e80   :  { %v7454_v14 = vpop.xlane.xlu1 %7453 }
0x1e81   :  { %v7464_v56 = vsub.f32 %v7232_v39, %v7454_v14 }
0x1e83   :  { %v7468_v57 = vmul.f32 1.442695, %v7464_v56 }
0x1e85   :  { %12254 = vpow2.f32 %v7468_v57 }
0x1e89   :  { %v7457_v59 = vpop.xlane.xlu0 %7456 }
0x1e8a   :  { %v7465_v17 = vsub.f32 %v7304_v12, %v7457_v59 }
0x1e8c   :  { %v7470_v18 = vmul.f32 1.442695, %v7465_v17 }
0x1e8d   :  { %v7460_v31 = vpop.xlane.xlu1 %7459  ;;  %v7016_v8 = vpop.permute.xlu0 %7015 }
0x1e8e   :  { %12256 = vpow2.f32 %v7470_v18  ;;  %v7466_v51 = vsub.f32 %v7376_v46, %v7460_v31 }
0x1e8f   :  { %v12255_v58 = vpop.eup %12254 }
0x1e90   :  { %v7472_v13 = vmul.f32 1.442695, %v7466_v51  ;;  %v7476_v55 = vsel %vm389_vm2, %v12255_v58, 0.0 }
0x1e91   :  { %7477 = vadd.xlane.f32.xlu0 %v7476_v55  ;;  %v7463_v60 = vpop.xlane.xlu1 %7462 }
0x1e92   :  { %12258 = vpow2.f32 %v7472_v13  ;;  %v7467_v22 = vsub.f32 %v7448_v47, %v7463_v60 }
0x1e94   :  { %v7474_v63 = vmul.f32 1.442695, %v7467_v22 }
0x1e95   :  { %v7019_v61 = vpop.permute.xlu1 %7018 }
0x1e96   :  { %12260 = vpow2.f32 %v7474_v63 }
0x1e98   :  { %v12257_v26 = vpop.eup %12256 }
0x1e99   :  { %v7479_v23 = vsel %vm389_vm2, %v12257_v26, 0.0  ;;  %v7022_v34 = vpop.permute.xlu1 %7021 }
0x1e9a   :  { %7480 = vadd.xlane.f32.xlu1 %v7479_v23 }
0x1e9c   :  { %v12259_v29 = vpop.eup %12258 }
0x1e9d   :  { %v7482_v11 = vsel %vm389_vm2, %v12259_v29, 0.0 }
0x1e9e   :  { %7483 = vadd.xlane.f32.xlu0 %v7482_v11 }
0x1ea0   :  { %v12261_v27 = vpop.eup %12260 }
0x1ea1   :  { %v7485_v9 = vsel %vm389_vm2, %v12261_v27, 0.0 }
0x1ea2   :  { %7486 = vadd.xlane.f32.xlu0 %v7485_v9 }
0x1ecd   :  { %7496 = vxpose.xlu1.b32.start.end [1/1] (short) (narrow) %v13260_v42, 8 }
0x1ecf   :  { %7528 = vxpose.xlu0.b32.start.end [1/1] (short) (narrow) %v7016_v8, 8 }
0x1ed1   :  { %7592 = vxpose.xlu1.b32.start.end [1/1] (short) (narrow) %v7022_v34, 8 }
0x1ed3   :  { %7560 = vxpose.xlu0.b32.start.end [1/1] (short) (narrow) %v7019_v61, 8 }
0x1ed5   :  { %6752 = vxpose.xlu1.b32.start.end [1/1] (short) (narrow) %v6564_v25, 8 }
0x1ed7   :  { %6720 = vxpose.xlu0.b32.start.end [1/1] (short) (narrow) %v6488_v28, 8 }
0x1ed9   :  { %6816 = vxpose.xlu1.b32.start.end [1/1] (short) (narrow) %v6716_v33, 8 }
0x1edb   :  { %6784 = vxpose.xlu0.b32.start.end [1/1] (short) (narrow) %v6640_v35, 8 }
0x1f1e   :  { %v7478_v37 = vpop.xlane.xlu0 %7477 }
0x1f1f   :  { %12262 = vrcp.f32 %v7478_v37 }
0x1f27   :  { %v7481_v39 = vpop.xlane.xlu1 %7480 }
0x1f28   :  { %12264 = vrcp.f32 %v7481_v39 }
0x1f29   :  { %v12263_v40 = vpop.eup %12262 }
0x1f2a   :  { %v7489_v41 = vmul.f32 %v12263_v40, %v12255_v58 }
0x1f2b   :  { %v7484_v25 = vpop.xlane.xlu0 %7483 }
0x1f2c   :  { %11900 = vmatpush3.xpose.msk.msra.mxu0 %vm389_vm2, %v7489_v41  ;;  %12266 = vrcp.f32 %v7484_v25 }
0x1f2d   :  { %11909 = vmatprep.subr.mxu0 %v12425_v1 }
0x1f2f   :  { %v7487_v28 = vpop.xlane.xlu0 %7486 }
0x1f30   :  { %12268 = vrcp.f32 %v7487_v28 }
0x1f32   :  { %v12265_v42 = vpop.eup %12264 }
0x1f33   :  { %v7491_v12 = vmul.f32 %v12265_v42, %v12257_v26 }
0x1f35   :  { %11905 = vmatpush3.xpose.msk.msra.mxu1 %vm389_vm2, %v7491_v12 }
0x1f36   :  { %11914 = vmatprep.subr.mxu1 %v12425_v1  ;;  %v12267_v33 = vpop.eup %12266 }
0x1f37   :  { %v7493_v45 = vmul.f32 %v12267_v33, %v12259_v29 }
0x1f3a   :  { %v12269_v35 = vpop.eup %12268 }
0x1f3b   :  { %v7495_v47 = vmul.f32 %v12269_v35, %v12261_v27 }
0x1f4d   :  { %v7512_v16 = vpop.trf.xlu1 }
0x1f4e   :  { %11902 = vmatmul.mubr.msk.f32.vlgmr.msra.gmra.mrb[62].mxu0 %vm389_vm2, %v7512_v16 }
0x1f4f   :  { %11910 = vmatpush3.xpose.msk.msra.mxu0 %vm389_vm2, %v7493_v45  ;;  %v7544_v46 = vpop.trf.xlu0  ;;  %11911 = vmatprep.mubr.msk.f32.mxu0 %vm12426_vm0, %v12425_v1 }
0x1f50   :  { %11907 = vmatmul.mubr.msk.f32.vlgmr.msra.gmra.mrb[70].mxu1 %vm389_vm2, %v7544_v46  ;;  %11919 = vmatprep.subr.bf16.mxu0 %v12425_v1 }
0x1f51   :  { %11915 = vmatpush3.xpose.msk.msra.mxu1 %vm389_vm2, %v7495_v47  ;;  %11916 = vmatprep.mubr.msk.f32.mxu1 %vm12426_vm0, %v12425_v1  ;;  %v7608_v50 = vpop.trf.xlu1 }
0x1f52   :  { %11927 = vmatprep.subr.bf16.mxu1 %v12425_v1 }
0x1f53   :  { %v7576_v52 = vpop.trf.xlu0 }
0x1f54   :  { %11912 = vmatmul.mubr.msk.f32.vlgmr.msra.gmra.mrb[64].mxu0 %vm389_vm2, %v7576_v52  ;;  %11917 = vmatmul.mubr.msk.f32.vlgmr.msra.gmra.mrb[72].mxu1 %vm389_vm2, %v7608_v50 }
0x1f55   :  { %11923 = vmatprep.mubr.msk.bf16.mxu0 %vm12426_vm0, %v12425_v1  ;;  %11931 = vmatprep.mubr.msk.bf16.mxu1 %vm12426_vm0, %v12425_v1  ;;  %v6768_v54 = vpop.trf.xlu1 }
0x1f57   :  { %v6736_v53 = vpop.trf.xlu0 }
0x1f59   :  { %v6832_v56 = vpop.trf.xlu1 }
0x1f5a   :  { %v6864_v17 = vcombine.low %v6768_v54, %v6832_v56  ;;  %v6865_v18 = vcombine.high %v6768_v54, %v6832_v56 }
0x1f5b   :  { %v6800_v14 = vpop.trf.xlu0 }
0x1f5c   :  { %v6848_v57 = vcombine.low %v6736_v53, %v6800_v14  ;;  %v6849_v59 = vcombine.high %v6736_v53, %v6800_v14  ;;  %v6872_v58 = vrot.slane %v6864_v17, %v12736_v24  ;;  %v6879_v13 = vrot.slane %v6865_v18, %v12736_v24 }
0x1f5e   :  { %v6856_v31 = vrot.slane %v6848_v57, %v12736_v24  ;;  %v6863_v51 = vrot.slane %v6849_v59, %v12736_v24 }
0x1f60   :  { %v6880_v55 = vcombine.low %v6856_v31, %v6872_v58  ;;  %v6881_v60 = vcombine.high %v6856_v31, %v6872_v58  ;;  %v6896_v22 = vcombine.low %v6863_v51, %v6879_v13  ;;  %v6897_v63 = vcombine.high %v6863_v51, %v6879_v13 }
0x1f62   :  { %v6888_v26 = vrot.slane %v6880_v55, %v12743_v38  ;;  %v6895_v23 = vrot.slane %v6881_v60, %v12743_v38  ;;  %v6904_v29 = vrot.slane %v6896_v22, %v12743_v38  ;;  %v6911_v11 = vrot.slane %v6897_v63, %v12743_v38 }
0x1f64   :  { %v6916_v34 = vcombine.low %v6888_v26, %v6895_v23  ;;  %v11326_v37 = vcombine.high %v6888_v26, %v6895_v23  ;;  %v6932_v39 = vcombine.low %v6904_v29, %v6911_v11  ;;  %v11327_v40 = vcombine.high %v6904_v29, %v6911_v11 }
0x1f66   :  { %v6923_v28 = vrot.slane %v6916_v34, %v12736_v24  ;;  %v6931_v33 = vrot.slane %v11326_v37, %v12736_v24  ;;  %v6939_v35 = vrot.slane %v6932_v39, %v12736_v24  ;;  %v6947_v16 = vrot.slane %v11327_v40, %v12736_v24 }
0x1f68   :  { %v6948_v45 = vcombine.low %v6923_v28, %v6931_v33  ;;  %v6964_v46 = vcombine.low %v6939_v35, %v6947_v16  ;;  %v6949_v39 = vcombine.high %v6923_v28, %v6931_v33  ;;  %v6965_v40 = vcombine.high %v6939_v35, %v6947_v16 }
0x1f6a   :  { %v13376_v47 = vrot.slane %v6948_v45, %v12743_v38  ;;  %v13379_v50 = vrot.slane %v6964_v46, %v12743_v38  ;;  %v6979_v33 = vrot.slane %v6965_v40, %v12743_v38 }
0x1f6c   :  { %v6980_v52 = vcombine.low %v13376_v47, %v13379_v50 }
0x2021   :  { %v7696_v27 = vpop.f32.mrb[62].mxu0 }
0x2022   :  { %v11903_v9 = vpop.f32.mrb[63].mxu0  ;;  %7928 = vxpose.xlu0.b32.start.end [1/1] (short) (narrow) %v7696_v27, 8 }
0x2023   :  { %v7772_v61 = vpop.f32.mrb[70].mxu1 }
0x2024   :  { %7960 = vxpose.xlu1.b32.start.end [1/1] (short) (narrow) %v7772_v61, 8  ;;  %v11908_v8 = vpop.f32.mrb[71].mxu1 }
0x2027   :  { %v7848_v41 = vpop.f32.mrb[64].mxu0  ;;  %v7924_v42 = vpop.f32.mrb[72].mxu1 }
0x2028   :  { %8024 = vxpose.xlu1.b32.start.end [1/1] (short) (narrow) %v7924_v42, 8  ;;  %v11918_v12 = vpop.f32.mrb[73].mxu1  ;;  %7992 = vxpose.xlu0.b32.start.end [1/1] (short) (narrow) %v7848_v41, 8  ;;  %v11913_v25 = vpop.f32.mrb[65].mxu0 }
0x2051   :  { %8212 = vrot.lane.b32.xlu0 %v13173_v36, %s12427_s24 }
0x2055   :  { %8214 = vrot.lane.b32.xlu0 %v13176_v5, %s12427_s24 }
0x20a2   :  { %v7944_v53 = vpop.trf.xlu0 }
0x20a4   :  { %v7976_v54 = vpop.trf.xlu1 }
0x20a8   :  { %v8040_v14 = vpop.trf.xlu1  ;;  %v8008_v56 = vpop.trf.xlu0 }
0x20a9   :  { %v8072_v57 = vcombine.low %v7976_v54, %v8040_v14  ;;  %v8073_v59 = vcombine.high %v7976_v54, %v8040_v14  ;;  %v8056_v17 = vcombine.low %v7944_v53, %v8008_v56  ;;  %v8057_v18 = vcombine.high %v7944_v53, %v8008_v56 }
0x20aa   :  { %v6963_v14 = vrot.slane %v6949_v39, %v12743_v38  ;;  %v6981_v56 = vcombine.high %v13376_v47, %v13379_v50  ;;  %v13423_v47 = vld [vmem:[#allocation2 + $0x24] ss:$8 sps:$4 sm:$0xff]   ;;  %v13427_v50 = vld [vmem:[#allocation2 + $0x34] ss:$8 sps:$4 sm:$0xff]  }
0x20ab   :  { %v8080_v31 = vrot.slane %v8072_v57, %v12736_v24  ;;  %v8087_v51 = vrot.slane %v8073_v59, %v12736_v24  ;;  %v8064_v58 = vrot.slane %v8056_v17, %v12736_v24  ;;  %v8071_v13 = vrot.slane %v8057_v18, %v12736_v24  ;;  %11928 = vmatpush3.bf16.msra.mxu1 %v13423_v47 }
0x20ac   :  { %v6982_v59 = vcombine.low %v6963_v14, %v6979_v33  ;;  %11929 = vmatprep.subr.bf16.mxu1 %v12425_v1 }
0x20ad   :  { %v8088_v36 = vcombine.low %v8064_v58, %v8080_v31  ;;  %v8089_v55 = vcombine.high %v8064_v58, %v8080_v31  ;;  %v8104_v60 = vcombine.low %v8071_v13, %v8087_v51  ;;  %v8105_v5 = vcombine.high %v8071_v13, %v8087_v51 }
0x20ae   :  { %v6983_v31 = vcombine.high %v6963_v14, %v6979_v33 }
0x20af   :  { %v8096_v22 = vrot.slane %v8088_v36, %v12743_v38  ;;  %v8103_v63 = vrot.slane %v8089_v55, %v12743_v38  ;;  %v8112_v26 = vrot.slane %v8104_v60, %v12743_v38  ;;  %v8119_v23 = vrot.slane %v8105_v5, %v12743_v38  ;;  %11930 = vmatpush3.bf16.msra.mxu1 %v13427_v50 }
0x20b1   :  { %v8124_v29 = vcombine.low %v8096_v22, %v8103_v63  ;;  %v11340_v11 = vcombine.high %v8096_v22, %v8103_v63  ;;  %v8140_v27 = vcombine.low %v8112_v26, %v8119_v23  ;;  %v11341_v9 = vcombine.high %v8112_v26, %v8119_v23 }
0x20b3   :  { %v8131_v61 = vrot.slane %v8124_v29, %v12736_v24  ;;  %v8139_v8 = vrot.slane %v11340_v11, %v12736_v24  ;;  %v8147_v34 = vrot.slane %v8140_v27, %v12736_v24  ;;  %v8155_v37 = vrot.slane %v11341_v9, %v12736_v24 }
0x20b5   :  { %v8156_v41 = vcombine.low %v8131_v61, %v8139_v8  ;;  %v8172_v42 = vcombine.low %v8147_v34, %v8155_v37  ;;  %v8157_v12 = vcombine.high %v8131_v61, %v8139_v8  ;;  %v8173_v25 = vcombine.high %v8147_v34, %v8155_v37 }
0x20b7   :  { %v8164_v45 = vrot.slane %v8156_v41, %v12743_v38  ;;  %v8180_v46 = vrot.slane %v8172_v42, %v12743_v38  ;;  %v8171_v53 = vrot.slane %v8157_v12, %v12743_v38  ;;  %v8187_v54 = vrot.slane %v8173_v25, %v12743_v38 }
0x20b9   :  { %v8189_v57 = vcombine.high %v8164_v45, %v8180_v46  ;;  %v8188_v28 = vcombine.low %v8164_v45, %v8180_v46  ;;  %v8190_v16 = vcombine.low %v8171_v53, %v8187_v54  ;;  %v8191_v18 = vcombine.high %v8171_v53, %v8187_v54 }
0x20bb   :  { %v12108_v35 = vpack.i.bf16 %v8189_v57, %v6981_v56  ;;  %v12113_v17 = vpack.i.bf16 %v8190_v16, %v6982_v59  ;;  %v12118_v51 = vpack.i.bf16 %v8191_v18, %v6983_v31 }
0x20bd   :  { %12109 = vrot.lane.b32.xlu1 %v12108_v35, %s12423_s25 }
0x20c1   :  { %12114 = vrot.lane.b32.xlu1 %v12113_v17, %s12434_s30 }
0x20c3   :  { %v8213_v58 = vpop.permute.xlu0 %8212 }
0x20c4   :  { %11920 = vmatpush3.bf16.msra.mxu0 %v8213_v58 }
0x20c5   :  { %12119 = vrot.lane.b32.xlu1 %v12118_v51, %s12435_s8  ;;  %11921 = vmatprep.subr.bf16.mxu0 %v12425_v1 }
0x20c7   :  { %v8215_v13 = vpop.permute.xlu0 %8214 }
0x20c8   :  { %11922 = vmatpush3.bf16.msra.mxu0 %v8215_v13 }
0x212f   :  { %v12110_v36 = vpop.permute.xlu1 %12109 }
0x2130   :  { %v12112_v60 = vunpack.i.h.bf16 %v12110_v36  ;;  %v12111_v5 = vunpack.i.l.bf16 %v12110_v36  ;;  %v5660_v36 = vld [vmem:[#allocation7 + $0x18] sm:$0xff] }
0x2132   :  { %v6996_v23 = vsel %vm389_vm2, %v6980_v52, %v12111_v5  ;;  %v8204_v29 = vsel %vm389_vm2, %v8188_v28, %v12112_v60  ;;  %v8211_v52 = vrot.slane %v13181_v3, %v12800_v0 }
0x2133   :  { %v12115_v55 = vpop.permute.xlu1 %12114 }
0x2134   :  { %v12117_v22 = vunpack.i.h.bf16 %v12115_v55  ;;  %v12116_v63 = vunpack.i.l.bf16 %v12115_v55  ;;  %v8293_v55 = vrot.slane %v5660_v36, %v12532_v4  ;;  %v13460_v4 = vld [vmem:[#allocation7 + $0x10] sm:$0xff] }
0x2136   :  { %v6997_v9 = vsel %vm1431_vm3, %v6996_v23, %v12116_v63  ;;  %v8205_v61 = vsel %vm1431_vm3, %v8204_v29, %v12117_v22  ;;  %v8299_v22 = vrot.slane %v5660_v36, %v12617_v43  ;;  %v8364_v43 = vrot.slane %v13460_v4, %v12853_v30 }
0x2137   :  { %v12120_v26 = vpop.permute.xlu1 %12119 }
0x2138   :  { %v12122_v11 = vunpack.i.h.bf16 %v12120_v26  ;;  %v12121_v27 = vunpack.i.l.bf16 %v12120_v26 }
0x213a   :  { %v6998_v8 = vsel %vm1433_vm4, %v6997_v9, %v12121_v27  ;;  %v8206_v34 = vsel %vm1433_vm4, %v8205_v61, %v12122_v11 }
0x213b   :  { %v8207_v37 = vpack.c.bf16 %v8206_v34, %v6998_v8 }
0x213d   :  { %11924 = vmatmul.mubr.msk.bf16.vlgmr.msra.gmra.mrb[68].mxu0 %vm108_vm1, %v8207_v37 }
0x213e   :  { %11939 = vmatprep.mubr.msk.bf16.mxu0 %vm108_vm1, %v12818_v44 }
0x2210   :  { %v8255_v39 = vpop.f32.mrb[68].mxu0 }
0x2211   :  { %v8256_v40 = vadd.f32 %v8255_v39, %v8211_v52  ;;  %v11925_v41 = vpop.f32.mrb[69].mxu0 }
0x2212   :  { %v8258_v42 = vpop.f32.mrb[70].mxu0 }
0x2213   :  { %v8262_v12 = vadd.f32 %v8256_v40, %v13190_v49  ;;  %v8259_v44 = vadd.f32 %v8258_v42, %v8211_v52  ;;  %v11926_v25 = vpop.f32.mrb[71].mxu0 }
0x2215   :  { %v8263_v45 = vadd.f32 %v8259_v44, %v13192_v10  ;;  %v8264_v46 = vsel %vm108_vm1, %v8262_v12, 0.0 }
0x2216   :  { %8265 = vadd.xlane.f32.xlu1 %v8264_v46 }
0x2217   :  { %v8267_v53 = vsel %vm108_vm1, %v8263_v45, 0.0 }
0x2218   :  { %8268 = vadd.xlane.f32.xlu0 %v8267_v53 }
0x2227   :  { %8367 = vrot.lane.b32.xlu1 %v13427_v50, %s12431_s29 }
0x222e   :  { %8365 = vrot.lane.b32.xlu0 %v13423_v47, %s12431_s29 }
0x22a3   :  { %v8266_v3 = vpop.xlane.xlu1 %8265 }
0x22a4   :  { %v8270_v54 = vmul.f32 0.03125, %v8266_v3 }
0x22a5   :  { %v8269_v14 = vpop.xlane.xlu0 %8268 }
0x22a6   :  { %v8272_v49 = vsub.f32 %v8262_v12, %v8270_v54  ;;  %v8271_v56 = vmul.f32 0.03125, %v8269_v14 }
0x22a7   :  { %v8368_v33 = vpop.permute.xlu1 %8367 }
0x22a8   :  { %v8273_v57 = vsub.f32 %v8263_v45, %v8271_v56  ;;  %v8274_v28 = vmul.f32 %v8272_v49, %v8272_v49  ;;  %v8308_v45 = vrot.slane %v13460_v4, %v12878_v6 }
0x22a9   :  { %v8366_v10 = vpop.permute.xlu0 %8365 }
0x22aa   :  { %11935 = vmatprep.subr.bf16.mxu0 %v8366_v10  ;;  %v8276_v35 = vsel %vm108_vm1, %v8274_v28, 0.0  ;;  %v8275_v16 = vmul.f32 %v8273_v57, %v8273_v57 }
0x22ab   :  { %8277 = vadd.xlane.f32.xlu1 %v8276_v35  ;;  %11936 = vmatpush3.bf16.msra.mxu0 %v8366_v10 }
0x22ac   :  { %v8279_v59 = vsel %vm108_vm1, %v8275_v16, 0.0  ;;  %11937 = vmatprep.subr.bf16.mxu0 %v8368_v33 }
0x22ad   :  { %8280 = vadd.xlane.f32.xlu0 %v8279_v59 }
0x22af   :  { %11938 = vmatpush3.bf16.msra.mxu0 %v8368_v33 }
0x22b0   :  { %11951 = vmatprep.subr.mxu0 %v12425_v1 }
0x22b2   :  { %11940 = vmatmul.mubr.msk.bf16.vlgmr.msra.gmra.mrb[72].mxu0 %vm108_vm1, %v12830_v48 }
0x22b3   :  { %11953 = vmatprep.mubr.msk.f32.mxu0 %vm12426_vm0, %v12425_v1 }
0x2338   :  { %v8278_v17 = vpop.xlane.xlu1 %8277 }
0x2339   :  { %v8282_v18 = vmul.f32 0.03125, %v8278_v17 }
0x233a   :  { %v8281_v31 = vpop.xlane.xlu0 %8280 }
0x233b   :  { %v8284_v51 = vadd.f32 1e-05, %v8282_v18  ;;  %v8283_v58 = vmul.f32 0.03125, %v8281_v31 }
0x233d   :  { %12270 = vrsqrt.f32 %v8284_v51  ;;  %v8285_v13 = vadd.f32 1e-05, %v8283_v58  ;;  %v8423_v51 = vrot.slane %v13460_v4, %v12923_v20 }
0x233f   :  { %12272 = vrsqrt.f32 %v8285_v13 }
0x2347   :  { %v12271_v60 = vpop.eup %12270 }
0x2348   :  { %v8288_v5 = vmul.f32 %v12271_v60, %v8272_v49 }
0x2349   :  { %v12273_v63 = vpop.eup %12272 }
0x234a   :  { %v8294_v48 = vmul.f32 %v8293_v55, %v8288_v5  ;;  %v8289_v26 = vmul.f32 %v12273_v63, %v8273_v57 }
0x234c   :  { %v8295_v23 = vmul.f32 %v8293_v55, %v8289_v26  ;;  %v13449_v29 = vadd.f32 %v8299_v22, %v8294_v48 }
0x234e   :  { %v13451_v11 = vadd.f32 %v8299_v22, %v8295_v23  ;;  %v8302_v27 = vadd.f32 %v13197_v21, %v13449_v29 }
0x2350   :  { %v8303_v9 = vadd.f32 %v13204_v32, %v13451_v11 }
0x2352   :  { %v8304_v61 = vpack.c.bf16 %v8303_v9, %v8302_v27 }
0x2354   :  { %11932 = vmatmul.mubr.msk.bf16.vlgmr.msra.gmra.mrb[76].mxu1 %vm108_vm1, %v8304_v61 }
0x2355   :  { %11947 = vmatprep.mubr.msk.bf16.mxu1 %vm108_vm1, %v12880_v7 }
0x2385   :  { %v11941_v8 = vpop.f32.mrb[72].mxu0 }
0x2386   :  { %v13464_v34 = vadd.f32 %v11941_v8, %v8364_v43  ;;  %v8405_v37 = vpop.f32.mrb[73].mxu0 }
0x2387   :  { %v8406_v52 = vadd.f32 %v8405_v37, %v8364_v43  ;;  %v11942_v21 = vpop.f32.mrb[74].mxu0 }
0x2388   :  { %v13466_v39 = vadd.f32 %v11942_v21, %v8364_v43  ;;  %v8408_v32 = vpop.f32.mrb[75].mxu0 }
0x2389   :  { %8489 = vrot.lane.b32.xlu0 %v8406_v52, %s12429_s27  ;;  %v8409_v40 = vadd.f32 %v8408_v32, %v8364_v43 }
0x238b   :  { %8491 = vrot.lane.b32.xlu1 %v8409_v40, %s12429_s27 }
0x238d   :  { %8501 = vrot.lane.b32.xlu0 %v8406_v52, %s12430_s28 }
0x238f   :  { %8495 = vrot.lane.b32.xlu1 %v8406_v52, %s12428_s26 }
0x2391   :  { %8503 = vrot.lane.b32.xlu0 %v8409_v40, %s12430_s28 }
0x2393   :  { %8497 = vrot.lane.b32.xlu1 %v8409_v40, %s12428_s26 }
0x2397   :  { %8424 = vrot.lane.b32.xlu1 %v13423_v47, %s12419_s11 }
0x23af   :  { %8527 = vxpose.xlu0.b32.start [1/2] (short) (narrow) %v8406_v52, 8 }
0x23b3   :  { %8528 = vxpose.xlu0.b32.end [2/2] (short) (narrow) %v8409_v40, 8 }
0x23dc   :  { %8426 = vrot.lane.b32.xlu0 %v13427_v50, %s12419_s11 }
0x23fb   :  { %v8490_v44 = vpop.permute.xlu0 %8489 }
0x23fd   :  { %v8492_v7 = vpop.permute.xlu1 %8491 }
0x23ff   :  { %v8502_v25 = vpop.permute.xlu0 %8501 }
0x2401   :  { %v8496_v41 = vpop.permute.xlu1 %8495 }
0x2403   :  { %v8504_v14 = vpop.permute.xlu0 %8503 }
0x2405   :  { %v8498_v42 = vpop.permute.xlu1 %8497 }
0x2409   :  { %v8425_v12 = vpop.permute.xlu1 %8424 }
0x240a   :  { %11943 = vmatprep.subr.bf16.mxu1 %v8425_v12 }
0x240b   :  { %11944 = vmatpush3.bf16.msra.mxu1 %v8425_v12 }
0x2427   :  { %v8354_v46 = vpop.f32.mrb[76].mxu1 }
0x2428   :  { %v8355_v53 = vadd.f32 %v8354_v46, %v8308_v45  ;;  %v11933_v3 = vpop.f32.mrb[77].mxu1 }
0x2429   :  { %v8357_v54 = vpop.f32.mrb[78].mxu1 }
0x242a   :  { %v8479_v49 = vmul.f32 0.35355338, %v8355_v53  ;;  %v13480_v56 = vadd.f32 %v8357_v54, %v8308_v45  ;;  %v11934_v57 = vpop.f32.mrb[79].mxu1 }
0x242c   :  { %8481 = vrot.lane.b32.xlu1 %v8479_v49, %s12429_s27  ;;  %8483 = vrot.lane.b32.xlu0 %v8479_v49, %s12428_s26 }
0x242f   :  { %v8543_v28 = vpop.trf.xlu0 }
0x2430   :  { %8485 = vrot.lane.b32.xlu1 %v8479_v49, %s12430_s28  ;;  %11952 = vmatpush3.msra.mxu0 %v8543_v28 }
0x2431   :  { %11954 = vmatmul.mubr.msk.f32.vlgmr.msra.gmra.mrb[66].mxu0 %vm389_vm2, %v8479_v49  ;;  %11961 = vmatprep.subr.mxu0 %v12425_v1 }
0x2432   :  { %11963 = vmatprep.mubr.msk.f32.mxu0 %vm12426_vm0, %v12425_v1 }
0x244a   :  { %8591 = vxpose.xlu0.b32.start [1/2] (short) (narrow) %v8496_v41, 8 }
0x244e   :  { %8592 = vxpose.xlu0.b32.end [2/2] (short) (narrow) %v8498_v42, 8  ;;  %v8427_v10 = vpop.permute.xlu0 %8426  ;;  %v13529_v42 = vmul.f32 0.35355338, %v13480_v56 }
0x244f   :  { %11945 = vmatprep.subr.bf16.mxu1 %v8427_v10 }
0x2450   :  { %11946 = vmatpush3.bf16.msra.mxu1 %v8427_v10 }
0x2451   :  { %11956 = vmatprep.subr.mxu1 %v12425_v1 }
0x2452   :  { %8623 = vxpose.xlu0.b32.start [1/2] (short) (narrow) %v8502_v25, 8 }
0x2453   :  { %11948 = vmatmul.mubr.msk.bf16.vlgmr.msra.gmra.mrb[80].mxu1 %vm108_vm1, %v12903_v62 }
0x2454   :  { %11958 = vmatprep.mubr.msk.f32.mxu1 %vm12426_vm0, %v12425_v1 }
0x2456   :  { %8624 = vxpose.xlu0.b32.end [2/2] (short) (narrow) %v8504_v14, 8 }
0x2459   :  { %8559 = vxpose.xlu1.b32.start [1/2] (short) (narrow) %v8490_v44, 8 }
0x245d   :  { %8560 = vxpose.xlu1.b32.end [2/2] (short) (narrow) %v8492_v7, 8 }
0x249e   :  { %v8484_v33 = vpop.permute.xlu0 %8483  ;;  %v8482_v16 = vpop.permute.xlu1 %8481 }
0x24a2   :  { %v8486_v59 = vpop.permute.xlu1 %8485 }
0x24ca   :  { %v8607_v35 = vpop.trf.xlu0 }
0x24cb   :  { %11962 = vmatpush3.msra.mxu0 %v8607_v35 }
0x24cc   :  { %11964 = vmatmul.mubr.msk.f32.vlgmr.msra.gmra.mrb[76].mxu0 %vm389_vm2, %v8484_v33  ;;  %11971 = vmatprep.subr.mxu0 %v12425_v1 }
0x24cd   :  { %11973 = vmatprep.mubr.msk.f32.mxu0 %vm12426_vm0, %v12425_v1 }
0x24d2   :  { %v8639_v62 = vpop.trf.xlu0 }
0x24d9   :  { %v8575_v17 = vpop.trf.xlu1 }
0x24da   :  { %11957 = vmatpush3.msra.mxu1 %v8575_v17 }
0x24db   :  { %11959 = vmatmul.mubr.msk.f32.vlgmr.msra.gmra.mrb[74].mxu1 %vm389_vm2, %v8482_v16  ;;  %11966 = vmatprep.subr.mxu1 %v12425_v1 }
0x24dc   :  { %11967 = vmatpush3.msra.mxu1 %v8639_v62  ;;  %11968 = vmatprep.mubr.msk.f32.mxu1 %vm12426_vm0, %v12425_v1 }
0x24dd   :  { %11976 = vmatprep.subr.mxu1 %v12425_v1 }
0x24df   :  { %11969 = vmatmul.mubr.msk.f32.vlgmr.msra.gmra.mrb[84].mxu1 %vm389_vm2, %v8486_v59 }
0x24e0   :  { %11978 = vmatprep.mubr.msk.f32.mxu1 %vm12426_vm0, %v12425_v1 }
0x2504   :  { %v8723_v18 = vpop.f32.mrb[66].mxu0 }
0x2505   :  { %v11955_v31 = vpop.f32.mrb[67].mxu0  ;;  %v8943_v48 = vsel %vm1431_vm3, %v8723_v18, -inf }
0x2526   :  { %v11949_v58 = vpop.f32.mrb[80].mxu1 }
0x2527   :  { %v13508_v13 = vadd.f32 %v11949_v58, %v8423_v51  ;;  %v8464_v36 = vpop.f32.mrb[81].mxu1 }
0x2528   :  { %v8465_v55 = vadd.f32 %v8464_v36, %v8423_v51  ;;  %v11950_v60 = vpop.f32.mrb[82].mxu1 }
0x2529   :  { %v13510_v5 = vadd.f32 %v11950_v60, %v8423_v51  ;;  %v8467_v22 = vpop.f32.mrb[83].mxu1 }
0x252a   :  { %8509 = vrot.lane.b32.xlu1 %v8465_v55, %s12429_s27  ;;  %v8468_v63 = vadd.f32 %v8467_v22, %v8423_v51 }
0x252c   :  { %8511 = vrot.lane.b32.xlu0 %v8468_v63, %s12429_s27 }
0x252e   :  { %8515 = vrot.lane.b32.xlu1 %v8465_v55, %s12428_s26 }
0x2532   :  { %8521 = vrot.lane.b32.xlu1 %v8465_v55, %s12430_s28 }
0x2536   :  { %8523 = vrot.lane.b32.xlu1 %v8468_v63, %s12430_s28 }
0x255f   :  { %8987 = vxpose.xlu1.b32.start [1/2] (short) (narrow) %v8465_v55, 8 }
0x2563   :  { %8988 = vxpose.xlu1.b32.end [2/2] (short) (narrow) %v8468_v63, 8 }
0x258a   :  { %8944 = vmax.xlane.f32.xlu1 %v8943_v48 }
0x259c   :  { %v8510_v21 = vpop.permute.xlu1 %8509 }
0x259e   :  { %v8512_v40 = vpop.permute.xlu0 %8511 }
0x259f   :  { %v8867_v26 = vpop.f32.mrb[76].mxu0 }
0x25a0   :  { %v11965_v23 = vpop.f32.mrb[77].mxu0  ;;  %v8949_v27 = vsel %vm1431_vm3, %v8867_v26, -inf  ;;  %v8516_v32 = vpop.permute.xlu1 %8515 }
0x25a1   :  { %8950 = vmax.xlane.f32.xlu1 %v8949_v27 }
0x25a4   :  { %v8522_v7 = vpop.permute.xlu1 %8521 }
0x25a8   :  { %v8524_v41 = vpop.permute.xlu1 %8523 }
0x25ae   :  { %v8795_v9 = vpop.f32.mrb[74].mxu1 }
0x25af   :  { %v11960_v61 = vpop.f32.mrb[75].mxu1  ;;  %v8946_v43 = vsel %vm1431_vm3, %v8795_v9, -inf }
0x25b0   :  { %8947 = vmax.xlane.f32.xlu0 %v8946_v43 }
0x25b2   :  { %v8939_v8 = vpop.f32.mrb[84].mxu1 }
0x25b3   :  { %v11970_v37 = vpop.f32.mrb[85].mxu1  ;;  %v8952_v52 = vsel %vm1431_vm3, %v8939_v8, -inf }
0x25b4   :  { %8953 = vmax.xlane.f32.xlu1 %v8952_v52 }
0x25dd   :  { %9019 = vxpose.xlu0.b32.start [1/2] (short) (narrow) %v8510_v21, 8 }
0x25df   :  { %v9003_v12 = vpop.trf.xlu1 }
0x25e1   :  { %9020 = vxpose.xlu0.b32.end [2/2] (short) (narrow) %v8512_v40, 8 }
0x25e7   :  { %9083 = vxpose.xlu1.b32.start [1/2] (short) (narrow) %v8522_v7, 8 }
0x25eb   :  { %9084 = vxpose.xlu1.b32.end [2/2] (short) (narrow) %v8524_v41, 8 }
0x260a   :  { %8517 = vrot.lane.b32.xlu0 %v8468_v63, %s12428_s26 }
0x260e   :  { %9708 = vrot.lane.b32.xlu0 %v13464_v34, %s12429_s27 }
0x2612   :  { %9714 = vrot.lane.b32.xlu0 %v13464_v34, %s12428_s26 }
0x2616   :  { %9716 = vrot.lane.b32.xlu0 %v13466_v39, %s12428_s26 }
0x2617   :  { %v8945_v44 = vpop.xlane.xlu1 %8944 }
0x2618   :  { %v8955_v25 = vsub.f32 %v8723_v18, %v8945_v44 }
0x261a   :  { %9700 = vrot.lane.b32.xlu0 %v13529_v42, %s12429_s27  ;;  %v8959_v45 = vmul.f32 1.442695, %v8955_v25 }
0x261c   :  { %12274 = vpow2.f32 %v8959_v45 }
0x261e   :  { %9704 = vrot.lane.b32.xlu0 %v13529_v42, %s12430_s28 }
0x2626   :  { %v12275_v54 = vpop.eup %12274 }
0x2627   :  { %v8967_v14 = vsel %vm1431_vm3, %v12275_v54, 0.0 }
0x262e   :  { %v8951_v46 = vpop.xlane.xlu1 %8950 }
0x262f   :  { %v8957_v53 = vsub.f32 %v8867_v26, %v8951_v46 }
0x2631   :  { %v8963_v3 = vmul.f32 1.442695, %v8957_v53 }
0x2633   :  { %12276 = vpow2.f32 %v8963_v3 }
0x263d   :  { %v12277_v49 = vpop.eup %12276  ;;  %8968 = vadd.xlane.f32.xlu0 %v8967_v14  ;;  %v8948_v56 = vpop.xlane.xlu0 %8947 }
0x263e   :  { %v8956_v57 = vsub.f32 %v8795_v9, %v8948_v56  ;;  %v8973_v10 = vsel %vm1431_vm3, %v12277_v49, 0.0 }
0x2640   :  { %v8961_v28 = vmul.f32 1.442695, %v8956_v57 }
0x2641   :  { %8974 = vadd.xlane.f32.xlu0 %v8973_v10  ;;  %v8954_v16 = vpop.xlane.xlu1 %8953 }
0x2642   :  { %12278 = vpow2.f32 %v8961_v28  ;;  %v8958_v17 = vsub.f32 %v8939_v8, %v8954_v16 }
0x2644   :  { %v8965_v18 = vmul.f32 1.442695, %v8958_v17 }
0x2646   :  { %12280 = vpow2.f32 %v8965_v18 }
0x264c   :  { %v12279_v33 = vpop.eup %12278 }
0x264d   :  { %v8970_v35 = vsel %vm1431_vm3, %v12279_v33, 0.0 }
0x264e   :  { %8971 = vadd.xlane.f32.xlu1 %v8970_v35 }
0x2650   :  { %v12281_v58 = vpop.eup %12280 }
0x2651   :  { %v8976_v55 = vsel %vm1431_vm3, %v12281_v58, 0.0 }
0x265d   :  { %v9035_v59 = vpop.trf.xlu0 }
0x265f   :  { %9710 = vrot.lane.b32.xlu1 %v13466_v39, %s12429_s27 }
0x2663   :  { %9720 = vrot.lane.b32.xlu1 %v13464_v34, %s12430_s28 }
0x2667   :  { %9722 = vrot.lane.b32.xlu1 %v13466_v39, %s12430_s28  ;;  %v9099_v23 = vpop.trf.xlu1 }
0x266b   :  { %9702 = vrot.lane.b32.xlu1 %v13529_v42, %s12428_s26 }
0x266e   :  { %9051 = vxpose.xlu0.b32.start [1/2] (short) (narrow) %v8516_v32, 8 }
0x267c   :  { %v8518_v62 = vpop.permute.xlu0 %8517 }
0x267d   :  { %9052 = vxpose.xlu0.b32.end [2/2] (short) (narrow) %v8518_v62, 8 }
0x2680   :  { %v9709_v31 = vpop.permute.xlu0 %9708 }
0x2681   :  { %9746 = vxpose.xlu0.b32.start [1/2] (short) (narrow) %v13464_v34, 8 }
0x2684   :  { %v9715_v51 = vpop.permute.xlu0 %9714 }
0x2685   :  { %9747 = vxpose.xlu0.b32.end [2/2] (short) (narrow) %v13466_v39, 8 }
0x2688   :  { %v9717_v36 = vpop.permute.xlu0 %9716 }
0x2689   :  { %9810 = vxpose.xlu0.b32.start [1/2] (short) (narrow) %v9715_v51, 8 }
0x268c   :  { %v9701_v60 = vpop.permute.xlu0 %9700 }
0x268d   :  { %9811 = vxpose.xlu0.b32.end [2/2] (short) (narrow) %v9717_v36, 8 }
0x268f   :  { %8977 = vadd.xlane.f32.xlu1 %v8976_v55 }
0x2690   :  { %v9705_v22 = vpop.permute.xlu0 %9704 }
0x26c2   :  { %9778 = vxpose.xlu1.b32.start [1/2] (short) (narrow) %v9709_v31, 8 }
0x26ca   :  { %v8969_v63 = vpop.xlane.xlu0 %8968 }
0x26cb   :  { %12282 = vrcp.f32 %v8969_v63 }
0x26ce   :  { %v8975_v48 = vpop.xlane.xlu0 %8974 }
0x26cf   :  { %12284 = vrcp.f32 %v8975_v48 }
0x26d5   :  { %v12283_v26 = vpop.eup %12282 }
0x26d6   :  { %v8980_v34 = vmul.f32 %v12283_v26, %v12275_v54 }
0x26d8   :  { %11972 = vmatpush3.xpose.msk.msra.mxu0 %vm1431_vm3, %v8980_v34 }
0x26d9   :  { %v12285_v39 = vpop.eup %12284  ;;  %11981 = vmatprep.subr.mxu0 %v12425_v1 }
0x26da   :  { %v8984_v27 = vmul.f32 %v12285_v39, %v12277_v49 }
0x26db   :  { %v8972_v9 = vpop.xlane.xlu1 %8971  ;;  %11974 = vmatmul.mubr.msk.f32.vlgmr.msra.gmra.mrb[78].mxu0 %vm1431_vm3, %v9003_v12 }
0x26dc   :  { %12286 = vrcp.f32 %v8972_v9  ;;  %11982 = vmatpush3.xpose.msk.msra.mxu0 %vm1431_vm3, %v8984_v27  ;;  %11983 = vmatprep.mubr.msk.f32.mxu0 %vm12426_vm0, %v12425_v1 }
0x26dd   :  { %11991 = vmatprep.subr.mxu0 %v12425_v1 }
0x26df   :  { %v9711_v61 = vpop.permute.xlu1 %9710 }
0x26e0   :  { %9779 = vxpose.xlu1.b32.end [2/2] (short) (narrow) %v9711_v61, 8 }
0x26e3   :  { %v9721_v43 = vpop.permute.xlu1 %9720 }
0x26e4   :  { %9842 = vxpose.xlu1.b32.start [1/2] (short) (narrow) %v9721_v43, 8 }
0x26e6   :  { %v12287_v8 = vpop.eup %12286 }
0x26e7   :  { %v8982_v37 = vmul.f32 %v12287_v8, %v12279_v33  ;;  %v9723_v52 = vpop.permute.xlu1 %9722 }
0x26e8   :  { %9843 = vxpose.xlu1.b32.end [2/2] (short) (narrow) %v9723_v52, 8 }
0x26e9   :  { %11977 = vmatpush3.xpose.msk.msra.mxu1 %vm1431_vm3, %v8982_v37 }
0x26ea   :  { %11986 = vmatprep.subr.mxu1 %v12425_v1 }
0x26eb   :  { %v9703_v7 = vpop.permute.xlu1 %9702 }
0x26ec   :  { %11979 = vmatmul.mubr.msk.f32.vlgmr.msra.gmra.mrb[86].mxu1 %vm1431_vm3, %v9035_v59 }
0x26ed   :  { %11988 = vmatprep.mubr.msk.f32.mxu1 %vm12426_vm0, %v12425_v1 }
0x26f9   :  { %v9067_v21 = vpop.trf.xlu0 }
0x26fa   :  { %11984 = vmatmul.mubr.msk.f32.vlgmr.msra.gmra.mrb[80].mxu0 %vm1431_vm3, %v9067_v21 }
0x26fb   :  { %11993 = vmatprep.mubr.msk.f32.mxu0 %vm12426_vm0, %v12425_v1 }
0x2701   :  { %v9762_v32 = vpop.trf.xlu0 }
0x2702   :  { %11992 = vmatpush3.msra.mxu0 %v9762_v32 }
0x2703   :  { %11994 = vmatmul.mubr.msk.f32.vlgmr.msra.gmra.mrb[82].mxu0 %vm389_vm2, %v13529_v42  ;;  %12001 = vmatprep.subr.mxu0 %v12425_v1 }
0x2704   :  { %12003 = vmatprep.mubr.msk.f32.mxu0 %vm12426_vm0, %v12425_v1 }
0x2709   :  { %v9826_v40 = vpop.trf.xlu0 }
0x270a   :  { %12002 = vmatpush3.msra.mxu0 %v9826_v40 }
0x270b   :  { %12004 = vmatmul.mubr.msk.f32.vlgmr.msra.gmra.mrb[84].mxu0 %vm389_vm2, %v9703_v7  ;;  %12011 = vmatprep.subr.mxu0 %v12425_v1 }
0x270c   :  { %12013 = vmatprep.mubr.msk.f32.mxu0 %vm12426_vm0, %v12425_v1 }
0x271c   :  { %v8978_v41 = vpop.xlane.xlu1 %8977 }
0x271d   :  { %12288 = vrcp.f32 %v8978_v41 }
0x2727   :  { %v12289_v12 = vpop.eup %12288 }
0x2728   :  { %v8986_v44 = vmul.f32 %v12289_v12, %v12281_v58 }
0x272a   :  { %11987 = vmatpush3.xpose.msk.msra.mxu1 %vm1431_vm3, %v8986_v44 }
0x272b   :  { %11996 = vmatprep.subr.mxu1 %v12425_v1 }
0x272d   :  { %11989 = vmatmul.mubr.msk.f32.vlgmr.msra.gmra.mrb[88].mxu1 %vm1431_vm3, %v9099_v23 }
0x272e   :  { %11998 = vmatprep.mubr.msk.f32.mxu1 %vm12426_vm0, %v12425_v1 }
0x275c   :  { %v9794_v42 = vpop.trf.xlu1 }
0x275d   :  { %11997 = vmatpush3.msra.mxu1 %v9794_v42 }
0x275e   :  { %11999 = vmatmul.mubr.msk.f32.vlgmr.msra.gmra.mrb[90].mxu1 %vm389_vm2, %v9701_v60  ;;  %12006 = vmatprep.subr.mxu1 %v12425_v1 }
0x275f   :  { %12008 = vmatprep.mubr.msk.f32.mxu1 %vm12426_vm0, %v12425_v1 }
0x2764   :  { %v9858_v25 = vpop.trf.xlu1 }
0x2765   :  { %12007 = vmatpush3.msra.mxu1 %v9858_v25 }
0x2766   :  { %12009 = vmatmul.mubr.msk.f32.vlgmr.msra.gmra.mrb[92].mxu1 %vm389_vm2, %v9705_v22  ;;  %12016 = vmatprep.subr.mxu1 %v12425_v1 }
0x2767   :  { %12018 = vmatprep.mubr.msk.f32.mxu1 %vm12426_vm0, %v12425_v1 }
0x27ae   :  { %v13586_v45 = vpop.f32.mrb[78].mxu0 }
0x27af   :  { %v11975_v46 = vpop.f32.mrb[79].mxu0 }
0x27bf   :  { %v13588_v53 = vpop.f32.mrb[86].mxu1 }
0x27c0   :  { %v11980_v3 = vpop.f32.mrb[87].mxu1 }
0x27cd   :  { %v13590_v54 = vpop.f32.mrb[80].mxu0 }
0x27ce   :  { %v11985_v14 = vpop.f32.mrb[81].mxu0 }
0x27d6   :  { %v9942_v49 = vpop.f32.mrb[82].mxu0 }
0x27d7   :  { %v11995_v56 = vpop.f32.mrb[83].mxu0  ;;  %v10162_v57 = vsel %vm1431_vm3, %v9942_v49, -inf }
0x27d8   :  { %10163 = vmax.xlane.f32.xlu0 %v10162_v57 }
0x27de   :  { %v10086_v28 = vpop.f32.mrb[84].mxu0 }
0x27df   :  { %v12005_v10 = vpop.f32.mrb[85].mxu0  ;;  %v10168_v33 = vsel %vm1431_vm3, %v10086_v28, -inf }
0x27e0   :  { %10169 = vmax.xlane.f32.xlu0 %v10168_v33 }
0x27f6   :  { %9728 = vrot.lane.b32.xlu0 %v13508_v13, %s12429_s27 }
0x27fa   :  { %9740 = vrot.lane.b32.xlu0 %v13508_v13, %s12430_s28 }
0x27fe   :  { %9742 = vrot.lane.b32.xlu0 %v13510_v5, %s12430_s28 }
0x2800   :  { %v9415_v35 = vpop.f32.mrb[88].mxu1 }
0x2801   :  { %v11990_v16 = vpop.f32.mrb[89].mxu1 }
0x2831   :  { %v10014_v59 = vpop.f32.mrb[90].mxu1 }
0x2832   :  { %v12000_v17 = vpop.f32.mrb[91].mxu1  ;;  %v10165_v62 = vsel %vm1431_vm3, %v10014_v59, -inf }
0x2833   :  { %10166 = vmax.xlane.f32.xlu1 %v10165_v62 }
0x2839   :  { %v10158_v18 = vpop.f32.mrb[92].mxu1 }
0x283a   :  { %v12010_v31 = vpop.f32.mrb[93].mxu1  ;;  %v10171_v36 = vsel %vm1431_vm3, %v10158_v18, -inf }
0x2844   :  { %9730 = vrot.lane.b32.xlu1 %v13510_v5, %s12429_s27 }
0x2865   :  { %v10164_v51 = vpop.xlane.xlu0 %10163 }
0x2866   :  { %v10174_v58 = vsub.f32 %v9942_v49, %v10164_v51 }
0x2868   :  { %10172 = vmax.xlane.f32.xlu1 %v10171_v36  ;;  %v10178_v8 = vmul.f32 1.442695, %v10174_v58 }
0x286d   :  { %v10170_v55 = vpop.xlane.xlu0 %10169 }
0x286e   :  { %v10176_v22 = vsub.f32 %v10086_v28, %v10170_v55 }
0x2870   :  { %v10182_v26 = vmul.f32 1.442695, %v10176_v22 }
0x2871   :  { %v9729_v60 = vpop.permute.xlu0 %9728 }
0x2875   :  { %v9741_v41 = vpop.permute.xlu0 %9740 }
0x2879   :  { %v9743_v12 = vpop.permute.xlu0 %9742 }
0x289b   :  { %10238 = vxpose.xlu1.b32.start [1/2] (short) (narrow) %v9729_v60, 8 }
0x28c0   :  { %v10167_v63 = vpop.xlane.xlu1 %10166 }
0x28c1   :  { %v10175_v48 = vsub.f32 %v10014_v59, %v10167_v63 }
0x28c3   :  { %v10180_v23 = vmul.f32 1.442695, %v10175_v48 }
0x28c4   :  { %v9731_v34 = vpop.permute.xlu1 %9730 }
0x28c5   :  { %12290 = vpow2.f32 %v10180_v23  ;;  %10239 = vxpose.xlu1.b32.end [2/2] (short) (narrow) %v9731_v34, 8 }
0x28c6   :  { %12292 = vpow2.f32 %v10182_v26 }
0x28c7   :  { %12294 = vpow2.f32 %v10178_v8 }
0x28cf   :  { %v12291_v39 = vpop.eup %12290 }
0x28d0   :  { %v10189_v27 = vsel %vm1431_vm3, %v12291_v39, 0.0  ;;  %v12293_v9 = vpop.eup %12292 }
0x28d1   :  { %10190 = vadd.xlane.f32.xlu0 %v10189_v27  ;;  %v10192_v61 = vsel %vm1431_vm3, %v12293_v9, 0.0  ;;  %v12295_v21 = vpop.eup %12294 }
0x28d2   :  { %v10186_v32 = vsel %vm1431_vm3, %v12295_v21, 0.0 }
0x28d5   :  { %10193 = vadd.xlane.f32.xlu0 %v10192_v61 }
0x28e3   :  { %9734 = vrot.lane.b32.xlu1 %v13508_v13, %s12428_s26 }
0x28e7   :  { %9736 = vrot.lane.b32.xlu1 %v13510_v5, %s12428_s26 }
0x28f5   :  { %v10173_v43 = vpop.xlane.xlu1 %10172 }
0x28f6   :  { %v10177_v37 = vsub.f32 %v10158_v18, %v10173_v43 }
0x28f8   :  { %v10184_v52 = vmul.f32 1.442695, %v10177_v37 }
0x28fa   :  { %12296 = vpow2.f32 %v10184_v52 }
0x2902   :  { %10206 = vxpose.xlu0.b32.start [1/2] (short) (narrow) %v13508_v13, 8 }
0x2904   :  { %v12297_v40 = vpop.eup %12296 }
0x2905   :  { %v10195_v7 = vsel %vm1431_vm3, %v12297_v40, 0.0 }
0x2906   :  { %10207 = vxpose.xlu0.b32.end [2/2] (short) (narrow) %v13510_v5, 8 }
0x290b   :  { %10187 = vadd.xlane.f32.xlu1 %v10186_v32 }
0x290f   :  { %10196 = vadd.xlane.f32.xlu1 %v10195_v7 }
0x2941   :  { %v10254_v44 = vpop.trf.xlu1 }
0x2942   :  { %10302 = vxpose.xlu1.b32.start [1/2] (short) (narrow) %v9741_v41, 8 }
0x2946   :  { %10303 = vxpose.xlu1.b32.end [2/2] (short) (narrow) %v9743_v12, 8 }
0x294a   :  { %9483 = vxpose.xlu1.b32.start.end [1/1] (short) (narrow) %v13590_v54, 8 }
0x2955   :  { %v9735_v42 = vpop.permute.xlu1 %9734 }
0x2956   :  { %10270 = vxpose.xlu0.b32.start [1/2] (short) (narrow) %v9735_v42, 8 }
0x2959   :  { %v9737_v13 = vpop.permute.xlu1 %9736 }
0x295a   :  { %10271 = vxpose.xlu0.b32.end [2/2] (short) (narrow) %v9737_v13, 8 }
0x295e   :  { %9419 = vxpose.xlu0.b32.start.end [1/1] (short) (narrow) %v13586_v45, 8  ;;  %v10191_v5 = vpop.xlane.xlu0 %10190 }
0x295f   :  { %12298 = vrcp.f32 %v10191_v5 }
0x2962   :  { %9451 = vxpose.xlu0.b32.start.end [1/1] (short) (narrow) %v13588_v53, 8  ;;  %v10194_v3 = vpop.xlane.xlu0 %10193 }
0x2966   :  { %9515 = vxpose.xlu0.b32.start.end [1/1] (short) (narrow) %v9415_v35, 8 }
0x2969   :  { %v12299_v25 = vpop.eup %12298 }
0x296a   :  { %v10201_v46 = vmul.f32 %v12299_v25, %v12291_v39 }
0x296c   :  { %12017 = vmatpush3.xpose.msk.msra.mxu1 %vm1431_vm3, %v10201_v46 }
0x296d   :  { %12026 = vmatprep.subr.mxu1 %v12425_v1 }
0x296f   :  { %12019 = vmatmul.mubr.msk.f32.vlgmr.msra.gmra.mrb[94].mxu1 %vm1431_vm3, %v10254_v44 }
0x2970   :  { %12028 = vmatprep.mubr.msk.f32.mxu1 %vm12426_vm0, %v12425_v1 }
0x2982   :  { %v10222_v56 = vpop.trf.xlu0 }
0x2998   :  { %v10188_v54 = vpop.xlane.xlu1 %10187 }
0x2999   :  { %12300 = vrcp.f32 %v10188_v54 }
0x299a   :  { %12302 = vrcp.f32 %v10194_v3 }
0x299c   :  { %v10197_v45 = vpop.xlane.xlu1 %10196 }
0x299d   :  { %12304 = vrcp.f32 %v10197_v45 }
0x29a3   :  { %v12301_v14 = vpop.eup %12300 }
0x29a4   :  { %v10199_v53 = vmul.f32 %v12301_v14, %v12295_v21  ;;  %v12303_v49 = vpop.eup %12302 }
0x29a5   :  { %v10203_v28 = vmul.f32 %v12303_v49, %v12293_v9 }
0x29a6   :  { %12012 = vmatpush3.xpose.msk.msra.mxu0 %vm1431_vm3, %v10199_v53 }
0x29a7   :  { %v12305_v57 = vpop.eup %12304  ;;  %12021 = vmatprep.subr.mxu0 %v12425_v1 }
0x29a8   :  { %v10205_v10 = vmul.f32 %v12305_v57, %v12297_v40 }
0x29a9   :  { %12014 = vmatmul.mubr.msk.f32.vlgmr.msra.gmra.mrb[86].mxu0 %vm1431_vm3, %v10222_v56 }
0x29aa   :  { %12022 = vmatpush3.xpose.msk.msra.mxu0 %vm1431_vm3, %v10203_v28  ;;  %12027 = vmatpush3.xpose.msk.msra.mxu1 %vm1431_vm3, %v10205_v10 }
0x29ab   :  { %12023 = vmatprep.mubr.msk.f32.mxu0 %vm12426_vm0, %v12425_v1  ;;  %12031 = vmatprep.subr.bf16.mxu0 %v12425_v1 }
0x29ac   :  { %12039 = vmatprep.subr.bf16.mxu1 %v12425_v1 }
0x29c2   :  { %v10318_v33 = vpop.trf.xlu1 }
0x29c3   :  { %12029 = vmatmul.mubr.msk.f32.vlgmr.msra.gmra.mrb[96].mxu1 %vm1431_vm3, %v10318_v33 }
0x29c4   :  { %12043 = vmatprep.mubr.msk.bf16.mxu1 %vm12426_vm0, %v12425_v1 }
0x29ca   :  { %v9499_v51 = vpop.trf.xlu1 }
0x29d6   :  { %v10286_v35 = vpop.trf.xlu0 }
0x29d7   :  { %12024 = vmatmul.mubr.msk.f32.vlgmr.msra.gmra.mrb[88].mxu0 %vm1431_vm3, %v10286_v35 }
0x29d8   :  { %12035 = vmatprep.mubr.msk.bf16.mxu0 %vm12426_vm0, %v12425_v1 }
0x29de   :  { %v9435_v18 = vpop.trf.xlu0 }
0x29df   :  { %v9547_v36 = vcombine.low %v9435_v18, %v9499_v51  ;;  %v9548_v55 = vcombine.high %v9435_v18, %v9499_v51 }
0x29e1   :  { %v9555_v63 = vrot.slane %v9547_v36, %v12736_v24  ;;  %v9562_v48 = vrot.slane %v9548_v55, %v12736_v24 }
0x29e2   :  { %v9467_v31 = vpop.trf.xlu0 }
0x29e6   :  { %v9531_v58 = vpop.trf.xlu0 }
0x29e7   :  { %v9563_v60 = vcombine.low %v9467_v31, %v9531_v58  ;;  %v9564_v22 = vcombine.high %v9467_v31, %v9531_v58 }
0x29e9   :  { %v9571_v26 = vrot.slane %v9563_v60, %v12736_v24  ;;  %v9578_v23 = vrot.slane %v9564_v22, %v12736_v24 }
0x29eb   :  { %v9579_v27 = vcombine.low %v9555_v63, %v9571_v26  ;;  %v9580_v9 = vcombine.high %v9555_v63, %v9571_v26  ;;  %v9595_v61 = vcombine.low %v9562_v48, %v9578_v23  ;;  %v9596_v43 = vcombine.high %v9562_v48, %v9578_v23 }
0x29ed   :  { %v9587_v8 = vrot.slane %v9579_v27, %v12743_v38  ;;  %v9594_v37 = vrot.slane %v9580_v9, %v12743_v38  ;;  %v9603_v52 = vrot.slane %v9595_v61, %v12743_v38  ;;  %v9610_v21 = vrot.slane %v9596_v43, %v12743_v38 }
0x29ef   :  { %v9615_v32 = vcombine.low %v9587_v8, %v9594_v37  ;;  %v11362_v40 = vcombine.high %v9587_v8, %v9594_v37  ;;  %v9631_v7 = vcombine.low %v9603_v52, %v9610_v21  ;;  %v11363_v41 = vcombine.high %v9603_v52, %v9610_v21 }
0x29f1   :  { %v9622_v12 = vrot.slane %v9615_v32, %v12736_v24  ;;  %v9630_v44 = vrot.slane %v11362_v40, %v12736_v24  ;;  %v9638_v42 = vrot.slane %v9631_v7, %v12736_v24  ;;  %v9646_v13 = vrot.slane %v11363_v41, %v12736_v24 }
0x29f3   :  { %v9647_v5 = vcombine.low %v9622_v12, %v9630_v44  ;;  %v9663_v25 = vcombine.low %v9638_v42, %v9646_v13  ;;  %v9648_v22 = vcombine.high %v9622_v12, %v9630_v44  ;;  %v9664_v63 = vcombine.high %v9638_v42, %v9646_v13 }
0x29f5   :  { %v13650_v54 = vrot.slane %v9647_v5, %v12743_v38  ;;  %v13653_v45 = vrot.slane %v9663_v25, %v12743_v38  ;;  %v9662_v43 = vrot.slane %v9648_v22, %v12743_v38  ;;  %v9678_v8 = vrot.slane %v9664_v63, %v12743_v38 }
0x29f7   :  { %v9679_v14 = vcombine.low %v13650_v54, %v13653_v45  ;;  %v9681_v44 = vcombine.low %v9662_v43, %v9678_v8 }
0x2a42   :  { %v10482_v16 = vpop.f32.mrb[94].mxu1 }
0x2a43   :  { %10670 = vxpose.xlu0.b32.start.end [1/1] (short) (narrow) %v10482_v16, 8  ;;  %v12020_v59 = vpop.f32.mrb[95].mxu1 }
0x2a7c   :  { %v10406_v17 = vpop.f32.mrb[86].mxu0 }
0x2a7d   :  { %10638 = vxpose.xlu1.b32.start.end [1/1] (short) (narrow) %v10406_v17, 8  ;;  %v12015_v62 = vpop.f32.mrb[87].mxu0 }
0x2a96   :  { %v10634_v34 = vpop.f32.mrb[96].mxu1 }
0x2a97   :  { %10734 = vxpose.xlu0.b32.start.end [1/1] (short) (narrow) %v10634_v34, 8  ;;  %v12030_v39 = vpop.f32.mrb[97].mxu1 }
0x2aaa   :  { %v10558_v46 = vpop.f32.mrb[88].mxu0 }
0x2aab   :  { %10702 = vxpose.xlu1.b32.start.end [1/1] (short) (narrow) %v10558_v46, 8  ;;  %v12025_v3 = vpop.f32.mrb[89].mxu0 }
0x2ac3   :  { %v10686_v53 = vpop.trf.xlu0 }
0x2ac9   :  { %10922 = vrot.lane.b32.xlu1 %v13423_v47, %s12427_s24 }
0x2afd   :  { %v10654_v49 = vpop.trf.xlu1 }
0x2b17   :  { %v10750_v56 = vpop.trf.xlu0 }
0x2b18   :  { %v10782_v57 = vcombine.low %v10686_v53, %v10750_v56  ;;  %v10783_v28 = vcombine.high %v10686_v53, %v10750_v56 }
0x2b1a   :  { %v10790_v17 = vrot.slane %v10782_v57, %v12736_v24  ;;  %v10797_v62 = vrot.slane %v10783_v28, %v12736_v24 }
0x2b2b   :  { %v10718_v10 = vpop.trf.xlu1 }
0x2b2c   :  { %v10766_v33 = vcombine.low %v10654_v49, %v10718_v10  ;;  %v10767_v35 = vcombine.high %v10654_v49, %v10718_v10  ;;  %v9682_v49 = vcombine.high %v9662_v43, %v9678_v8 }
0x2b2e   :  { %v10774_v16 = vrot.slane %v10766_v33, %v12736_v24  ;;  %v10781_v59 = vrot.slane %v10767_v35, %v12736_v24 }
0x2b30   :  { %v10798_v18 = vcombine.low %v10774_v16, %v10790_v17  ;;  %v10799_v31 = vcombine.high %v10774_v16, %v10790_v17  ;;  %v10814_v51 = vcombine.low %v10781_v59, %v10797_v62  ;;  %v10815_v47 = vcombine.high %v10781_v59, %v10797_v62 }
0x2b32   :  { %v10806_v58 = vrot.slane %v10798_v18, %v12743_v38  ;;  %v10813_v36 = vrot.slane %v10799_v31, %v12743_v38  ;;  %v10822_v55 = vrot.slane %v10814_v51, %v12743_v38  ;;  %v10829_v60 = vrot.slane %v10815_v47, %v12743_v38 }
0x2b34   :  { %v10834_v48 = vcombine.low %v10806_v58, %v10813_v36  ;;  %v11376_v26 = vcombine.high %v10806_v58, %v10813_v36  ;;  %v10850_v23 = vcombine.low %v10822_v55, %v10829_v60  ;;  %v11377_v34 = vcombine.high %v10822_v55, %v10829_v60 }
0x2b36   :  { %v10841_v39 = vrot.slane %v10834_v48, %v12736_v24  ;;  %v10849_v27 = vrot.slane %v11376_v26, %v12736_v24  ;;  %v10857_v9 = vrot.slane %v10850_v23, %v12736_v24  ;;  %v10865_v61 = vrot.slane %v11377_v34, %v12736_v24 }
0x2b37   :  { %v9680_v24 = vcombine.high %v13650_v54, %v13653_v45  ;;  %v10921_v54 = vrot.slane %v13460_v4, %v5369_v19 }
0x2b38   :  { %v10867_v37 = vcombine.high %v10841_v39, %v10849_v27  ;;  %v10883_v52 = vcombine.high %v10857_v9, %v10865_v61  ;;  %v10866_v21 = vcombine.low %v10841_v39, %v10849_v27  ;;  %v10882_v32 = vcombine.low %v10857_v9, %v10865_v61 }
0x2b3a   :  { %v10881_v40 = vrot.slane %v10867_v37, %v12743_v38  ;;  %v10897_v7 = vrot.slane %v10883_v52, %v12743_v38  ;;  %v10874_v41 = vrot.slane %v10866_v21, %v12743_v38  ;;  %v10890_v12 = vrot.slane %v10882_v32, %v12743_v38  ;;  %v12157_v37 = vld [vmem:[#allocation5 + $0x18] sm:$0xff]   ;;  %v12158_v52 = vld [vmem:[%s13765_s4 + $0x20] sm:$0xff]   ;;  %v12159_v21 = vld [vmem:[%s13765_s4 + $0x28] sm:$0xff]  }
0x2b3b   :  { %v10923_v42 = vpop.permute.xlu1 %10922 }
0x2b3c   :  { %v10900_v13 = vcombine.low %v10881_v40, %v10897_v7  ;;  %v10899_v5 = vcombine.high %v10874_v41, %v10890_v12  ;;  %v10898_v25 = vcombine.low %v10874_v41, %v10890_v12  ;;  %12032 = vmatpush3.bf16.msra.mxu0 %v10923_v42  ;;  %v10901_v53 = vcombine.high %v10881_v40, %v10897_v7 }
0x2b3d   :  { %12033 = vmatprep.subr.bf16.mxu0 %v12425_v1 }
0x2b3e   :  { %v12128_v46 = vpack.i.bf16 %v10900_v13, %v9681_v44  ;;  %v12123_v3 = vpack.i.bf16 %v10899_v5, %v9680_v24  ;;  %v12133_v38 = vpack.i.bf16 %v10901_v53, %v9682_v49  ;;  %v13716_v13 = vld [vmem:[#allocation7 + $0x18] sm:$0xff] }
0x2b3f   :  { %v11003_v24 = vrot.slane %v13716_v13, %v12800_v0  ;;  %v11009_v53 = vrot.slane %v13716_v13, %v12878_v6  ;;  %v12161_v0 = vld [vmem:[%s13765_s4 + $0x38] sm:$0xff]   ;;  %v11380_v6 = vld [vmem:[%s13767_s6 + $0x1] ss:$0 sm:$0xff] }
0x2b40   :  { %12129 = vrot.lane.b32.xlu1 %v12128_v46, %s12434_s30  ;;  %12124 = vrot.lane.b32.xlu0 %v12123_v3, %s12423_s25 }
0x2b44   :  { %12134 = vrot.lane.b32.xlu1 %v12133_v38, %s12435_s8 }
0x2b48   :  { %10924 = vrot.lane.b32.xlu1 %v13427_v50, %s12427_s24 }
0x2bb2   :  { %v12130_v56 = vpop.permute.xlu1 %12129  ;;  %v12125_v57 = vpop.permute.xlu0 %12124 }
0x2bb3   :  { %v12127_v28 = vunpack.i.h.bf16 %v12125_v57  ;;  %v12126_v10 = vunpack.i.l.bf16 %v12125_v57  ;;  %v12132_v33 = vunpack.i.h.bf16 %v12130_v56  ;;  %v12131_v35 = vunpack.i.l.bf16 %v12130_v56 }
0x2bb5   :  { %v9695_v16 = vsel %vm389_vm2, %v9679_v14, %v12126_v10  ;;  %v10914_v59 = vsel %vm389_vm2, %v10898_v25, %v12127_v28  ;;  %v12160_v28 = vld [vmem:[%s13765_s4 + $0x30] sm:$0xff]   ;;  %s12436_s4 = smov [#allocation8]  }
0x2bb6   :  { %v12135_v17 = vpop.permute.xlu1 %12134  ;;  %v9696_v31 = vsel %vm1431_vm3, %v9695_v16, %v12131_v35  ;;  %v10915_v50 = vsel %vm1431_vm3, %v10914_v59, %v12132_v33  ;;  %s11213_s6 = sshll.u32 %s12436_s4, 4  ;;  %s11214_s6 = int_to_ptr.vmem [resolvable:$true] %s11213_s6 }
0x2bb7   :  { %v12137_v62 = vunpack.i.h.bf16 %v12135_v17  ;;  %v12136_v18 = vunpack.i.l.bf16 %v12135_v17  ;;  %s12390_s12 = scalar_lea.vmem %s11214_s6, 256  ;;  %p12395_p11 = scmp.lt.s32.totalorder %s11214_s6, %s11214_s6 }
0x2bb8   :  { %p12391_p10 = scmp.ne.s32.totalorder %s11214_s6, %s12390_s12  ;;  %p12396_p12 = scmp.lt.s32.totalorder %s12390_s12, %s12390_s12 }
0x2bb9   :  { %v9697_v51 = vsel %vm1433_vm4, %v9696_v31, %v12136_v18  ;;  %v10916_v47 = vsel %vm1433_vm4, %v10915_v50, %v12137_v62 }
0x2bba   :  { %v10917_v58 = vpack.c.bf16 %v10916_v47, %v9697_v51  ;;  %v10925_v36 = vpop.permute.xlu1 %10924  ;;  %p12397_p13 = por %p12396_p12, %p12395_p11 }
0x2bbb   :  { %12034 = vmatpush3.bf16.msra.mxu0 %v10925_v36 }
0x2bbc   :  { %12047 = vmatprep.subr.bf16.mxu0 %v12425_v1  ;;  %p12398_p0 = pnand %p12397_p13, %p12391_p10 }
0x2bbe   :  { %12036 = vmatmul.mubr.msk.bf16.vlgmr.msra.gmra.mrb[92].mxu0 %vm108_vm1, %v10917_v58 }
0x2bbf   :  { %12055 = vmatprep.mubr.msk.bf16.mxu0 %vm12426_vm0, %v12425_v1  ;;  %12048 = vmatpush3.bf16.msra.mxu0 %v12158_v52  ;;  %v11203_v52 = vrot.slane %v13716_v13, %v12923_v20 }
0x2bc0   :  { %12049 = vmatprep.subr.bf16.mxu0 %v12425_v1 }
0x2bc3   :  { %12050 = vmatpush3.bf16.msra.mxu0 %v12159_v21 }
0x2bc4   :  { %12051 = vmatprep.subr.bf16.mxu0 %v12425_v1 }
0x2bc7   :  { %12052 = vmatpush3.bf16.msra.mxu0 %v12160_v28 }
0x2bc8   :  { %12053 = vmatprep.subr.bf16.mxu0 %v12425_v1 }
0x2bcb   :  { %12054 = vmatpush3.bf16.msra.mxu0 %v12161_v0 }
0x2c91   :  { %v10965_v45 = vpop.f32.mrb[92].mxu0 }
0x2c92   :  { %v10966_v14 = vadd.f32 %v10965_v45, %v10921_v54  ;;  %v12037_v55 = vpop.f32.mrb[93].mxu0 }
0x2c93   :  { %v10968_v60 = vpop.f32.mrb[94].mxu0 }
0x2c94   :  { %v10972_v22 = vadd.f32 %v10966_v14, %v13449_v29  ;;  %v10969_v63 = vadd.f32 %v10968_v60, %v10921_v54  ;;  %v12038_v48 = vpop.f32.mrb[95].mxu0 }
0x2c96   :  { %v10973_v26 = vadd.f32 %v10969_v63, %v13451_v11  ;;  %v10974_v23 = vsel %vm108_vm1, %v10972_v22, 0.0  ;;  %v12156_v11 = vld [vmem:[#allocation5 + $0x10] sm:$0xff]  }
0x2c97   :  { %10975 = vadd.xlane.f32.xlu0 %v10974_v23  ;;  %12040 = vmatpush3.bf16.msra.mxu1 %v12156_v11 }
0x2c98   :  { %v10977_v34 = vsel %vm108_vm1, %v10973_v26, 0.0  ;;  %12041 = vmatprep.subr.bf16.mxu1 %v12425_v1  ;;  %v11097_v1 = vrot.slane %v13716_v13, %v12567_v15 }
0x2c99   :  { %10978 = vadd.xlane.f32.xlu1 %v10977_v34 }
0x2c9b   :  { %12042 = vmatpush3.bf16.msra.mxu1 %v12157_v37 }
0x2d24   :  { %v10976_v39 = vpop.xlane.xlu0 %10975 }
0x2d25   :  { %v10980_v2 = vmul.f32 0.03125, %v10976_v39 }
0x2d26   :  { %v10979_v27 = vpop.xlane.xlu1 %10978 }
0x2d27   :  { %v10982_v19 = vsub.f32 %v10972_v22, %v10980_v2  ;;  %v10981_v4 = vmul.f32 0.03125, %v10979_v27 }
0x2d29   :  { %v10983_v9 = vsub.f32 %v10973_v26, %v10981_v4  ;;  %v10984_v61 = vmul.f32 %v10982_v19, %v10982_v19 }
0x2d2b   :  { %v10986_v43 = vsel %vm108_vm1, %v10984_v61, 0.0  ;;  %v10985_v29 = vmul.f32 %v10983_v9, %v10983_v9 }
0x2d2c   :  { %10987 = vadd.xlane.f32.xlu0 %v10986_v43 }
0x2d2d   :  { %v10989_v8 = vsel %vm108_vm1, %v10985_v29, 0.0 }
0x2d30   :  { %10990 = vadd.xlane.f32.xlu0 %v10989_v8  ;;  %v11197_v8 = vrot.slane %v13716_v13, %v12853_v30 }
0x2db9   :  { %v10988_v32 = vpop.xlane.xlu0 %10987 }
0x2dba   :  { %v10992_v40 = vmul.f32 0.03125, %v10988_v32 }
0x2dbc   :  { %v10994_v7 = vadd.f32 1e-05, %v10992_v40 }
0x2dbd   :  { %v10991_v41 = vpop.xlane.xlu0 %10990 }
0x2dbe   :  { %12306 = vrsqrt.f32 %v10994_v7  ;;  %v10993_v12 = vmul.f32 0.03125, %v10991_v41 }
0x2dc0   :  { %v10995_v44 = vadd.f32 1e-05, %v10993_v12 }
0x2dc2   :  { %12308 = vrsqrt.f32 %v10995_v44 }
0x2dc8   :  { %v12307_v42 = vpop.eup %12306 }
0x2dc9   :  { %v10998_v5 = vmul.f32 %v12307_v42, %v10982_v19 }
0x2dcb   :  { %v11004_v46 = vmul.f32 %v11003_v24, %v10998_v5 }
0x2dcc   :  { %v12309_v25 = vpop.eup %12308 }
0x2dcd   :  { %v10999_v3 = vmul.f32 %v12309_v25, %v10983_v9  ;;  %v11010_v38 = vadd.f32 %v11009_v53, %v11004_v46 }
0x2dcf   :  { %v11005_v49 = vmul.f32 %v11003_v24, %v10999_v3 }
0x2dd1   :  { %v11011_v56 = vadd.f32 %v11009_v53, %v11005_v49 }
0x2dd3   :  { %v11012_v57 = vpack.c.bf16 %v11011_v56, %v11010_v38 }
0x2dd5   :  { %12044 = vmatmul.mubr.msk.bf16.vlgmr.msra.gmra.mrb[100].mxu1 %vm108_vm1, %v11012_v57 }
0x2ea8   :  { %v11075_v10 = vpop.f32.mrb[100].mxu1 }
0x2ea9   :  { %v11076_v33 = vadd.f32 %v11380_v6, %v11075_v10  ;;  %v12045_v35 = vpop.f32.mrb[101].mxu1 }
0x2eaa   :  { %v11078_v16 = vpop.f32.mrb[102].mxu1 }
0x2eab   :  { %v11079_v59 = vadd.f32 %v11380_v6, %v11078_v16  ;;  %v12046_v17 = vpop.f32.mrb[103].mxu1  ;;  %v11082_v62 = vmax.f32 %v11076_v33, 0.0 }
0x2ead   :  { %v11083_v18 = vmax.f32 %v11079_v59, 0.0 }
0x2eaf   :  { %v11084_v31 = vpack.c.bf16 %v11083_v18, %v11082_v62 }
0x2eb1   :  { %12056 = vmatmul.mubr.msk.bf16.vlgmr.msra.gmra.mrb[96].mxu0 %vm5568_vm5, %v11084_v31 }
0x2f84   :  { %v11159_v50 = vpop.f32.mrb[96].mxu0 }
0x2f85   :  { %v11160_v51 = vadd.f32 %v11159_v50, %v11097_v1  ;;  %v12057_v47 = vpop.f32.mrb[97].mxu0 }
0x2f86   :  { %v11162_v58 = vpop.f32.mrb[98].mxu0 }
0x2f87   :  { %v11166_v36 = vadd.f32 %v11160_v51, %v11010_v38  ;;  %v11163_v54 = vadd.f32 %v11162_v58, %v11097_v1  ;;  %v12058_v45 = vpop.f32.mrb[99].mxu0 }
0x2f89   :  { %v11167_v14 = vadd.f32 %v11163_v54, %v11011_v56  ;;  %v11168_v55 = vsel %vm108_vm1, %v11166_v36, 0.0 }
0x2f8a   :  { %11169 = vadd.xlane.f32.xlu1 %v11168_v55 }
0x2f8b   :  { %v11171_v60 = vsel %vm108_vm1, %v11167_v14, 0.0 }
0x2f8c   :  { %11172 = vadd.xlane.f32.xlu0 %v11171_v60 }
0x3017   :  { %v11170_v22 = vpop.xlane.xlu1 %11169 }
0x3018   :  { %v11174_v63 = vmul.f32 0.03125, %v11170_v22 }
0x3019   :  { %v11173_v48 = vpop.xlane.xlu0 %11172 }
0x301a   :  { %v11176_v26 = vsub.f32 %v11166_v36, %v11174_v63  ;;  %v11175_v23 = vmul.f32 0.03125, %v11173_v48 }
0x301c   :  { %v11177_v15 = vsub.f32 %v11167_v14, %v11175_v23  ;;  %v11178_v34 = vmul.f32 %v11176_v26, %v11176_v26 }
0x301e   :  { %v11180_v39 = vsel %vm108_vm1, %v11178_v34, 0.0  ;;  %v11179_v2 = vmul.f32 %v11177_v15, %v11177_v15 }
0x301f   :  { %11181 = vadd.xlane.f32.xlu1 %v11180_v39 }
0x3020   :  { %v11183_v27 = vsel %vm108_vm1, %v11179_v2, 0.0 }
0x3021   :  { %11184 = vadd.xlane.f32.xlu0 %v11183_v27 }
0x30ac   :  { %v11182_v19 = vpop.xlane.xlu1 %11181 }
0x30ad   :  { %v11186_v4 = vmul.f32 0.03125, %v11182_v19 }
0x30ae   :  { %v11185_v9 = vpop.xlane.xlu0 %11184 }
0x30af   :  { %v11188_v61 = vadd.f32 1e-05, %v11186_v4  ;;  %v11187_v43 = vmul.f32 0.03125, %v11185_v9 }
0x30b1   :  { %12310 = vrsqrt.f32 %v11188_v61  ;;  %v11189_v29 = vadd.f32 1e-05, %v11187_v43 }
0x30b3   :  { %12312 = vrsqrt.f32 %v11189_v29 }
0x30bb   :  { %v12311_v11 = vpop.eup %12310 }
0x30bc   :  { %v11192_v37 = vmul.f32 %v12311_v11, %v11176_v26 }
0x30bd   :  { %v12313_v21 = vpop.eup %12312 }
0x30be   :  { %v11193_v32 = vmul.f32 %v12313_v21, %v11177_v15  ;;  %v11198_v40 = vmul.f32 %v11197_v8, %v11192_v37 }
0x30c0   :  { %v11199_v7 = vmul.f32 %v11197_v8, %v11193_v32  ;;  %v11204_v41 = vadd.f32 %v11203_v52, %v11198_v40 }
0x30c2   :  { %v11205_v12 = vadd.f32 %v11203_v52, %v11199_v7  ;;  %11206 = vst.msk [vmem:[#allocation8] sm:$0xff] %vm108_vm1, %v11204_v41 }
0x30c4   :  { %11207 = vst.msk [vmem:[#allocation8 + $0x8] sm:$0xff] %vm108_vm1, %v11205_v12 }
0x30c5   :  { %12401 = shalt.err (!%p12398_p0)
}
0x30c6   :  { %s12402_s14 = scalar_lea.hbm %s13768_s7, 256 }
0x30c7   :  { %p12403_p1 = scmp.ne.s32.totalorder %s13768_s7, %s12402_s14  ;;  %p12406_p2 = scmp.lt.u32.totalorder %s12402_s14, %s13768_s7 }
0x30c9   :  { %p12408_p3 = pnand %p12406_p2, %p12403_p1 }
0x30cb   :  { %12411 = shalt.err (!%p12408_p3)
}
0x30cc   :  { %11219 = dma.vmem_to_hbm [thread:$0]  %s11214_s6, 256, %s13768_s7, [#allocation4], %s12422_s3, %s12422_s3, %s12423_s25  }
0x30cd   :  { %12416 = dma.done.wait [#allocation4], 256  }
0x30ce   :  { %12417 = vsyncadd [#allocation4], 4294967040 }
0x30cf   :  { %11223 = vsyncpa [#allocation3], 1 }
0x30d0   :  { %11224 = vsyncpa [#allocation6], 1 }
0x30d1   :  { %11225 = vsyncpa [#allocation4], 1 }

</bundles_post_ra>
